<compile_context>
chip_gen: v6e
topology: v6e:2x2x1
jax: 0.10.0
libtpu: 0.0.40
codegen_flags: <defaults>
</compile_context>

<pallas_src>
import numpy as np
import jax
import jax.numpy as jnp
from jax import lax
from jax.experimental import pallas as pl
from jax.experimental.pallas import tpu as pltpu

H = 64            # GRU hidden size
H2 = 2 * H
H3 = 3 * H
B_PAD = 8         # pad batch to one full sublane tile
MAX_TB = 256      # max time steps per grid block (multiple of 128)


def gru_kernel(x_ref,
               wih0_ref, bih0c_ref, whh0_ref, bhh0n_ref,
               wih1_ref, bih1c_ref, whh1_ref, bhh1n_ref,
               wout_ref, bout_ref,
               y_ref,
               h0_ref, h1_ref, gi0_ref, h1h_ref):
    tb = pl.program_id(0)

    @pl.when(tb == 0)
    def _():
        h0_ref[...] = jnp.zeros_like(h0_ref)     # torch.zeros hidden init
        h1_ref[...] = jnp.zeros_like(h1_ref)

    # Hoisted off the serial path: layer-0 input transform for the whole block.
    # (r/z hidden-hidden biases are pre-folded into bih0c; only b_hn stays separate
    #  because of the r * (W_hn h + b_hn) term.)
    gi0_ref[...] = x_ref[...] * wih0_ref[...] + bih0c_ref[...]          # (TB, B, 3H)

    def step(i, carry):
        h0, h1 = carry
        gi0 = gi0_ref[i]                                                 # (B, 3H)

        # ---- layer 0 ----
        gh0 = jnp.dot(h0, whh0_ref[...], preferred_element_type=jnp.float32)
        r0 = jax.nn.sigmoid(gi0[:, 0:H] + gh0[:, 0:H])
        z0 = jax.nn.sigmoid(gi0[:, H:H2] + gh0[:, H:H2])
        n0 = jnp.tanh(gi0[:, H2:H3] + r0 * (gh0[:, H2:H3] + bhh0n_ref[...]))
        h0n = (1.0 - z0) * n0 + z0 * h0

        # ---- layer 1 ----
        gi1 = jnp.dot(h0n, wih1_ref[...], preferred_element_type=jnp.float32) + bih1c_ref[...]
        gh1 = jnp.dot(h1, whh1_ref[...], preferred_element_type=jnp.float32)
        r1 = jax.nn.sigmoid(gi1[:, 0:H] + gh1[:, 0:H])
        z1 = jax.nn.sigmoid(gi1[:, H:H2] + gh1[:, H:H2])
        n1 = jnp.tanh(gi1[:, H2:H3] + r1 * (gh1[:, H2:H3] + bhh1n_ref[...]))
        h1n = (1.0 - z1) * n1 + z1 * h1

        h1h_ref[i] = h1n                                                 # defer projection
        return (h0n, h1n)

    n_steps = gi0_ref.shape[0]
    h0, h1 = lax.fori_loop(0, n_steps, step, (h0_ref[...], h1_ref[...]), unroll=8)
    h0_ref[...] = h0
    h1_ref[...] = h1

    # Deferred output projection: one batched multiply-reduce per block instead of a
    # degenerate (B,64)@(64,1) matmul + masked 8-byte store every time step.
    y_tb = jnp.sum(h1h_ref[...] * wout_ref[...], axis=-1)                # (TB, B)
    y_ref[...] = y_tb + bout_ref[...]


def gru_forward(x, packed):
    """x: (B, T, 1) float32 -> (B, T, 1) float32 (matches gru.forward)."""
    B, T, _ = x.shape
    assert B <= B_PAD, "pad/split batch beyond 8 in the wrapper if needed"
    if T <= MAX_TB:
        TB, T_pad = T, T                        # single block: block == full array dims
    else:
        TB = MAX_TB                             # multiple of 128 -> clean tiling
        T_pad = ((T + TB - 1) // TB) * TB

    # time-major, batch padded to 8 sublanes, time padded to a block multiple
    x_tm = jnp.zeros((T_pad, B_PAD, 1), jnp.float32)
    x_tm = x_tm.at[:T, :B, :].set(jnp.transpose(x, (1, 0, 2)).astype(jnp.float32))

    weight_args = (packed["wih0"], packed["bih0c"], packed["whh0"], packed["bhh0n"],
                   packed["wih1"], packed["bih1c"], packed["whh1"], packed["bhh1n"],
                   packed["wout"], packed["bout"])

    def const_map(nd):
        return lambda t, _n=nd: (0,) * _n

    y_tm = pl.pallas_call(
        gru_kernel,
        out_shape=jax.ShapeDtypeStruct((T_pad, B_PAD), jnp.float32),
        grid_spec=pltpu.PrefetchScalarGridSpec(
            num_scalar_prefetch=0,
            grid=(T_pad // TB,),
            in_specs=[pl.BlockSpec((TB, B_PAD, 1), lambda t: (t, 0, 0))]
                     + [pl.BlockSpec(a.shape, const_map(a.ndim)) for a in weight_args],
            out_specs=pl.BlockSpec((TB, B_PAD), lambda t: (t, 0)),
            scratch_shapes=[pltpu.VMEM((B_PAD, H), jnp.float32),      # h0 (persists)
                            pltpu.VMEM((B_PAD, H), jnp.float32),      # h1 (persists)
                            pltpu.VMEM((TB, B_PAD, H3), jnp.float32),  # precomputed gi0 slab
                            pltpu.VMEM((TB, B_PAD, H), jnp.float32)],  # h1 history
        ),
        compiler_params=pltpu.CompilerParams(
            dimension_semantics=("arbitrary",)),   # time recurrence is serial
    )(x_tm, *weight_args)

    # (T_pad, B_PAD) -> (B, T, 1); wrapper-side slice/transpose is free plumbing.
    return jnp.transpose(y_tm[:T, :B])[:, :, None]


# ----------------------------- parameters & reference -----------------------------

def init_raw_params(key):
    """Raw PyTorch-layout weights, uniform(-1/sqrt(H), 1/sqrt(H))."""
    k = 1.0 / np.sqrt(H)
    ks = jax.random.split(key, 10)

    def u(kk, shape):
        return jax.random.uniform(kk, shape, jnp.float32, -k, k)

    return {
        "wih0": u(ks[0], (H3, 1)),   "whh0": u(ks[1], (H3, H)),
        "bih0": u(ks[2], (H3,)),     "bhh0": u(ks[3], (H3,)),
        "wih1": u(ks[4], (H3, H)),   "whh1": u(ks[5], (H3, H)),
        "bih1": u(ks[6], (H3,)),     "bhh1": u(ks[7], (H3,)),
        "wout": u(ks[8], (1, H)),    "bout": u(ks[9], (1,)),
    }


def pack_params(raw):
    """Kernel layout: transposed weights, r/z hh-biases folded into input biases."""
    zn = jnp.zeros((H,), jnp.float32)
    bih0c = raw["bih0"] + jnp.concatenate([raw["bhh0"][:H2], zn])
    bih1c = raw["bih1"] + jnp.concatenate([raw["bhh1"][:H2], zn])
    return {
        "wih0":  raw["wih0"].T.reshape(1, 1, H3),
        "bih0c": bih0c.reshape(1, 1, H3),
        "whh0":  raw["whh0"].T,                     # (H, 3H)
        "bhh0n": raw["bhh0"][H2:].reshape(1, H),
        "wih1":  raw["wih1"].T,                     # (H, 3H)
        "bih1c": bih1c.reshape(1, H3),
        "whh1":  raw["whh1"].T,                     # (H, 3H)
        "bhh1n": raw["bhh1"][H2:].reshape(1, H),
        "wout":  raw["wout"].reshape(1, 1, H),
        "bout":  raw["bout"].reshape(1, 1),
    }


def gru_reference(x, raw):
    """Pure-JAX reference with PyTorch GRU semantics (for validation)."""
    hp = lax.Precision.HIGHEST
    B = x.shape[0]

    def gates(gi, gh, h):
        r = jax.nn.sigmoid(gi[:, 0:H] + gh[:, 0:H])
        z = jax.nn.sigmoid(gi[:, H:H2] + gh[:, H:H2])
        n = jnp.tanh(gi[:, H2:H3] + r * gh[:, H2:H3])
        return (1.0 - z) * n + z * h

    def step(carry, x_t):
        h0, h1 = carry
        gi0 = jnp.dot(x_t, raw["wih0"].T, precision=hp) + raw["bih0"]
        gh0 = jnp.dot(h0, raw["whh0"].T, precision=hp) + raw["bhh0"]
        h0n = gates(gi0, gh0, h0)
        gi1 = jnp.dot(h0n, raw["wih1"].T, precision=hp) + raw["bih1"]
        gh1 = jnp.dot(h1, raw["whh1"].T, precision=hp) + raw["bhh1"]
        h1n = gates(gi1, gh1, h1)
        y = jnp.dot(h1n, raw["wout"].T, precision=hp) + raw["bout"]
        return (h0n, h1n), y

    h0 = jnp.zeros((B, H), jnp.float32)
    h1 = jnp.zeros((B, H), jnp.float32)
    _, ys = lax.scan(step, (h0, h1), jnp.transpose(x, (1, 0, 2)))
    return jnp.transpose(ys, (1, 0, 2))


if __name__ == "__main__":
    root = jax.random.PRNGKey(0)
    k_params, k_x1, k_x2 = jax.random.split(root, 3)

    raw = init_raw_params(k_params)
    packed = pack_params(raw)

    # Small config matching the module: batch=2, seq=8, input feature=1.
    x1 = jax.random.normal(k_x1, (2, 8, 1), jnp.float32)
    y1 = jax.block_until_ready(gru_forward(x1, packed))
    assert y1.shape == (2, 8, 1)
    np.testing.assert_allclose(np.asarray(y1), np.asarray(gru_reference(x1, raw)),
                               rtol=1e-3, atol=1e-3)

    # Longer sequence: exercises multi-block grid, batch padding and time padding.
    x2 = jax.random.normal(k_x2, (3, 300, 1), jnp.float32)
    y2 = jax.block_until_ready(gru_forward(x2, packed))
    assert y2.shape == (3, 300, 1)
    np.testing.assert_allclose(np.asarray(y2), np.asarray(gru_reference(x2, raw)),
                               rtol=1e-3, atol=1e-3)

    print("KERNEL_OK")
</pallas_src>

<mosaic_0001>
module attributes {stable_mosaic.version = 11 : i64} {
  func.func @gru_kernel(%arg0: i32, %arg1: memref<8x8x1xf32, #tpu.memory_space<vmem>>, %arg2: memref<1x1x192xf32, #tpu.memory_space<vmem>>, %arg3: memref<1x1x192xf32, #tpu.memory_space<vmem>>, %arg4: memref<64x192xf32, #tpu.memory_space<vmem>>, %arg5: memref<1x64xf32, #tpu.memory_space<vmem>>, %arg6: memref<64x192xf32, #tpu.memory_space<vmem>>, %arg7: memref<1x192xf32, #tpu.memory_space<vmem>>, %arg8: memref<64x192xf32, #tpu.memory_space<vmem>>, %arg9: memref<1x64xf32, #tpu.memory_space<vmem>>, %arg10: memref<1x1x64xf32, #tpu.memory_space<vmem>>, %arg11: memref<1x1xf32, #tpu.memory_space<vmem>>, %arg12: memref<8x8xf32, #tpu.memory_space<vmem>>, %arg13: memref<8x64xf32, #tpu.memory_space<vmem>>, %arg14: memref<8x64xf32, #tpu.memory_space<vmem>>, %arg15: memref<8x8x192xf32, #tpu.memory_space<vmem>>, %arg16: memref<8x8x64xf32, #tpu.memory_space<vmem>>) attributes {dimension_semantics = [#tpu.dimension_semantics<arbitrary>], iteration_bounds = array<i64: 1>, scalar_prefetch = 0 : i64, scratch_operands = 4 : i64, tpu.core_type = #tpu.core_type<tc>, window_params = [{transform_indices = @transform_0, window_bounds = array<i64: 8, 8, 1>}, {pipeline_mode = #tpu.pipeline_mode<synchronous>, transform_indices = @transform_1, window_bounds = array<i64: 1, 1, 192>}, {pipeline_mode = #tpu.pipeline_mode<synchronous>, transform_indices = @transform_2, window_bounds = array<i64: 1, 1, 192>}, {pipeline_mode = #tpu.pipeline_mode<synchronous>, transform_indices = @transform_3, window_bounds = array<i64: 64, 192>}, {pipeline_mode = #tpu.pipeline_mode<synchronous>, transform_indices = @transform_4, window_bounds = array<i64: 1, 64>}, {pipeline_mode = #tpu.pipeline_mode<synchronous>, transform_indices = @transform_5, window_bounds = array<i64: 64, 192>}, {pipeline_mode = #tpu.pipeline_mode<synchronous>, transform_indices = @transform_6, window_bounds = array<i64: 1, 192>}, {pipeline_mode = #tpu.pipeline_mode<synchronous>, transform_indices = @transform_7, window_bounds = array<i64: 64, 192>}, {pipeline_mode = #tpu.pipeline_mode<synchronous>, transform_indices = @transform_8, window_bounds = array<i64: 1, 64>}, {pipeline_mode = #tpu.pipeline_mode<synchronous>, transform_indices = @transform_9, window_bounds = array<i64: 1, 1, 64>}, {pipeline_mode = #tpu.pipeline_mode<synchronous>, transform_indices = @transform_10, window_bounds = array<i64: 1, 1>}, {transform_indices = @transform_11, window_bounds = array<i64: 8, 8>}]} {
    %c0_i32 = arith.constant 0 : i32
    %0 = arith.cmpi eq, %arg0, %c0_i32 : i32
    %1 = arith.extui %0 : i1 to i32
    %c0_i32_0 = arith.constant 0 : i32
    %2 = arith.cmpi ne, %1, %c0_i32_0 : i32
    scf.if %2 {
      %cst_231 = arith.constant 0.000000e+00 : f32
      %617 = vector.broadcast %cst_231 : f32 to vector<8x64xf32>
      %c0_232 = arith.constant 0 : index
      %c0_233 = arith.constant 0 : index
      %618 = vector.load %arg13[%c0_232, %c0_233] : memref<8x64xf32, #tpu.memory_space<vmem>>, vector<8x64xf32>
      tpu.vector_store %arg13[%c0_232, %c0_233], %617 {strides = array<i32>} : memref<8x64xf32, #tpu.memory_space<vmem>>, vector<8x64xf32>,
      %cst_234 = arith.constant 0.000000e+00 : f32
      %619 = vector.broadcast %cst_234 : f32 to vector<8x64xf32>
      %c0_235 = arith.constant 0 : index
      %c0_236 = arith.constant 0 : index
      %620 = vector.load %arg14[%c0_235, %c0_236] : memref<8x64xf32, #tpu.memory_space<vmem>>, vector<8x64xf32>
      tpu.vector_store %arg14[%c0_235, %c0_236], %619 {strides = array<i32>} : memref<8x64xf32, #tpu.memory_space<vmem>>, vector<8x64xf32>,
    } else {
    }
    %c0 = arith.constant 0 : index
    %c0_1 = arith.constant 0 : index
    %c0_2 = arith.constant 0 : index
    %3 = vector.load %arg1[%c0, %c0_1, %c0_2] : memref<8x8x1xf32, #tpu.memory_space<vmem>>, vector<8x8x1xf32>
    %c0_3 = arith.constant 0 : index
    %c0_4 = arith.constant 0 : index
    %c0_5 = arith.constant 0 : index
    %4 = vector.load %arg2[%c0_3, %c0_4, %c0_5] : memref<1x1x192xf32, #tpu.memory_space<vmem>>, vector<1x1x192xf32>
    %5 = vector.broadcast %3 : vector<8x8x1xf32> to vector<8x8x192xf32>
    %6 = vector.broadcast %4 : vector<1x1x192xf32> to vector<8x8x192xf32>
    %7 = arith.mulf %5, %6 : vector<8x8x192xf32>
    %c0_6 = arith.constant 0 : index
    %c0_7 = arith.constant 0 : index
    %c0_8 = arith.constant 0 : index
    %8 = vector.load %arg3[%c0_6, %c0_7, %c0_8] : memref<1x1x192xf32, #tpu.memory_space<vmem>>, vector<1x1x192xf32>
    %9 = vector.broadcast %8 : vector<1x1x192xf32> to vector<8x8x192xf32>
    %10 = arith.addf %7, %9 : vector<8x8x192xf32>
    %c0_9 = arith.constant 0 : index
    %c0_10 = arith.constant 0 : index
    %c0_11 = arith.constant 0 : index
    %11 = vector.load %arg15[%c0_9, %c0_10, %c0_11] : memref<8x8x192xf32, #tpu.memory_space<vmem>>, vector<8x8x192xf32>
    tpu.vector_store %arg15[%c0_9, %c0_10, %c0_11], %10 {strides = array<i32>} : memref<8x8x192xf32, #tpu.memory_space<vmem>>, vector<8x8x192xf32>,
    %c0_12 = arith.constant 0 : index
    %c0_13 = arith.constant 0 : index
    %12 = vector.load %arg13[%c0_12, %c0_13] : memref<8x64xf32, #tpu.memory_space<vmem>>, vector<8x64xf32>
    %c0_14 = arith.constant 0 : index
    %c0_15 = arith.constant 0 : index
    %13 = vector.load %arg14[%c0_14, %c0_15] : memref<8x64xf32, #tpu.memory_space<vmem>>, vector<8x64xf32>
    %c0_i32_16 = arith.constant 0 : i32
    %14 = arith.index_cast %c0_i32_16 : i32 to index
    %c0_17 = arith.constant 0 : index
    %c0_18 = arith.constant 0 : index
    %15 = vector.load %arg15[%14, %c0_17, %c0_18] : memref<8x8x192xf32, #tpu.memory_space<vmem>>, vector<1x8x192xf32>
    %16 = vector.shape_cast %15 : vector<1x8x192xf32> to vector<8x192xf32>
    %c0_19 = arith.constant 0 : index
    %c0_20 = arith.constant 0 : index
    %17 = vector.load %arg4[%c0_19, %c0_20] : memref<64x192xf32, #tpu.memory_space<vmem>>, vector<64x192xf32>
    %cst = arith.constant dense<0.000000e+00> : vector<8x192xf32>
    %18 = tpu.matmul %12, %17, %cst {dimension_numbers = #tpu.dot_dimension_numbers<[1], [0], [0], [1], [0, 0, 1, 1], [], []>} : vector<8x64xf32>, vector<64x192xf32>, vector<8x192xf32> -> vector<8x192xf32>
    %19 = vector.extract_strided_slice %16 {offsets = [0, 0], sizes = [8, 64], strides = [1, 1]} : vector<8x192xf32> to vector<8x64xf32>
    %20 = vector.extract_strided_slice %18 {offsets = [0, 0], sizes = [8, 64], strides = [1, 1]} : vector<8x192xf32> to vector<8x64xf32>
    %21 = arith.addf %19, %20 : vector<8x64xf32>
    %22 = arith.negf %21 : vector<8x64xf32>
    %23 = math.exp %22 : vector<8x64xf32>
    %cst_21 = arith.constant 1.000000e+00 : f32
    %24 = vector.broadcast %cst_21 : f32 to vector<8x64xf32>
    %25 = arith.addf %24, %23 : vector<8x64xf32>
    %26 = arith.divf %24, %25 : vector<8x64xf32>
    %27 = vector.extract_strided_slice %16 {offsets = [0, 64], sizes = [8, 64], strides = [1, 1]} : vector<8x192xf32> to vector<8x64xf32>
    %28 = vector.extract_strided_slice %18 {offsets = [0, 64], sizes = [8, 64], strides = [1, 1]} : vector<8x192xf32> to vector<8x64xf32>
    %29 = arith.addf %27, %28 : vector<8x64xf32>
    %30 = arith.negf %29 : vector<8x64xf32>
    %31 = math.exp %30 : vector<8x64xf32>
    %cst_22 = arith.constant 1.000000e+00 : f32
    %32 = vector.broadcast %cst_22 : f32 to vector<8x64xf32>
    %33 = arith.addf %32, %31 : vector<8x64xf32>
    %34 = arith.divf %32, %33 : vector<8x64xf32>
    %35 = vector.extract_strided_slice %16 {offsets = [0, 128], sizes = [8, 64], strides = [1, 1]} : vector<8x192xf32> to vector<8x64xf32>
    %36 = vector.extract_strided_slice %18 {offsets = [0, 128], sizes = [8, 64], strides = [1, 1]} : vector<8x192xf32> to vector<8x64xf32>
    %c0_23 = arith.constant 0 : index
    %c0_24 = arith.constant 0 : index
    %37 = vector.load %arg5[%c0_23, %c0_24] : memref<1x64xf32, #tpu.memory_space<vmem>>, vector<1x64xf32>
    %38 = vector.broadcast %37 : vector<1x64xf32> to vector<8x64xf32>
    %39 = arith.addf %36, %38 : vector<8x64xf32>
    %40 = arith.mulf %26, %39 : vector<8x64xf32>
    %41 = arith.addf %35, %40 : vector<8x64xf32>
    %42 = math.tanh %41 : vector<8x64xf32>
    %cst_25 = arith.constant 1.000000e+00 : f32
    %43 = vector.broadcast %cst_25 : f32 to vector<8x64xf32>
    %44 = arith.subf %43, %34 : vector<8x64xf32>
    %45 = arith.mulf %44, %42 : vector<8x64xf32>
    %46 = arith.mulf %34, %12 : vector<8x64xf32>
    %47 = arith.addf %45, %46 : vector<8x64xf32>
    %c0_26 = arith.constant 0 : index
    %c0_27 = arith.constant 0 : index
    %48 = vector.load %arg6[%c0_26, %c0_27] : memref<64x192xf32, #tpu.memory_space<vmem>>, vector<64x192xf32>
    %cst_28 = arith.constant dense<0.000000e+00> : vector<8x192xf32>
    %49 = tpu.matmul %47, %48, %cst_28 {dimension_numbers = #tpu.dot_dimension_numbers<[1], [0], [0], [1], [0, 0, 1, 1], [], []>} : vector<8x64xf32>, vector<64x192xf32>, vector<8x192xf32> -> vector<8x192xf32>
    %c0_29 = arith.constant 0 : index
    %c0_30 = arith.constant 0 : index
    %50 = vector.load %arg7[%c0_29, %c0_30] : memref<1x192xf32, #tpu.memory_space<vmem>>, vector<1x192xf32>
    %51 = vector.broadcast %50 : vector<1x192xf32> to vector<8x192xf32>
    %52 = arith.addf %49, %51 : vector<8x192xf32>
    %c0_31 = arith.constant 0 : index
    %c0_32 = arith.constant 0 : index
    %53 = vector.load %arg8[%c0_31, %c0_32] : memref<64x192xf32, #tpu.memory_space<vmem>>, vector<64x192xf32>
    %cst_33 = arith.constant dense<0.000000e+00> : vector<8x192xf32>
    %54 = tpu.matmul %13, %53, %cst_33 {dimension_numbers = #tpu.dot_dimension_numbers<[1], [0], [0], [1], [0, 0, 1, 1], [], []>} : vector<8x64xf32>, vector<64x192xf32>, vector<8x192xf32> -> vector<8x192xf32>
    %55 = vector.extract_strided_slice %52 {offsets = [0, 0], sizes = [8, 64], strides = [1, 1]} : vector<8x192xf32> to vector<8x64xf32>
    %56 = vector.extract_strided_slice %54 {offsets = [0, 0], sizes = [8, 64], strides = [1, 1]} : vector<8x192xf32> to vector<8x64xf32>
    %57 = arith.addf %55, %56 : vector<8x64xf32>
    %58 = arith.negf %57 : vector<8x64xf32>
    %59 = math.exp %58 : vector<8x64xf32>
    %cst_34 = arith.constant 1.000000e+00 : f32
    %60 = vector.broadcast %cst_34 : f32 to vector<8x64xf32>
    %61 = arith.addf %60, %59 : vector<8x64xf32>
    %62 = arith.divf %60, %61 : vector<8x64xf32>
    %63 = vector.extract_strided_slice %52 {offsets = [0, 64], sizes = [8, 64], strides = [1, 1]} : vector<8x192xf32> to vector<8x64xf32>
    %64 = vector.extract_strided_slice %54 {offsets = [0, 64], sizes = [8, 64], strides = [1, 1]} : vector<8x192xf32> to vector<8x64xf32>
    %65 = arith.addf %63, %64 : vector<8x64xf32>
    %66 = arith.negf %65 : vector<8x64xf32>
    %67 = math.exp %66 : vector<8x64xf32>
    %cst_35 = arith.constant 1.000000e+00 : f32
    %68 = vector.broadcast %cst_35 : f32 to vector<8x64xf32>
    %69 = arith.addf %68, %67 : vector<8x64xf32>
    %70 = arith.divf %68, %69 : vector<8x64xf32>
    %71 = vector.extract_strided_slice %52 {offsets = [0, 128], sizes = [8, 64], strides = [1, 1]} : vector<8x192xf32> to vector<8x64xf32>
    %72 = vector.extract_strided_slice %54 {offsets = [0, 128], sizes = [8, 64], strides = [1, 1]} : vector<8x192xf32> to vector<8x64xf32>
    %c0_36 = arith.constant 0 : index
    %c0_37 = arith.constant 0 : index
    %73 = vector.load %arg9[%c0_36, %c0_37] : memref<1x64xf32, #tpu.memory_space<vmem>>, vector<1x64xf32>
    %74 = vector.broadcast %73 : vector<1x64xf32> to vector<8x64xf32>
    %75 = arith.addf %72, %74 : vector<8x64xf32>
    %76 = arith.mulf %62, %75 : vector<8x64xf32>
    %77 = arith.addf %71, %76 : vector<8x64xf32>
    %78 = math.tanh %77 : vector<8x64xf32>
    %cst_38 = arith.constant 1.000000e+00 : f32
    %79 = vector.broadcast %cst_38 : f32 to vector<8x64xf32>
    %80 = arith.subf %79, %70 : vector<8x64xf32>
    %81 = arith.mulf %80, %78 : vector<8x64xf32>
    %82 = arith.mulf %70, %13 : vector<8x64xf32>
    %83 = arith.addf %81, %82 : vector<8x64xf32>
    %84 = arith.index_cast %c0_i32_16 : i32 to index
    %c0_39 = arith.constant 0 : index
    %c0_40 = arith.constant 0 : index
    %85 = vector.load %arg16[%84, %c0_39, %c0_40] : memref<8x8x64xf32, #tpu.memory_space<vmem>>, vector<1x8x64xf32>
    %86 = vector.shape_cast %85 : vector<1x8x64xf32> to vector<8x64xf32>
    %87 = vector.shape_cast %83 : vector<8x64xf32> to vector<1x8x64xf32>
    tpu.vector_store %arg16[%84, %c0_39, %c0_40], %87 {strides = array<i32>} : memref<8x8x64xf32, #tpu.memory_space<vmem>>, vector<1x8x64xf32>,
    %c1_i32 = arith.constant 1 : i32
    %88 = arith.index_cast %c1_i32 : i32 to index
    %c0_41 = arith.constant 0 : index
    %c0_42 = arith.constant 0 : index
    %89 = vector.load %arg15[%88, %c0_41, %c0_42] : memref<8x8x192xf32, #tpu.memory_space<vmem>>, vector<1x8x192xf32>
    %90 = vector.shape_cast %89 : vector<1x8x192xf32> to vector<8x192xf32>
    %c0_43 = arith.constant 0 : index
    %c0_44 = arith.constant 0 : index
    %91 = vector.load %arg4[%c0_43, %c0_44] : memref<64x192xf32, #tpu.memory_space<vmem>>, vector<64x192xf32>
    %cst_45 = arith.constant dense<0.000000e+00> : vector<8x192xf32>
    %92 = tpu.matmul %47, %91, %cst_45 {dimension_numbers = #tpu.dot_dimension_numbers<[1], [0], [0], [1], [0, 0, 1, 1], [], []>} : vector<8x64xf32>, vector<64x192xf32>, vector<8x192xf32> -> vector<8x192xf32>
    %93 = vector.extract_strided_slice %90 {offsets = [0, 0], sizes = [8, 64], strides = [1, 1]} : vector<8x192xf32> to vector<8x64xf32>
    %94 = vector.extract_strided_slice %92 {offsets = [0, 0], sizes = [8, 64], strides = [1, 1]} : vector<8x192xf32> to vector<8x64xf32>
    %95 = arith.addf %93, %94 : vector<8x64xf32>
    %96 = arith.negf %95 : vector<8x64xf32>
    %97 = math.exp %96 : vector<8x64xf32>
    %cst_46 = arith.constant 1.000000e+00 : f32
    %98 = vector.broadcast %cst_46 : f32 to vector<8x64xf32>
    %99 = arith.addf %98, %97 : vector<8x64xf32>
    %100 = arith.divf %98, %99 : vector<8x64xf32>
    %101 = vector.extract_strided_slice %90 {offsets = [0, 64], sizes = [8, 64], strides = [1, 1]} : vector<8x192xf32> to vector<8x64xf32>
    %102 = vector.extract_strided_slice %92 {offsets = [0, 64], sizes = [8, 64], strides = [1, 1]} : vector<8x192xf32> to vector<8x64xf32>
    %103 = arith.addf %101, %102 : vector<8x64xf32>
    %104 = arith.negf %103 : vector<8x64xf32>
    %105 = math.exp %104 : vector<8x64xf32>
    %cst_47 = arith.constant 1.000000e+00 : f32
    %106 = vector.broadcast %cst_47 : f32 to vector<8x64xf32>
    %107 = arith.addf %106, %105 : vector<8x64xf32>
    %108 = arith.divf %106, %107 : vector<8x64xf32>
    %109 = vector.extract_strided_slice %90 {offsets = [0, 128], sizes = [8, 64], strides = [1, 1]} : vector<8x192xf32> to vector<8x64xf32>
    %110 = vector.extract_strided_slice %92 {offsets = [0, 128], sizes = [8, 64], strides = [1, 1]} : vector<8x192xf32> to vector<8x64xf32>
    %c0_48 = arith.constant 0 : index
    %c0_49 = arith.constant 0 : index
    %111 = vector.load %arg5[%c0_48, %c0_49] : memref<1x64xf32, #tpu.memory_space<vmem>>, vector<1x64xf32>
    %112 = vector.broadcast %111 : vector<1x64xf32> to vector<8x64xf32>
    %113 = arith.addf %110, %112 : vector<8x64xf32>
    %114 = arith.mulf %100, %113 : vector<8x64xf32>
    %115 = arith.addf %109, %114 : vector<8x64xf32>
    %116 = math.tanh %115 : vector<8x64xf32>
    %cst_50 = arith.constant 1.000000e+00 : f32
    %117 = vector.broadcast %cst_50 : f32 to vector<8x64xf32>
    %118 = arith.subf %117, %108 : vector<8x64xf32>
    %119 = arith.mulf %118, %116 : vector<8x64xf32>
    %120 = arith.mulf %108, %47 : vector<8x64xf32>
    %121 = arith.addf %119, %120 : vector<8x64xf32>
    %c0_51 = arith.constant 0 : index
    %c0_52 = arith.constant 0 : index
    %122 = vector.load %arg6[%c0_51, %c0_52] : memref<64x192xf32, #tpu.memory_space<vmem>>, vector<64x192xf32>
    %cst_53 = arith.constant dense<0.000000e+00> : vector<8x192xf32>
    %123 = tpu.matmul %121, %122, %cst_53 {dimension_numbers = #tpu.dot_dimension_numbers<[1], [0], [0], [1], [0, 0, 1, 1], [], []>} : vector<8x64xf32>, vector<64x192xf32>, vector<8x192xf32> -> vector<8x192xf32>
    %c0_54 = arith.constant 0 : index
    %c0_55 = arith.constant 0 : index
    %124 = vector.load %arg7[%c0_54, %c0_55] : memref<1x192xf32, #tpu.memory_space<vmem>>, vector<1x192xf32>
    %125 = vector.broadcast %124 : vector<1x192xf32> to vector<8x192xf32>
    %126 = arith.addf %123, %125 : vector<8x192xf32>
    %c0_56 = arith.constant 0 : index
    %c0_57 = arith.constant 0 : index
    %127 = vector.load %arg8[%c0_56, %c0_57] : memref<64x192xf32, #tpu.memory_space<vmem>>, vector<64x192xf32>
    %cst_58 = arith.constant dense<0.000000e+00> : vector<8x192xf32>
    %128 = tpu.matmul %83, %127, %cst_58 {dimension_numbers = #tpu.dot_dimension_numbers<[1], [0], [0], [1], [0, 0, 1, 1], [], []>} : vector<8x64xf32>, vector<64x192xf32>, vector<8x192xf32> -> vector<8x192xf32>
    %129 = vector.extract_strided_slice %126 {offsets = [0, 0], sizes = [8, 64], strides = [1, 1]} : vector<8x192xf32> to vector<8x64xf32>
    %130 = vector.extract_strided_slice %128 {offsets = [0, 0], sizes = [8, 64], strides = [1, 1]} : vector<8x192xf32> to vector<8x64xf32>
    %131 = arith.addf %129, %130 : vector<8x64xf32>
    %132 = arith.negf %131 : vector<8x64xf32>
    %133 = math.exp %132 : vector<8x64xf32>
    %cst_59 = arith.constant 1.000000e+00 : f32
    %134 = vector.broadcast %cst_59 : f32 to vector<8x64xf32>
    %135 = arith.addf %134, %133 : vector<8x64xf32>
    %136 = arith.divf %134, %135 : vector<8x64xf32>
    %137 = vector.extract_strided_slice %126 {offsets = [0, 64], sizes = [8, 64], strides = [1, 1]} : vector<8x192xf32> to vector<8x64xf32>
    %138 = vector.extract_strided_slice %128 {offsets = [0, 64], sizes = [8, 64], strides = [1, 1]} : vector<8x192xf32> to vector<8x64xf32>
    %139 = arith.addf %137, %138 : vector<8x64xf32>
    %140 = arith.negf %139 : vector<8x64xf32>
    %141 = math.exp %140 : vector<8x64xf32>
    %cst_60 = arith.constant 1.000000e+00 : f32
    %142 = vector.broadcast %cst_60 : f32 to vector<8x64xf32>
    %143 = arith.addf %142, %141 : vector<8x64xf32>
    %144 = arith.divf %142, %143 : vector<8x64xf32>
    %145 = vector.extract_strided_slice %126 {offsets = [0, 128], sizes = [8, 64], strides = [1, 1]} : vector<8x192xf32> to vector<8x64xf32>
    %146 = vector.extract_strided_slice %128 {offsets = [0, 128], sizes = [8, 64], strides = [1, 1]} : vector<8x192xf32> to vector<8x64xf32>
    %c0_61 = arith.constant 0 : index
    %c0_62 = arith.constant 0 : index
    %147 = vector.load %arg9[%c0_61, %c0_62] : memref<1x64xf32, #tpu.memory_space<vmem>>, vector<1x64xf32>
    %148 = vector.broadcast %147 : vector<1x64xf32> to vector<8x64xf32>
    %149 = arith.addf %146, %148 : vector<8x64xf32>
    %150 = arith.mulf %136, %149 : vector<8x64xf32>
    %151 = arith.addf %145, %150 : vector<8x64xf32>
    %152 = math.tanh %151 : vector<8x64xf32>
    %cst_63 = arith.constant 1.000000e+00 : f32
    %153 = vector.broadcast %cst_63 : f32 to vector<8x64xf32>
    %154 = arith.subf %153, %144 : vector<8x64xf32>
    %155 = arith.mulf %154, %152 : vector<8x64xf32>
    %156 = arith.mulf %144, %83 : vector<8x64xf32>
    %157 = arith.addf %155, %156 : vector<8x64xf32>
    %158 = arith.index_cast %c1_i32 : i32 to index
    %c0_64 = arith.constant 0 : index
    %c0_65 = arith.constant 0 : index
    %159 = vector.load %arg16[%158, %c0_64, %c0_65] : memref<8x8x64xf32, #tpu.memory_space<vmem>>, vector<1x8x64xf32>
    %160 = vector.shape_cast %159 : vector<1x8x64xf32> to vector<8x64xf32>
    %161 = vector.shape_cast %157 : vector<8x64xf32> to vector<1x8x64xf32>
    tpu.vector_store %arg16[%158, %c0_64, %c0_65], %161 {strides = array<i32>} : memref<8x8x64xf32, #tpu.memory_space<vmem>>, vector<1x8x64xf32>,
    %c2_i32 = arith.constant 2 : i32
    %162 = arith.index_cast %c2_i32 : i32 to index
    %c0_66 = arith.constant 0 : index
    %c0_67 = arith.constant 0 : index
    %163 = vector.load %arg15[%162, %c0_66, %c0_67] : memref<8x8x192xf32, #tpu.memory_space<vmem>>, vector<1x8x192xf32>
    %164 = vector.shape_cast %163 : vector<1x8x192xf32> to vector<8x192xf32>
    %c0_68 = arith.constant 0 : index
    %c0_69 = arith.constant 0 : index
    %165 = vector.load %arg4[%c0_68, %c0_69] : memref<64x192xf32, #tpu.memory_space<vmem>>, vector<64x192xf32>
    %cst_70 = arith.constant dense<0.000000e+00> : vector<8x192xf32>
    %166 = tpu.matmul %121, %165, %cst_70 {dimension_numbers = #tpu.dot_dimension_numbers<[1], [0], [0], [1], [0, 0, 1, 1], [], []>} : vector<8x64xf32>, vector<64x192xf32>, vector<8x192xf32> -> vector<8x192xf32>
    %167 = vector.extract_strided_slice %164 {offsets = [0, 0], sizes = [8, 64], strides = [1, 1]} : vector<8x192xf32> to vector<8x64xf32>
    %168 = vector.extract_strided_slice %166 {offsets = [0, 0], sizes = [8, 64], strides = [1, 1]} : vector<8x192xf32> to vector<8x64xf32>
    %169 = arith.addf %167, %168 : vector<8x64xf32>
    %170 = arith.negf %169 : vector<8x64xf32>
    %171 = math.exp %170 : vector<8x64xf32>
    %cst_71 = arith.constant 1.000000e+00 : f32
    %172 = vector.broadcast %cst_71 : f32 to vector<8x64xf32>
    %173 = arith.addf %172, %171 : vector<8x64xf32>
    %174 = arith.divf %172, %173 : vector<8x64xf32>
    %175 = vector.extract_strided_slice %164 {offsets = [0, 64], sizes = [8, 64], strides = [1, 1]} : vector<8x192xf32> to vector<8x64xf32>
    %176 = vector.extract_strided_slice %166 {offsets = [0, 64], sizes = [8, 64], strides = [1, 1]} : vector<8x192xf32> to vector<8x64xf32>
    %177 = arith.addf %175, %176 : vector<8x64xf32>
    %178 = arith.negf %177 : vector<8x64xf32>
    %179 = math.exp %178 : vector<8x64xf32>
    %cst_72 = arith.constant 1.000000e+00 : f32
    %180 = vector.broadcast %cst_72 : f32 to vector<8x64xf32>
    %181 = arith.addf %180, %179 : vector<8x64xf32>
    %182 = arith.divf %180, %181 : vector<8x64xf32>
    %183 = vector.extract_strided_slice %164 {offsets = [0, 128], sizes = [8, 64], strides = [1, 1]} : vector<8x192xf32> to vector<8x64xf32>
    %184 = vector.extract_strided_slice %166 {offsets = [0, 128], sizes = [8, 64], strides = [1, 1]} : vector<8x192xf32> to vector<8x64xf32>
    %c0_73 = arith.constant 0 : index
    %c0_74 = arith.constant 0 : index
    %185 = vector.load %arg5[%c0_73, %c0_74] : memref<1x64xf32, #tpu.memory_space<vmem>>, vector<1x64xf32>
    %186 = vector.broadcast %185 : vector<1x64xf32> to vector<8x64xf32>
    %187 = arith.addf %184, %186 : vector<8x64xf32>
    %188 = arith.mulf %174, %187 : vector<8x64xf32>
    %189 = arith.addf %183, %188 : vector<8x64xf32>
    %190 = math.tanh %189 : vector<8x64xf32>
    %cst_75 = arith.constant 1.000000e+00 : f32
    %191 = vector.broadcast %cst_75 : f32 to vector<8x64xf32>
    %192 = arith.subf %191, %182 : vector<8x64xf32>
    %193 = arith.mulf %192, %190 : vector<8x64xf32>
    %194 = arith.mulf %182, %121 : vector<8x64xf32>
    %195 = arith.addf %193, %194 : vector<8x64xf32>
    %c0_76 = arith.constant 0 : index
    %c0_77 = arith.constant 0 : index
    %196 = vector.load %arg6[%c0_76, %c0_77] : memref<64x192xf32, #tpu.memory_space<vmem>>, vector<64x192xf32>
    %cst_78 = arith.constant dense<0.000000e+00> : vector<8x192xf32>
    %197 = tpu.matmul %195, %196, %cst_78 {dimension_numbers = #tpu.dot_dimension_numbers<[1], [0], [0], [1], [0, 0, 1, 1], [], []>} : vector<8x64xf32>, vector<64x192xf32>, vector<8x192xf32> -> vector<8x192xf32>
    %c0_79 = arith.constant 0 : index
    %c0_80 = arith.constant 0 : index
    %198 = vector.load %arg7[%c0_79, %c0_80] : memref<1x192xf32, #tpu.memory_space<vmem>>, vector<1x192xf32>
    %199 = vector.broadcast %198 : vector<1x192xf32> to vector<8x192xf32>
    %200 = arith.addf %197, %199 : vector<8x192xf32>
    %c0_81 = arith.constant 0 : index
    %c0_82 = arith.constant 0 : index
    %201 = vector.load %arg8[%c0_81, %c0_82] : memref<64x192xf32, #tpu.memory_space<vmem>>, vector<64x192xf32>
    %cst_83 = arith.constant dense<0.000000e+00> : vector<8x192xf32>
    %202 = tpu.matmul %157, %201, %cst_83 {dimension_numbers = #tpu.dot_dimension_numbers<[1], [0], [0], [1], [0, 0, 1, 1], [], []>} : vector<8x64xf32>, vector<64x192xf32>, vector<8x192xf32> -> vector<8x192xf32>
    %203 = vector.extract_strided_slice %200 {offsets = [0, 0], sizes = [8, 64], strides = [1, 1]} : vector<8x192xf32> to vector<8x64xf32>
    %204 = vector.extract_strided_slice %202 {offsets = [0, 0], sizes = [8, 64], strides = [1, 1]} : vector<8x192xf32> to vector<8x64xf32>
    %205 = arith.addf %203, %204 : vector<8x64xf32>
    %206 = arith.negf %205 : vector<8x64xf32>
    %207 = math.exp %206 : vector<8x64xf32>
    %cst_84 = arith.constant 1.000000e+00 : f32
    %208 = vector.broadcast %cst_84 : f32 to vector<8x64xf32>
    %209 = arith.addf %208, %207 : vector<8x64xf32>
    %210 = arith.divf %208, %209 : vector<8x64xf32>
    %211 = vector.extract_strided_slice %200 {offsets = [0, 64], sizes = [8, 64], strides = [1, 1]} : vector<8x192xf32> to vector<8x64xf32>
    %212 = vector.extract_strided_slice %202 {offsets = [0, 64], sizes = [8, 64], strides = [1, 1]} : vector<8x192xf32> to vector<8x64xf32>
    %213 = arith.addf %211, %212 : vector<8x64xf32>
    %214 = arith.negf %213 : vector<8x64xf32>
    %215 = math.exp %214 : vector<8x64xf32>
    %cst_85 = arith.constant 1.000000e+00 : f32
    %216 = vector.broadcast %cst_85 : f32 to vector<8x64xf32>
    %217 = arith.addf %216, %215 : vector<8x64xf32>
    %218 = arith.divf %216, %217 : vector<8x64xf32>
    %219 = vector.extract_strided_slice %200 {offsets = [0, 128], sizes = [8, 64], strides = [1, 1]} : vector<8x192xf32> to vector<8x64xf32>
    %220 = vector.extract_strided_slice %202 {offsets = [0, 128], sizes = [8, 64], strides = [1, 1]} : vector<8x192xf32> to vector<8x64xf32>
    %c0_86 = arith.constant 0 : index
    %c0_87 = arith.constant 0 : index
    %221 = vector.load %arg9[%c0_86, %c0_87] : memref<1x64xf32, #tpu.memory_space<vmem>>, vector<1x64xf32>
    %222 = vector.broadcast %221 : vector<1x64xf32> to vector<8x64xf32>
    %223 = arith.addf %220, %222 : vector<8x64xf32>
    %224 = arith.mulf %210, %223 : vector<8x64xf32>
    %225 = arith.addf %219, %224 : vector<8x64xf32>
    %226 = math.tanh %225 : vector<8x64xf32>
    %cst_88 = arith.constant 1.000000e+00 : f32
    %227 = vector.broadcast %cst_88 : f32 to vector<8x64xf32>
    %228 = arith.subf %227, %218 : vector<8x64xf32>
    %229 = arith.mulf %228, %226 : vector<8x64xf32>
    %230 = arith.mulf %218, %157 : vector<8x64xf32>
    %231 = arith.addf %229, %230 : vector<8x64xf32>
    %232 = arith.index_cast %c2_i32 : i32 to index
    %c0_89 = arith.constant 0 : index
    %c0_90 = arith.constant 0 : index
    %233 = vector.load %arg16[%232, %c0_89, %c0_90] : memref<8x8x64xf32, #tpu.memory_space<vmem>>, vector<1x8x64xf32>
    %234 = vector.shape_cast %233 : vector<1x8x64xf32> to vector<8x64xf32>
    %235 = vector.shape_cast %231 : vector<8x64xf32> to vector<1x8x64xf32>
    tpu.vector_store %arg16[%232, %c0_89, %c0_90], %235 {strides = array<i32>} : memref<8x8x64xf32, #tpu.memory_space<vmem>>, vector<1x8x64xf32>,
    %c3_i32 = arith.constant 3 : i32
    %236 = arith.index_cast %c3_i32 : i32 to index
    %c0_91 = arith.constant 0 : index
    %c0_92 = arith.constant 0 : index
    %237 = vector.load %arg15[%236, %c0_91, %c0_92] : memref<8x8x192xf32, #tpu.memory_space<vmem>>, vector<1x8x192xf32>
    %238 = vector.shape_cast %237 : vector<1x8x192xf32> to vector<8x192xf32>
    %c0_93 = arith.constant 0 : index
    %c0_94 = arith.constant 0 : index
    %239 = vector.load %arg4[%c0_93, %c0_94] : memref<64x192xf32, #tpu.memory_space<vmem>>, vector<64x192xf32>
    %cst_95 = arith.constant dense<0.000000e+00> : vector<8x192xf32>
    %240 = tpu.matmul %195, %239, %cst_95 {dimension_numbers = #tpu.dot_dimension_numbers<[1], [0], [0], [1], [0, 0, 1, 1], [], []>} : vector<8x64xf32>, vector<64x192xf32>, vector<8x192xf32> -> vector<8x192xf32>
    %241 = vector.extract_strided_slice %238 {offsets = [0, 0], sizes = [8, 64], strides = [1, 1]} : vector<8x192xf32> to vector<8x64xf32>
    %242 = vector.extract_strided_slice %240 {offsets = [0, 0], sizes = [8, 64], strides = [1, 1]} : vector<8x192xf32> to vector<8x64xf32>
    %243 = arith.addf %241, %242 : vector<8x64xf32>
    %244 = arith.negf %243 : vector<8x64xf32>
    %245 = math.exp %244 : vector<8x64xf32>
    %cst_96 = arith.constant 1.000000e+00 : f32
    %246 = vector.broadcast %cst_96 : f32 to vector<8x64xf32>
    %247 = arith.addf %246, %245 : vector<8x64xf32>
    %248 = arith.divf %246, %247 : vector<8x64xf32>
    %249 = vector.extract_strided_slice %238 {offsets = [0, 64], sizes = [8, 64], strides = [1, 1]} : vector<8x192xf32> to vector<8x64xf32>
    %250 = vector.extract_strided_slice %240 {offsets = [0, 64], sizes = [8, 64], strides = [1, 1]} : vector<8x192xf32> to vector<8x64xf32>
    %251 = arith.addf %249, %250 : vector<8x64xf32>
    %252 = arith.negf %251 : vector<8x64xf32>
    %253 = math.exp %252 : vector<8x64xf32>
    %cst_97 = arith.constant 1.000000e+00 : f32
    %254 = vector.broadcast %cst_97 : f32 to vector<8x64xf32>
    %255 = arith.addf %254, %253 : vector<8x64xf32>
    %256 = arith.divf %254, %255 : vector<8x64xf32>
    %257 = vector.extract_strided_slice %238 {offsets = [0, 128], sizes = [8, 64], strides = [1, 1]} : vector<8x192xf32> to vector<8x64xf32>
    %258 = vector.extract_strided_slice %240 {offsets = [0, 128], sizes = [8, 64], strides = [1, 1]} : vector<8x192xf32> to vector<8x64xf32>
    %c0_98 = arith.constant 0 : index
    %c0_99 = arith.constant 0 : index
    %259 = vector.load %arg5[%c0_98, %c0_99] : memref<1x64xf32, #tpu.memory_space<vmem>>, vector<1x64xf32>
    %260 = vector.broadcast %259 : vector<1x64xf32> to vector<8x64xf32>
    %261 = arith.addf %258, %260 : vector<8x64xf32>
    %262 = arith.mulf %248, %261 : vector<8x64xf32>
    %263 = arith.addf %257, %262 : vector<8x64xf32>
    %264 = math.tanh %263 : vector<8x64xf32>
    %cst_100 = arith.constant 1.000000e+00 : f32
    %265 = vector.broadcast %cst_100 : f32 to vector<8x64xf32>
    %266 = arith.subf %265, %256 : vector<8x64xf32>
    %267 = arith.mulf %266, %264 : vector<8x64xf32>
    %268 = arith.mulf %256, %195 : vector<8x64xf32>
    %269 = arith.addf %267, %268 : vector<8x64xf32>
    %c0_101 = arith.constant 0 : index
    %c0_102 = arith.constant 0 : index
    %270 = vector.load %arg6[%c0_101, %c0_102] : memref<64x192xf32, #tpu.memory_space<vmem>>, vector<64x192xf32>
    %cst_103 = arith.constant dense<0.000000e+00> : vector<8x192xf32>
    %271 = tpu.matmul %269, %270, %cst_103 {dimension_numbers = #tpu.dot_dimension_numbers<[1], [0], [0], [1], [0, 0, 1, 1], [], []>} : vector<8x64xf32>, vector<64x192xf32>, vector<8x192xf32> -> vector<8x192xf32>
    %c0_104 = arith.constant 0 : index
    %c0_105 = arith.constant 0 : index
    %272 = vector.load %arg7[%c0_104, %c0_105] : memref<1x192xf32, #tpu.memory_space<vmem>>, vector<1x192xf32>
    %273 = vector.broadcast %272 : vector<1x192xf32> to vector<8x192xf32>
    %274 = arith.addf %271, %273 : vector<8x192xf32>
    %c0_106 = arith.constant 0 : index
    %c0_107 = arith.constant 0 : index
    %275 = vector.load %arg8[%c0_106, %c0_107] : memref<64x192xf32, #tpu.memory_space<vmem>>, vector<64x192xf32>
    %cst_108 = arith.constant dense<0.000000e+00> : vector<8x192xf32>
    %276 = tpu.matmul %231, %275, %cst_108 {dimension_numbers = #tpu.dot_dimension_numbers<[1], [0], [0], [1], [0, 0, 1, 1], [], []>} : vector<8x64xf32>, vector<64x192xf32>, vector<8x192xf32> -> vector<8x192xf32>
    %277 = vector.extract_strided_slice %274 {offsets = [0, 0], sizes = [8, 64], strides = [1, 1]} : vector<8x192xf32> to vector<8x64xf32>
    %278 = vector.extract_strided_slice %276 {offsets = [0, 0], sizes = [8, 64], strides = [1, 1]} : vector<8x192xf32> to vector<8x64xf32>
    %279 = arith.addf %277, %278 : vector<8x64xf32>
    %280 = arith.negf %279 : vector<8x64xf32>
    %281 = math.exp %280 : vector<8x64xf32>
    %cst_109 = arith.constant 1.000000e+00 : f32
    %282 = vector.broadcast %cst_109 : f32 to vector<8x64xf32>
    %283 = arith.addf %282, %281 : vector<8x64xf32>
    %284 = arith.divf %282, %283 : vector<8x64xf32>
    %285 = vector.extract_strided_slice %274 {offsets = [0, 64], sizes = [8, 64], strides = [1, 1]} : vector<8x192xf32> to vector<8x64xf32>
    %286 = vector.extract_strided_slice %276 {offsets = [0, 64], sizes = [8, 64], strides = [1, 1]} : vector<8x192xf32> to vector<8x64xf32>
    %287 = arith.addf %285, %286 : vector<8x64xf32>
    %288 = arith.negf %287 : vector<8x64xf32>
    %289 = math.exp %288 : vector<8x64xf32>
    %cst_110 = arith.constant 1.000000e+00 : f32
    %290 = vector.broadcast %cst_110 : f32 to vector<8x64xf32>
    %291 = arith.addf %290, %289 : vector<8x64xf32>
    %292 = arith.divf %290, %291 : vector<8x64xf32>
    %293 = vector.extract_strided_slice %274 {offsets = [0, 128], sizes = [8, 64], strides = [1, 1]} : vector<8x192xf32> to vector<8x64xf32>
    %294 = vector.extract_strided_slice %276 {offsets = [0, 128], sizes = [8, 64], strides = [1, 1]} : vector<8x192xf32> to vector<8x64xf32>
    %c0_111 = arith.constant 0 : index
    %c0_112 = arith.constant 0 : index
    %295 = vector.load %arg9[%c0_111, %c0_112] : memref<1x64xf32, #tpu.memory_space<vmem>>, vector<1x64xf32>
    %296 = vector.broadcast %295 : vector<1x64xf32> to vector<8x64xf32>
    %297 = arith.addf %294, %296 : vector<8x64xf32>
    %298 = arith.mulf %284, %297 : vector<8x64xf32>
    %299 = arith.addf %293, %298 : vector<8x64xf32>
    %300 = math.tanh %299 : vector<8x64xf32>
    %cst_113 = arith.constant 1.000000e+00 : f32
    %301 = vector.broadcast %cst_113 : f32 to vector<8x64xf32>
    %302 = arith.subf %301, %292 : vector<8x64xf32>
    %303 = arith.mulf %302, %300 : vector<8x64xf32>
    %304 = arith.mulf %292, %231 : vector<8x64xf32>
    %305 = arith.addf %303, %304 : vector<8x64xf32>
    %306 = arith.index_cast %c3_i32 : i32 to index
    %c0_114 = arith.constant 0 : index
    %c0_115 = arith.constant 0 : index
    %307 = vector.load %arg16[%306, %c0_114, %c0_115] : memref<8x8x64xf32, #tpu.memory_space<vmem>>, vector<1x8x64xf32>
    %308 = vector.shape_cast %307 : vector<1x8x64xf32> to vector<8x64xf32>
    %309 = vector.shape_cast %305 : vector<8x64xf32> to vector<1x8x64xf32>
    tpu.vector_store %arg16[%306, %c0_114, %c0_115], %309 {strides = array<i32>} : memref<8x8x64xf32, #tpu.memory_space<vmem>>, vector<1x8x64xf32>,
    %c4_i32 = arith.constant 4 : i32
    %310 = arith.index_cast %c4_i32 : i32 to index
    %c0_116 = arith.constant 0 : index
    %c0_117 = arith.constant 0 : index
    %311 = vector.load %arg15[%310, %c0_116, %c0_117] : memref<8x8x192xf32, #tpu.memory_space<vmem>>, vector<1x8x192xf32>
    %312 = vector.shape_cast %311 : vector<1x8x192xf32> to vector<8x192xf32>
    %c0_118 = arith.constant 0 : index
    %c0_119 = arith.constant 0 : index
    %313 = vector.load %arg4[%c0_118, %c0_119] : memref<64x192xf32, #tpu.memory_space<vmem>>, vector<64x192xf32>
    %cst_120 = arith.constant dense<0.000000e+00> : vector<8x192xf32>
    %314 = tpu.matmul %269, %313, %cst_120 {dimension_numbers = #tpu.dot_dimension_numbers<[1], [0], [0], [1], [0, 0, 1, 1], [], []>} : vector<8x64xf32>, vector<64x192xf32>, vector<8x192xf32> -> vector<8x192xf32>
    %315 = vector.extract_strided_slice %312 {offsets = [0, 0], sizes = [8, 64], strides = [1, 1]} : vector<8x192xf32> to vector<8x64xf32>
    %316 = vector.extract_strided_slice %314 {offsets = [0, 0], sizes = [8, 64], strides = [1, 1]} : vector<8x192xf32> to vector<8x64xf32>
    %317 = arith.addf %315, %316 : vector<8x64xf32>
    %318 = arith.negf %317 : vector<8x64xf32>
    %319 = math.exp %318 : vector<8x64xf32>
    %cst_121 = arith.constant 1.000000e+00 : f32
    %320 = vector.broadcast %cst_121 : f32 to vector<8x64xf32>
    %321 = arith.addf %320, %319 : vector<8x64xf32>
    %322 = arith.divf %320, %321 : vector<8x64xf32>
    %323 = vector.extract_strided_slice %312 {offsets = [0, 64], sizes = [8, 64], strides = [1, 1]} : vector<8x192xf32> to vector<8x64xf32>
    %324 = vector.extract_strided_slice %314 {offsets = [0, 64], sizes = [8, 64], strides = [1, 1]} : vector<8x192xf32> to vector<8x64xf32>
    %325 = arith.addf %323, %324 : vector<8x64xf32>
    %326 = arith.negf %325 : vector<8x64xf32>
    %327 = math.exp %326 : vector<8x64xf32>
    %cst_122 = arith.constant 1.000000e+00 : f32
    %328 = vector.broadcast %cst_122 : f32 to vector<8x64xf32>
    %329 = arith.addf %328, %327 : vector<8x64xf32>
    %330 = arith.divf %328, %329 : vector<8x64xf32>
    %331 = vector.extract_strided_slice %312 {offsets = [0, 128], sizes = [8, 64], strides = [1, 1]} : vector<8x192xf32> to vector<8x64xf32>
    %332 = vector.extract_strided_slice %314 {offsets = [0, 128], sizes = [8, 64], strides = [1, 1]} : vector<8x192xf32> to vector<8x64xf32>
    %c0_123 = arith.constant 0 : index
    %c0_124 = arith.constant 0 : index
    %333 = vector.load %arg5[%c0_123, %c0_124] : memref<1x64xf32, #tpu.memory_space<vmem>>, vector<1x64xf32>
    %334 = vector.broadcast %333 : vector<1x64xf32> to vector<8x64xf32>
    %335 = arith.addf %332, %334 : vector<8x64xf32>
    %336 = arith.mulf %322, %335 : vector<8x64xf32>
    %337 = arith.addf %331, %336 : vector<8x64xf32>
    %338 = math.tanh %337 : vector<8x64xf32>
    %cst_125 = arith.constant 1.000000e+00 : f32
    %339 = vector.broadcast %cst_125 : f32 to vector<8x64xf32>
    %340 = arith.subf %339, %330 : vector<8x64xf32>
    %341 = arith.mulf %340, %338 : vector<8x64xf32>
    %342 = arith.mulf %330, %269 : vector<8x64xf32>
    %343 = arith.addf %341, %342 : vector<8x64xf32>
    %c0_126 = arith.constant 0 : index
    %c0_127 = arith.constant 0 : index
    %344 = vector.load %arg6[%c0_126, %c0_127] : memref<64x192xf32, #tpu.memory_space<vmem>>, vector<64x192xf32>
    %cst_128 = arith.constant dense<0.000000e+00> : vector<8x192xf32>
    %345 = tpu.matmul %343, %344, %cst_128 {dimension_numbers = #tpu.dot_dimension_numbers<[1], [0], [0], [1], [0, 0, 1, 1], [], []>} : vector<8x64xf32>, vector<64x192xf32>, vector<8x192xf32> -> vector<8x192xf32>
    %c0_129 = arith.constant 0 : index
    %c0_130 = arith.constant 0 : index
    %346 = vector.load %arg7[%c0_129, %c0_130] : memref<1x192xf32, #tpu.memory_space<vmem>>, vector<1x192xf32>
    %347 = vector.broadcast %346 : vector<1x192xf32> to vector<8x192xf32>
    %348 = arith.addf %345, %347 : vector<8x192xf32>
    %c0_131 = arith.constant 0 : index
    %c0_132 = arith.constant 0 : index
    %349 = vector.load %arg8[%c0_131, %c0_132] : memref<64x192xf32, #tpu.memory_space<vmem>>, vector<64x192xf32>
    %cst_133 = arith.constant dense<0.000000e+00> : vector<8x192xf32>
    %350 = tpu.matmul %305, %349, %cst_133 {dimension_numbers = #tpu.dot_dimension_numbers<[1], [0], [0], [1], [0, 0, 1, 1], [], []>} : vector<8x64xf32>, vector<64x192xf32>, vector<8x192xf32> -> vector<8x192xf32>
    %351 = vector.extract_strided_slice %348 {offsets = [0, 0], sizes = [8, 64], strides = [1, 1]} : vector<8x192xf32> to vector<8x64xf32>
    %352 = vector.extract_strided_slice %350 {offsets = [0, 0], sizes = [8, 64], strides = [1, 1]} : vector<8x192xf32> to vector<8x64xf32>
    %353 = arith.addf %351, %352 : vector<8x64xf32>
    %354 = arith.negf %353 : vector<8x64xf32>
    %355 = math.exp %354 : vector<8x64xf32>
    %cst_134 = arith.constant 1.000000e+00 : f32
    %356 = vector.broadcast %cst_134 : f32 to vector<8x64xf32>
    %357 = arith.addf %356, %355 : vector<8x64xf32>
    %358 = arith.divf %356, %357 : vector<8x64xf32>
    %359 = vector.extract_strided_slice %348 {offsets = [0, 64], sizes = [8, 64], strides = [1, 1]} : vector<8x192xf32> to vector<8x64xf32>
    %360 = vector.extract_strided_slice %350 {offsets = [0, 64], sizes = [8, 64], strides = [1, 1]} : vector<8x192xf32> to vector<8x64xf32>
    %361 = arith.addf %359, %360 : vector<8x64xf32>
    %362 = arith.negf %361 : vector<8x64xf32>
    %363 = math.exp %362 : vector<8x64xf32>
    %cst_135 = arith.constant 1.000000e+00 : f32
    %364 = vector.broadcast %cst_135 : f32 to vector<8x64xf32>
    %365 = arith.addf %364, %363 : vector<8x64xf32>
    %366 = arith.divf %364, %365 : vector<8x64xf32>
    %367 = vector.extract_strided_slice %348 {offsets = [0, 128], sizes = [8, 64], strides = [1, 1]} : vector<8x192xf32> to vector<8x64xf32>
    %368 = vector.extract_strided_slice %350 {offsets = [0, 128], sizes = [8, 64], strides = [1, 1]} : vector<8x192xf32> to vector<8x64xf32>
    %c0_136 = arith.constant 0 : index
    %c0_137 = arith.constant 0 : index
    %369 = vector.load %arg9[%c0_136, %c0_137] : memref<1x64xf32, #tpu.memory_space<vmem>>, vector<1x64xf32>
    %370 = vector.broadcast %369 : vector<1x64xf32> to vector<8x64xf32>
    %371 = arith.addf %368, %370 : vector<8x64xf32>
    %372 = arith.mulf %358, %371 : vector<8x64xf32>
    %373 = arith.addf %367, %372 : vector<8x64xf32>
    %374 = math.tanh %373 : vector<8x64xf32>
    %cst_138 = arith.constant 1.000000e+00 : f32
    %375 = vector.broadcast %cst_138 : f32 to vector<8x64xf32>
    %376 = arith.subf %375, %366 : vector<8x64xf32>
    %377 = arith.mulf %376, %374 : vector<8x64xf32>
    %378 = arith.mulf %366, %305 : vector<8x64xf32>
    %379 = arith.addf %377, %378 : vector<8x64xf32>
    %380 = arith.index_cast %c4_i32 : i32 to index
    %c0_139 = arith.constant 0 : index
    %c0_140 = arith.constant 0 : index
    %381 = vector.load %arg16[%380, %c0_139, %c0_140] : memref<8x8x64xf32, #tpu.memory_space<vmem>>, vector<1x8x64xf32>
    %382 = vector.shape_cast %381 : vector<1x8x64xf32> to vector<8x64xf32>
    %383 = vector.shape_cast %379 : vector<8x64xf32> to vector<1x8x64xf32>
    tpu.vector_store %arg16[%380, %c0_139, %c0_140], %383 {strides = array<i32>} : memref<8x8x64xf32, #tpu.memory_space<vmem>>, vector<1x8x64xf32>,
    %c5_i32 = arith.constant 5 : i32
    %384 = arith.index_cast %c5_i32 : i32 to index
    %c0_141 = arith.constant 0 : index
    %c0_142 = arith.constant 0 : index
    %385 = vector.load %arg15[%384, %c0_141, %c0_142] : memref<8x8x192xf32, #tpu.memory_space<vmem>>, vector<1x8x192xf32>
    %386 = vector.shape_cast %385 : vector<1x8x192xf32> to vector<8x192xf32>
    %c0_143 = arith.constant 0 : index
    %c0_144 = arith.constant 0 : index
    %387 = vector.load %arg4[%c0_143, %c0_144] : memref<64x192xf32, #tpu.memory_space<vmem>>, vector<64x192xf32>
    %cst_145 = arith.constant dense<0.000000e+00> : vector<8x192xf32>
    %388 = tpu.matmul %343, %387, %cst_145 {dimension_numbers = #tpu.dot_dimension_numbers<[1], [0], [0], [1], [0, 0, 1, 1], [], []>} : vector<8x64xf32>, vector<64x192xf32>, vector<8x192xf32> -> vector<8x192xf32>
    %389 = vector.extract_strided_slice %386 {offsets = [0, 0], sizes = [8, 64], strides = [1, 1]} : vector<8x192xf32> to vector<8x64xf32>
    %390 = vector.extract_strided_slice %388 {offsets = [0, 0], sizes = [8, 64], strides = [1, 1]} : vector<8x192xf32> to vector<8x64xf32>
    %391 = arith.addf %389, %390 : vector<8x64xf32>
    %392 = arith.negf %391 : vector<8x64xf32>
    %393 = math.exp %392 : vector<8x64xf32>
    %cst_146 = arith.constant 1.000000e+00 : f32
    %394 = vector.broadcast %cst_146 : f32 to vector<8x64xf32>
    %395 = arith.addf %394, %393 : vector<8x64xf32>
    %396 = arith.divf %394, %395 : vector<8x64xf32>
    %397 = vector.extract_strided_slice %386 {offsets = [0, 64], sizes = [8, 64], strides = [1, 1]} : vector<8x192xf32> to vector<8x64xf32>
    %398 = vector.extract_strided_slice %388 {offsets = [0, 64], sizes = [8, 64], strides = [1, 1]} : vector<8x192xf32> to vector<8x64xf32>
    %399 = arith.addf %397, %398 : vector<8x64xf32>
    %400 = arith.negf %399 : vector<8x64xf32>
    %401 = math.exp %400 : vector<8x64xf32>
    %cst_147 = arith.constant 1.000000e+00 : f32
    %402 = vector.broadcast %cst_147 : f32 to vector<8x64xf32>
    %403 = arith.addf %402, %401 : vector<8x64xf32>
    %404 = arith.divf %402, %403 : vector<8x64xf32>
    %405 = vector.extract_strided_slice %386 {offsets = [0, 128], sizes = [8, 64], strides = [1, 1]} : vector<8x192xf32> to vector<8x64xf32>
    %406 = vector.extract_strided_slice %388 {offsets = [0, 128], sizes = [8, 64], strides = [1, 1]} : vector<8x192xf32> to vector<8x64xf32>
    %c0_148 = arith.constant 0 : index
    %c0_149 = arith.constant 0 : index
    %407 = vector.load %arg5[%c0_148, %c0_149] : memref<1x64xf32, #tpu.memory_space<vmem>>, vector<1x64xf32>
    %408 = vector.broadcast %407 : vector<1x64xf32> to vector<8x64xf32>
    %409 = arith.addf %406, %408 : vector<8x64xf32>
    %410 = arith.mulf %396, %409 : vector<8x64xf32>
    %411 = arith.addf %405, %410 : vector<8x64xf32>
    %412 = math.tanh %411 : vector<8x64xf32>
    %cst_150 = arith.constant 1.000000e+00 : f32
    %413 = vector.broadcast %cst_150 : f32 to vector<8x64xf32>
    %414 = arith.subf %413, %404 : vector<8x64xf32>
    %415 = arith.mulf %414, %412 : vector<8x64xf32>
    %416 = arith.mulf %404, %343 : vector<8x64xf32>
    %417 = arith.addf %415, %416 : vector<8x64xf32>
    %c0_151 = arith.constant 0 : index
    %c0_152 = arith.constant 0 : index
    %418 = vector.load %arg6[%c0_151, %c0_152] : memref<64x192xf32, #tpu.memory_space<vmem>>, vector<64x192xf32>
    %cst_153 = arith.constant dense<0.000000e+00> : vector<8x192xf32>
    %419 = tpu.matmul %417, %418, %cst_153 {dimension_numbers = #tpu.dot_dimension_numbers<[1], [0], [0], [1], [0, 0, 1, 1], [], []>} : vector<8x64xf32>, vector<64x192xf32>, vector<8x192xf32> -> vector<8x192xf32>
    %c0_154 = arith.constant 0 : index
    %c0_155 = arith.constant 0 : index
    %420 = vector.load %arg7[%c0_154, %c0_155] : memref<1x192xf32, #tpu.memory_space<vmem>>, vector<1x192xf32>
    %421 = vector.broadcast %420 : vector<1x192xf32> to vector<8x192xf32>
    %422 = arith.addf %419, %421 : vector<8x192xf32>
    %c0_156 = arith.constant 0 : index
    %c0_157 = arith.constant 0 : index
    %423 = vector.load %arg8[%c0_156, %c0_157] : memref<64x192xf32, #tpu.memory_space<vmem>>, vector<64x192xf32>
    %cst_158 = arith.constant dense<0.000000e+00> : vector<8x192xf32>
    %424 = tpu.matmul %379, %423, %cst_158 {dimension_numbers = #tpu.dot_dimension_numbers<[1], [0], [0], [1], [0, 0, 1, 1], [], []>} : vector<8x64xf32>, vector<64x192xf32>, vector<8x192xf32> -> vector<8x192xf32>
    %425 = vector.extract_strided_slice %422 {offsets = [0, 0], sizes = [8, 64], strides = [1, 1]} : vector<8x192xf32> to vector<8x64xf32>
    %426 = vector.extract_strided_slice %424 {offsets = [0, 0], sizes = [8, 64], strides = [1, 1]} : vector<8x192xf32> to vector<8x64xf32>
    %427 = arith.addf %425, %426 : vector<8x64xf32>
    %428 = arith.negf %427 : vector<8x64xf32>
    %429 = math.exp %428 : vector<8x64xf32>
    %cst_159 = arith.constant 1.000000e+00 : f32
    %430 = vector.broadcast %cst_159 : f32 to vector<8x64xf32>
    %431 = arith.addf %430, %429 : vector<8x64xf32>
    %432 = arith.divf %430, %431 : vector<8x64xf32>
    %433 = vector.extract_strided_slice %422 {offsets = [0, 64], sizes = [8, 64], strides = [1, 1]} : vector<8x192xf32> to vector<8x64xf32>
    %434 = vector.extract_strided_slice %424 {offsets = [0, 64], sizes = [8, 64], strides = [1, 1]} : vector<8x192xf32> to vector<8x64xf32>
    %435 = arith.addf %433, %434 : vector<8x64xf32>
    %436 = arith.negf %435 : vector<8x64xf32>
    %437 = math.exp %436 : vector<8x64xf32>
    %cst_160 = arith.constant 1.000000e+00 : f32
    %438 = vector.broadcast %cst_160 : f32 to vector<8x64xf32>
    %439 = arith.addf %438, %437 : vector<8x64xf32>
    %440 = arith.divf %438, %439 : vector<8x64xf32>
    %441 = vector.extract_strided_slice %422 {offsets = [0, 128], sizes = [8, 64], strides = [1, 1]} : vector<8x192xf32> to vector<8x64xf32>
    %442 = vector.extract_strided_slice %424 {offsets = [0, 128], sizes = [8, 64], strides = [1, 1]} : vector<8x192xf32> to vector<8x64xf32>
    %c0_161 = arith.constant 0 : index
    %c0_162 = arith.constant 0 : index
    %443 = vector.load %arg9[%c0_161, %c0_162] : memref<1x64xf32, #tpu.memory_space<vmem>>, vector<1x64xf32>
    %444 = vector.broadcast %443 : vector<1x64xf32> to vector<8x64xf32>
    %445 = arith.addf %442, %444 : vector<8x64xf32>
    %446 = arith.mulf %432, %445 : vector<8x64xf32>
    %447 = arith.addf %441, %446 : vector<8x64xf32>
    %448 = math.tanh %447 : vector<8x64xf32>
    %cst_163 = arith.constant 1.000000e+00 : f32
    %449 = vector.broadcast %cst_163 : f32 to vector<8x64xf32>
    %450 = arith.subf %449, %440 : vector<8x64xf32>
    %451 = arith.mulf %450, %448 : vector<8x64xf32>
    %452 = arith.mulf %440, %379 : vector<8x64xf32>
    %453 = arith.addf %451, %452 : vector<8x64xf32>
    %454 = arith.index_cast %c5_i32 : i32 to index
    %c0_164 = arith.constant 0 : index
    %c0_165 = arith.constant 0 : index
    %455 = vector.load %arg16[%454, %c0_164, %c0_165] : memref<8x8x64xf32, #tpu.memory_space<vmem>>, vector<1x8x64xf32>
    %456 = vector.shape_cast %455 : vector<1x8x64xf32> to vector<8x64xf32>
    %457 = vector.shape_cast %453 : vector<8x64xf32> to vector<1x8x64xf32>
    tpu.vector_store %arg16[%454, %c0_164, %c0_165], %457 {strides = array<i32>} : memref<8x8x64xf32, #tpu.memory_space<vmem>>, vector<1x8x64xf32>,
    %c6_i32 = arith.constant 6 : i32
    %458 = arith.index_cast %c6_i32 : i32 to index
    %c0_166 = arith.constant 0 : index
    %c0_167 = arith.constant 0 : index
    %459 = vector.load %arg15[%458, %c0_166, %c0_167] : memref<8x8x192xf32, #tpu.memory_space<vmem>>, vector<1x8x192xf32>
    %460 = vector.shape_cast %459 : vector<1x8x192xf32> to vector<8x192xf32>
    %c0_168 = arith.constant 0 : index
    %c0_169 = arith.constant 0 : index
    %461 = vector.load %arg4[%c0_168, %c0_169] : memref<64x192xf32, #tpu.memory_space<vmem>>, vector<64x192xf32>
    %cst_170 = arith.constant dense<0.000000e+00> : vector<8x192xf32>
    %462 = tpu.matmul %417, %461, %cst_170 {dimension_numbers = #tpu.dot_dimension_numbers<[1], [0], [0], [1], [0, 0, 1, 1], [], []>} : vector<8x64xf32>, vector<64x192xf32>, vector<8x192xf32> -> vector<8x192xf32>
    %463 = vector.extract_strided_slice %460 {offsets = [0, 0], sizes = [8, 64], strides = [1, 1]} : vector<8x192xf32> to vector<8x64xf32>
    %464 = vector.extract_strided_slice %462 {offsets = [0, 0], sizes = [8, 64], strides = [1, 1]} : vector<8x192xf32> to vector<8x64xf32>
    %465 = arith.addf %463, %464 : vector<8x64xf32>
    %466 = arith.negf %465 : vector<8x64xf32>
    %467 = math.exp %466 : vector<8x64xf32>
    %cst_171 = arith.constant 1.000000e+00 : f32
    %468 = vector.broadcast %cst_171 : f32 to vector<8x64xf32>
    %469 = arith.addf %468, %467 : vector<8x64xf32>
    %470 = arith.divf %468, %469 : vector<8x64xf32>
    %471 = vector.extract_strided_slice %460 {offsets = [0, 64], sizes = [8, 64], strides = [1, 1]} : vector<8x192xf32> to vector<8x64xf32>
    %472 = vector.extract_strided_slice %462 {offsets = [0, 64], sizes = [8, 64], strides = [1, 1]} : vector<8x192xf32> to vector<8x64xf32>
    %473 = arith.addf %471, %472 : vector<8x64xf32>
    %474 = arith.negf %473 : vector<8x64xf32>
    %475 = math.exp %474 : vector<8x64xf32>
    %cst_172 = arith.constant 1.000000e+00 : f32
    %476 = vector.broadcast %cst_172 : f32 to vector<8x64xf32>
    %477 = arith.addf %476, %475 : vector<8x64xf32>
    %478 = arith.divf %476, %477 : vector<8x64xf32>
    %479 = vector.extract_strided_slice %460 {offsets = [0, 128], sizes = [8, 64], strides = [1, 1]} : vector<8x192xf32> to vector<8x64xf32>
    %480 = vector.extract_strided_slice %462 {offsets = [0, 128], sizes = [8, 64], strides = [1, 1]} : vector<8x192xf32> to vector<8x64xf32>
    %c0_173 = arith.constant 0 : index
    %c0_174 = arith.constant 0 : index
    %481 = vector.load %arg5[%c0_173, %c0_174] : memref<1x64xf32, #tpu.memory_space<vmem>>, vector<1x64xf32>
    %482 = vector.broadcast %481 : vector<1x64xf32> to vector<8x64xf32>
    %483 = arith.addf %480, %482 : vector<8x64xf32>
    %484 = arith.mulf %470, %483 : vector<8x64xf32>
    %485 = arith.addf %479, %484 : vector<8x64xf32>
    %486 = math.tanh %485 : vector<8x64xf32>
    %cst_175 = arith.constant 1.000000e+00 : f32
    %487 = vector.broadcast %cst_175 : f32 to vector<8x64xf32>
    %488 = arith.subf %487, %478 : vector<8x64xf32>
    %489 = arith.mulf %488, %486 : vector<8x64xf32>
    %490 = arith.mulf %478, %417 : vector<8x64xf32>
    %491 = arith.addf %489, %490 : vector<8x64xf32>
    %c0_176 = arith.constant 0 : index
    %c0_177 = arith.constant 0 : index
    %492 = vector.load %arg6[%c0_176, %c0_177] : memref<64x192xf32, #tpu.memory_space<vmem>>, vector<64x192xf32>
    %cst_178 = arith.constant dense<0.000000e+00> : vector<8x192xf32>
    %493 = tpu.matmul %491, %492, %cst_178 {dimension_numbers = #tpu.dot_dimension_numbers<[1], [0], [0], [1], [0, 0, 1, 1], [], []>} : vector<8x64xf32>, vector<64x192xf32>, vector<8x192xf32> -> vector<8x192xf32>
    %c0_179 = arith.constant 0 : index
    %c0_180 = arith.constant 0 : index
    %494 = vector.load %arg7[%c0_179, %c0_180] : memref<1x192xf32, #tpu.memory_space<vmem>>, vector<1x192xf32>
    %495 = vector.broadcast %494 : vector<1x192xf32> to vector<8x192xf32>
    %496 = arith.addf %493, %495 : vector<8x192xf32>
    %c0_181 = arith.constant 0 : index
    %c0_182 = arith.constant 0 : index
    %497 = vector.load %arg8[%c0_181, %c0_182] : memref<64x192xf32, #tpu.memory_space<vmem>>, vector<64x192xf32>
    %cst_183 = arith.constant dense<0.000000e+00> : vector<8x192xf32>
    %498 = tpu.matmul %453, %497, %cst_183 {dimension_numbers = #tpu.dot_dimension_numbers<[1], [0], [0], [1], [0, 0, 1, 1], [], []>} : vector<8x64xf32>, vector<64x192xf32>, vector<8x192xf32> -> vector<8x192xf32>
    %499 = vector.extract_strided_slice %496 {offsets = [0, 0], sizes = [8, 64], strides = [1, 1]} : vector<8x192xf32> to vector<8x64xf32>
    %500 = vector.extract_strided_slice %498 {offsets = [0, 0], sizes = [8, 64], strides = [1, 1]} : vector<8x192xf32> to vector<8x64xf32>
    %501 = arith.addf %499, %500 : vector<8x64xf32>
    %502 = arith.negf %501 : vector<8x64xf32>
    %503 = math.exp %502 : vector<8x64xf32>
    %cst_184 = arith.constant 1.000000e+00 : f32
    %504 = vector.broadcast %cst_184 : f32 to vector<8x64xf32>
    %505 = arith.addf %504, %503 : vector<8x64xf32>
    %506 = arith.divf %504, %505 : vector<8x64xf32>
    %507 = vector.extract_strided_slice %496 {offsets = [0, 64], sizes = [8, 64], strides = [1, 1]} : vector<8x192xf32> to vector<8x64xf32>
    %508 = vector.extract_strided_slice %498 {offsets = [0, 64], sizes = [8, 64], strides = [1, 1]} : vector<8x192xf32> to vector<8x64xf32>
    %509 = arith.addf %507, %508 : vector<8x64xf32>
    %510 = arith.negf %509 : vector<8x64xf32>
    %511 = math.exp %510 : vector<8x64xf32>
    %cst_185 = arith.constant 1.000000e+00 : f32
    %512 = vector.broadcast %cst_185 : f32 to vector<8x64xf32>
    %513 = arith.addf %512, %511 : vector<8x64xf32>
    %514 = arith.divf %512, %513 : vector<8x64xf32>
    %515 = vector.extract_strided_slice %496 {offsets = [0, 128], sizes = [8, 64], strides = [1, 1]} : vector<8x192xf32> to vector<8x64xf32>
    %516 = vector.extract_strided_slice %498 {offsets = [0, 128], sizes = [8, 64], strides = [1, 1]} : vector<8x192xf32> to vector<8x64xf32>
    %c0_186 = arith.constant 0 : index
    %c0_187 = arith.constant 0 : index
    %517 = vector.load %arg9[%c0_186, %c0_187] : memref<1x64xf32, #tpu.memory_space<vmem>>, vector<1x64xf32>
    %518 = vector.broadcast %517 : vector<1x64xf32> to vector<8x64xf32>
    %519 = arith.addf %516, %518 : vector<8x64xf32>
    %520 = arith.mulf %506, %519 : vector<8x64xf32>
    %521 = arith.addf %515, %520 : vector<8x64xf32>
    %522 = math.tanh %521 : vector<8x64xf32>
    %cst_188 = arith.constant 1.000000e+00 : f32
    %523 = vector.broadcast %cst_188 : f32 to vector<8x64xf32>
    %524 = arith.subf %523, %514 : vector<8x64xf32>
    %525 = arith.mulf %524, %522 : vector<8x64xf32>
    %526 = arith.mulf %514, %453 : vector<8x64xf32>
    %527 = arith.addf %525, %526 : vector<8x64xf32>
    %528 = arith.index_cast %c6_i32 : i32 to index
    %c0_189 = arith.constant 0 : index
    %c0_190 = arith.constant 0 : index
    %529 = vector.load %arg16[%528, %c0_189, %c0_190] : memref<8x8x64xf32, #tpu.memory_space<vmem>>, vector<1x8x64xf32>
    %530 = vector.shape_cast %529 : vector<1x8x64xf32> to vector<8x64xf32>
    %531 = vector.shape_cast %527 : vector<8x64xf32> to vector<1x8x64xf32>
    tpu.vector_store %arg16[%528, %c0_189, %c0_190], %531 {strides = array<i32>} : memref<8x8x64xf32, #tpu.memory_space<vmem>>, vector<1x8x64xf32>,
    %c7_i32 = arith.constant 7 : i32
    %532 = arith.index_cast %c7_i32 : i32 to index
    %c0_191 = arith.constant 0 : index
    %c0_192 = arith.constant 0 : index
    %533 = vector.load %arg15[%532, %c0_191, %c0_192] : memref<8x8x192xf32, #tpu.memory_space<vmem>>, vector<1x8x192xf32>
    %534 = vector.shape_cast %533 : vector<1x8x192xf32> to vector<8x192xf32>
    %c0_193 = arith.constant 0 : index
    %c0_194 = arith.constant 0 : index
    %535 = vector.load %arg4[%c0_193, %c0_194] : memref<64x192xf32, #tpu.memory_space<vmem>>, vector<64x192xf32>
    %cst_195 = arith.constant dense<0.000000e+00> : vector<8x192xf32>
    %536 = tpu.matmul %491, %535, %cst_195 {dimension_numbers = #tpu.dot_dimension_numbers<[1], [0], [0], [1], [0, 0, 1, 1], [], []>} : vector<8x64xf32>, vector<64x192xf32>, vector<8x192xf32> -> vector<8x192xf32>
    %537 = vector.extract_strided_slice %534 {offsets = [0, 0], sizes = [8, 64], strides = [1, 1]} : vector<8x192xf32> to vector<8x64xf32>
    %538 = vector.extract_strided_slice %536 {offsets = [0, 0], sizes = [8, 64], strides = [1, 1]} : vector<8x192xf32> to vector<8x64xf32>
    %539 = arith.addf %537, %538 : vector<8x64xf32>
    %540 = arith.negf %539 : vector<8x64xf32>
    %541 = math.exp %540 : vector<8x64xf32>
    %cst_196 = arith.constant 1.000000e+00 : f32
    %542 = vector.broadcast %cst_196 : f32 to vector<8x64xf32>
    %543 = arith.addf %542, %541 : vector<8x64xf32>
    %544 = arith.divf %542, %543 : vector<8x64xf32>
    %545 = vector.extract_strided_slice %534 {offsets = [0, 64], sizes = [8, 64], strides = [1, 1]} : vector<8x192xf32> to vector<8x64xf32>
    %546 = vector.extract_strided_slice %536 {offsets = [0, 64], sizes = [8, 64], strides = [1, 1]} : vector<8x192xf32> to vector<8x64xf32>
    %547 = arith.addf %545, %546 : vector<8x64xf32>
    %548 = arith.negf %547 : vector<8x64xf32>
    %549 = math.exp %548 : vector<8x64xf32>
    %cst_197 = arith.constant 1.000000e+00 : f32
    %550 = vector.broadcast %cst_197 : f32 to vector<8x64xf32>
    %551 = arith.addf %550, %549 : vector<8x64xf32>
    %552 = arith.divf %550, %551 : vector<8x64xf32>
    %553 = vector.extract_strided_slice %534 {offsets = [0, 128], sizes = [8, 64], strides = [1, 1]} : vector<8x192xf32> to vector<8x64xf32>
    %554 = vector.extract_strided_slice %536 {offsets = [0, 128], sizes = [8, 64], strides = [1, 1]} : vector<8x192xf32> to vector<8x64xf32>
    %c0_198 = arith.constant 0 : index
    %c0_199 = arith.constant 0 : index
    %555 = vector.load %arg5[%c0_198, %c0_199] : memref<1x64xf32, #tpu.memory_space<vmem>>, vector<1x64xf32>
    %556 = vector.broadcast %555 : vector<1x64xf32> to vector<8x64xf32>
    %557 = arith.addf %554, %556 : vector<8x64xf32>
    %558 = arith.mulf %544, %557 : vector<8x64xf32>
    %559 = arith.addf %553, %558 : vector<8x64xf32>
    %560 = math.tanh %559 : vector<8x64xf32>
    %cst_200 = arith.constant 1.000000e+00 : f32
    %561 = vector.broadcast %cst_200 : f32 to vector<8x64xf32>
    %562 = arith.subf %561, %552 : vector<8x64xf32>
    %563 = arith.mulf %562, %560 : vector<8x64xf32>
    %564 = arith.mulf %552, %491 : vector<8x64xf32>
    %565 = arith.addf %563, %564 : vector<8x64xf32>
    %c0_201 = arith.constant 0 : index
    %c0_202 = arith.constant 0 : index
    %566 = vector.load %arg6[%c0_201, %c0_202] : memref<64x192xf32, #tpu.memory_space<vmem>>, vector<64x192xf32>
    %cst_203 = arith.constant dense<0.000000e+00> : vector<8x192xf32>
    %567 = tpu.matmul %565, %566, %cst_203 {dimension_numbers = #tpu.dot_dimension_numbers<[1], [0], [0], [1], [0, 0, 1, 1], [], []>} : vector<8x64xf32>, vector<64x192xf32>, vector<8x192xf32> -> vector<8x192xf32>
    %c0_204 = arith.constant 0 : index
    %c0_205 = arith.constant 0 : index
    %568 = vector.load %arg7[%c0_204, %c0_205] : memref<1x192xf32, #tpu.memory_space<vmem>>, vector<1x192xf32>
    %569 = vector.broadcast %568 : vector<1x192xf32> to vector<8x192xf32>
    %570 = arith.addf %567, %569 : vector<8x192xf32>
    %c0_206 = arith.constant 0 : index
    %c0_207 = arith.constant 0 : index
    %571 = vector.load %arg8[%c0_206, %c0_207] : memref<64x192xf32, #tpu.memory_space<vmem>>, vector<64x192xf32>
    %cst_208 = arith.constant dense<0.000000e+00> : vector<8x192xf32>
    %572 = tpu.matmul %527, %571, %cst_208 {dimension_numbers = #tpu.dot_dimension_numbers<[1], [0], [0], [1], [0, 0, 1, 1], [], []>} : vector<8x64xf32>, vector<64x192xf32>, vector<8x192xf32> -> vector<8x192xf32>
    %573 = vector.extract_strided_slice %570 {offsets = [0, 0], sizes = [8, 64], strides = [1, 1]} : vector<8x192xf32> to vector<8x64xf32>
    %574 = vector.extract_strided_slice %572 {offsets = [0, 0], sizes = [8, 64], strides = [1, 1]} : vector<8x192xf32> to vector<8x64xf32>
    %575 = arith.addf %573, %574 : vector<8x64xf32>
    %576 = arith.negf %575 : vector<8x64xf32>
    %577 = math.exp %576 : vector<8x64xf32>
    %cst_209 = arith.constant 1.000000e+00 : f32
    %578 = vector.broadcast %cst_209 : f32 to vector<8x64xf32>
    %579 = arith.addf %578, %577 : vector<8x64xf32>
    %580 = arith.divf %578, %579 : vector<8x64xf32>
    %581 = vector.extract_strided_slice %570 {offsets = [0, 64], sizes = [8, 64], strides = [1, 1]} : vector<8x192xf32> to vector<8x64xf32>
    %582 = vector.extract_strided_slice %572 {offsets = [0, 64], sizes = [8, 64], strides = [1, 1]} : vector<8x192xf32> to vector<8x64xf32>
    %583 = arith.addf %581, %582 : vector<8x64xf32>
    %584 = arith.negf %583 : vector<8x64xf32>
    %585 = math.exp %584 : vector<8x64xf32>
    %cst_210 = arith.constant 1.000000e+00 : f32
    %586 = vector.broadcast %cst_210 : f32 to vector<8x64xf32>
    %587 = arith.addf %586, %585 : vector<8x64xf32>
    %588 = arith.divf %586, %587 : vector<8x64xf32>
    %589 = vector.extract_strided_slice %570 {offsets = [0, 128], sizes = [8, 64], strides = [1, 1]} : vector<8x192xf32> to vector<8x64xf32>
    %590 = vector.extract_strided_slice %572 {offsets = [0, 128], sizes = [8, 64], strides = [1, 1]} : vector<8x192xf32> to vector<8x64xf32>
    %c0_211 = arith.constant 0 : index
    %c0_212 = arith.constant 0 : index
    %591 = vector.load %arg9[%c0_211, %c0_212] : memref<1x64xf32, #tpu.memory_space<vmem>>, vector<1x64xf32>
    %592 = vector.broadcast %591 : vector<1x64xf32> to vector<8x64xf32>
    %593 = arith.addf %590, %592 : vector<8x64xf32>
    %594 = arith.mulf %580, %593 : vector<8x64xf32>
    %595 = arith.addf %589, %594 : vector<8x64xf32>
    %596 = math.tanh %595 : vector<8x64xf32>
    %cst_213 = arith.constant 1.000000e+00 : f32
    %597 = vector.broadcast %cst_213 : f32 to vector<8x64xf32>
    %598 = arith.subf %597, %588 : vector<8x64xf32>
    %599 = arith.mulf %598, %596 : vector<8x64xf32>
    %600 = arith.mulf %588, %527 : vector<8x64xf32>
    %601 = arith.addf %599, %600 : vector<8x64xf32>
    %602 = arith.index_cast %c7_i32 : i32 to index
    %c0_214 = arith.constant 0 : index
    %c0_215 = arith.constant 0 : index
    %603 = vector.load %arg16[%602, %c0_214, %c0_215] : memref<8x8x64xf32, #tpu.memory_space<vmem>>, vector<1x8x64xf32>
    %604 = vector.shape_cast %603 : vector<1x8x64xf32> to vector<8x64xf32>
    %605 = vector.shape_cast %601 : vector<8x64xf32> to vector<1x8x64xf32>
    tpu.vector_store %arg16[%602, %c0_214, %c0_215], %605 {strides = array<i32>} : memref<8x8x64xf32, #tpu.memory_space<vmem>>, vector<1x8x64xf32>,
    %c8_i32 = arith.constant 8 : i32
    %c0_216 = arith.constant 0 : index
    %c0_217 = arith.constant 0 : index
    %606 = vector.load %arg13[%c0_216, %c0_217] : memref<8x64xf32, #tpu.memory_space<vmem>>, vector<8x64xf32>
    tpu.vector_store %arg13[%c0_216, %c0_217], %565 {strides = array<i32>} : memref<8x64xf32, #tpu.memory_space<vmem>>, vector<8x64xf32>,
    %c0_218 = arith.constant 0 : index
    %c0_219 = arith.constant 0 : index
    %607 = vector.load %arg14[%c0_218, %c0_219] : memref<8x64xf32, #tpu.memory_space<vmem>>, vector<8x64xf32>
    tpu.vector_store %arg14[%c0_218, %c0_219], %601 {strides = array<i32>} : memref<8x64xf32, #tpu.memory_space<vmem>>, vector<8x64xf32>,
    %c0_220 = arith.constant 0 : index
    %c0_221 = arith.constant 0 : index
    %c0_222 = arith.constant 0 : index
    %608 = vector.load %arg16[%c0_220, %c0_221, %c0_222] : memref<8x8x64xf32, #tpu.memory_space<vmem>>, vector<8x8x64xf32>
    %c0_223 = arith.constant 0 : index
    %c0_224 = arith.constant 0 : index
    %c0_225 = arith.constant 0 : index
    %609 = vector.load %arg10[%c0_223, %c0_224, %c0_225] : memref<1x1x64xf32, #tpu.memory_space<vmem>>, vector<1x1x64xf32>
    %610 = vector.broadcast %609 : vector<1x1x64xf32> to vector<8x8x64xf32>
    %611 = arith.mulf %608, %610 : vector<8x8x64xf32>
    %cst_226 = arith.constant dense<0.000000e+00> : vector<8x8xf32>
    %612 = vector.multi_reduction <add>, %611, %cst_226 [2] : vector<8x8x64xf32> to vector<8x8xf32>
    %c0_227 = arith.constant 0 : index
    %c0_228 = arith.constant 0 : index
    %613 = vector.load %arg11[%c0_227, %c0_228] : memref<1x1xf32, #tpu.memory_space<vmem>>, vector<1x1xf32>
    %614 = vector.broadcast %613 : vector<1x1xf32> to vector<8x8xf32>
    %615 = arith.addf %612, %614 : vector<8x8xf32>
    %c0_229 = arith.constant 0 : index
    %c0_230 = arith.constant 0 : index
    %616 = vector.load %arg12[%c0_229, %c0_230] : memref<8x8xf32, #tpu.memory_space<vmem>>, vector<8x8xf32>
    tpu.vector_store %arg12[%c0_229, %c0_230], %615 {strides = array<i32>} : memref<8x8xf32, #tpu.memory_space<vmem>>, vector<8x8xf32>,
    return
  }
  func.func @transform_0(%arg0: i32) -> (i32, i32, i32) {
    %c0_i32 = arith.constant 0 : i32
    %c0_i32_0 = arith.constant 0 : i32
    %c0_i32_1 = arith.constant 0 : i32
    return %arg0, %c0_i32, %c0_i32_0 : i32, i32, i32
  }
  func.func @transform_1(%arg0: i32) -> (i32, i32, i32) {
    %c0_i32 = arith.constant 0 : i32
    %c0_i32_0 = arith.constant 0 : i32
    %c0_i32_1 = arith.constant 0 : i32
    %c0_i32_2 = arith.constant 0 : i32
    return %c0_i32, %c0_i32_0, %c0_i32_1 : i32, i32, i32
  }
  func.func @transform_2(%arg0: i32) -> (i32, i32, i32) {
    %c0_i32 = arith.constant 0 : i32
    %c0_i32_0 = arith.constant 0 : i32
    %c0_i32_1 = arith.constant 0 : i32
    %c0_i32_2 = arith.constant 0 : i32
    return %c0_i32, %c0_i32_0, %c0_i32_1 : i32, i32, i32
  }
  func.func @transform_3(%arg0: i32) -> (i32, i32) {
    %c0_i32 = arith.constant 0 : i32
    %c0_i32_0 = arith.constant 0 : i32
    %c0_i32_1 = arith.constant 0 : i32
    return %c0_i32, %c0_i32_0 : i32, i32
  }
  func.func @transform_4(%arg0: i32) -> (i32, i32) {
    %c0_i32 = arith.constant 0 : i32
    %c0_i32_0 = arith.constant 0 : i32
    %c0_i32_1 = arith.constant 0 : i32
    return %c0_i32, %c0_i32_0 : i32, i32
  }
  func.func @transform_5(%arg0: i32) -> (i32, i32) {
    %c0_i32 = arith.constant 0 : i32
    %c0_i32_0 = arith.constant 0 : i32
    %c0_i32_1 = arith.constant 0 : i32
    return %c0_i32, %c0_i32_0 : i32, i32
  }
  func.func @transform_6(%arg0: i32) -> (i32, i32) {
    %c0_i32 = arith.constant 0 : i32
    %c0_i32_0 = arith.constant 0 : i32
    %c0_i32_1 = arith.constant 0 : i32
    return %c0_i32, %c0_i32_0 : i32, i32
  }
  func.func @transform_7(%arg0: i32) -> (i32, i32) {
    %c0_i32 = arith.constant 0 : i32
    %c0_i32_0 = arith.constant 0 : i32
    %c0_i32_1 = arith.constant 0 : i32
    return %c0_i32, %c0_i32_0 : i32, i32
  }
  func.func @transform_8(%arg0: i32) -> (i32, i32) {
    %c0_i32 = arith.constant 0 : i32
    %c0_i32_0 = arith.constant 0 : i32
    %c0_i32_1 = arith.constant 0 : i32
    return %c0_i32, %c0_i32_0 : i32, i32
  }
  func.func @transform_9(%arg0: i32) -> (i32, i32, i32) {
    %c0_i32 = arith.constant 0 : i32
    %c0_i32_0 = arith.constant 0 : i32
    %c0_i32_1 = arith.constant 0 : i32
    %c0_i32_2 = arith.constant 0 : i32
    return %c0_i32, %c0_i32_0, %c0_i32_1 : i32, i32, i32
  }
  func.func @transform_10(%arg0: i32) -> (i32, i32) {
    %c0_i32 = arith.constant 0 : i32
    %c0_i32_0 = arith.constant 0 : i32
    %c0_i32_1 = arith.constant 0 : i32
    return %c0_i32, %c0_i32_0 : i32, i32
  }
  func.func @transform_11(%arg0: i32) -> (i32, i32) {
    %c0_i32 = arith.constant 0 : i32
    %c0_i32_0 = arith.constant 0 : i32
    return %arg0, %c0_i32 : i32, i32
  }
}

</mosaic_0001>

<bundles_post_ra>
// kernel: tpu_custom_call.1
= control target key start
LH: loop header
LB: loop body
LE: loop exit
PB: predicated region body
PF: predicated region fallthrough
CT: control target
= control target key end

     0   :  { %s4328_s0 = inlined_call_operand.vmem [shape: f32[8,8,1], index: 0, kind: input, shape index: {}]   ;;  %s4329_s1 = inlined_call_operand.vmem [shape: f32[1,1,192], index: 1, kind: input, shape index: {}]   ;;  %s4330_s2 = inlined_call_operand.vmem [shape: f32[1,1,192], index: 2, kind: input, shape index: {}]   ;;  %s4331_s3 = inlined_call_operand.hbm [shape: f32[64,192], index: 3, kind: input, shape index: {}]   ;;  %s4332_s4 = inlined_call_operand.vmem [shape: f32[1,64], index: 4, kind: input, shape index: {}]   ;;  %s4333_s5 = inlined_call_operand.hbm [shape: f32[64,192], index: 5, kind: input, shape index: {}]   ;;  %s4334_s6 = inlined_call_operand.vmem [shape: f32[1,192], index: 6, kind: input, shape index: {}]   ;;  %s4335_s7 = inlined_call_operand.hbm [shape: f32[64,192], index: 7, kind: input, shape index: {}]   ;;  %s4336_s8 = inlined_call_operand.vmem [shape: f32[1,64], index: 8, kind: input, shape index: {}]   ;;  %s4337_s9 = inlined_call_operand.vmem [shape: f32[1,1,64], index: 9, kind: input, shape index: {}]   ;;  %s4338_s10 = inlined_call_operand.<no memory space> [shape: f32[1,1], index: 10, kind: input, shape index: {}]   ;;  %s4339_s11 = inlined_call_operand.hbm [shape: f32[8,8], index: 11, kind: output, shape index: {}]  }
   0x1   :  { %v16_v0 = vstv %s4338_s10 }
   0x2   :  { %17 = vst [vmem:[#allocation6] sm:$0x1] %v16_v0 }
   0x3   :  { %18 = vsyncpa [#allocation8], 0 }
   0x4   :  { %19 = vsyncpa [#allocation11], 0 }
   0x5   :  { %20 = vsyncpa [#allocation9], 0  ;;  %s3342_s19 = smov [#allocation10]   ;;  %s3343_s21 = smov [#allocation7]  }
   0x6   :  { %s46_s20 = sshll.u32 %s3342_s19, 4  ;;  %s32_s22 = sshll.u32 %s3343_s21, 4  ;;  %s47_s20 = int_to_ptr.vmem [resolvable:$true] %s46_s20  ;;  %s33_s22 = int_to_ptr.vmem [resolvable:$true] %s32_s22 }
   0x7   :  { %s3264_s23 = scalar_lea.vmem %s47_s20, 2048  ;;  %p3269_p1 = scmp.lt.s32.totalorder %s47_s20, %s47_s20 }
   0x8   :  { %p3265_p0 = scmp.ne.s32.totalorder %s47_s20, %s3264_s23  ;;  %p3270_p2 = scmp.lt.s32.totalorder %s3264_s23, %s3264_s23 }
   0xa   :  { %p3271_p3 = por %p3270_p2, %p3269_p1 }
   0xc   :  { %p3272_p4 = pnand %p3271_p3, %p3265_p0 }
   0xe   :  { %3275 = shalt.err (!%p3272_p4)
}
   0xf   :  { %s3344_s24 = smov 256   ;;  %s3345_s25 = smov 16  }
  0x10   :  { %52 = dma.hbm_to_vmem [thread:$0]  %s4333_s5, 2048, %s47_s20, [#allocation11], %s3344_s24, %s3344_s24, %s3345_s25  }
  0x11   :  { %s3284_s27 = scalar_lea.vmem %s33_s22, 2048  ;;  %p3289_p6 = scmp.lt.s32.totalorder %s33_s22, %s33_s22 }
  0x12   :  { %p3285_p5 = scmp.ne.s32.totalorder %s33_s22, %s3284_s27  ;;  %p3290_p7 = scmp.lt.s32.totalorder %s3284_s27, %s3284_s27 }
  0x14   :  { %p3291_p8 = por %p3290_p7, %p3289_p6 }
  0x16   :  { %p3292_p9 = pnand %p3291_p8, %p3285_p5 }
  0x18   :  { %3295 = shalt.err (!%p3292_p9)
}
  0x19   :  { %38 = dma.hbm_to_vmem [thread:$0]  %s4331_s3, 2048, %s33_s22, [#allocation8], %s3344_s24, %s3344_s24, %s3345_s25  }
  0x1a   :  { %s3346_s30 = smov [#allocation12]  }
  0x1b   :  { %s60_s12 = sshll.u32 %s3346_s30, 4  ;;  %s61_s12 = int_to_ptr.vmem [resolvable:$true] %s60_s12 }
  0x1c   :  { %s3304_s13 = scalar_lea.vmem %s61_s12, 2048  ;;  %p3309_p11 = scmp.lt.s32.totalorder %s61_s12, %s61_s12 }
  0x1d   :  { %p3305_p10 = scmp.ne.s32.totalorder %s61_s12, %s3304_s13  ;;  %p3310_p12 = scmp.lt.s32.totalorder %s3304_s13, %s3304_s13 }
  0x1f   :  { %p3311_p13 = por %p3310_p12, %p3309_p11 }
  0x21   :  { %p3312_p0 = pnand %p3311_p13, %p3305_p10 }
  0x23   :  { %3315 = shalt.err (!%p3312_p0)
}
  0x24   :  { %66 = dma.hbm_to_vmem [thread:$0]  %s4335_s7, 2048, %s61_s12, [#allocation11], %s3344_s24, %s3344_s24, %s3345_s25  }
  0x25   :  { %3336 = dma.done.wait [#allocation8], 2048  }
  0x26   :  { %3337 = vsyncadd [#allocation8], 4294965248 }
  0x27   :  { %3338 = dma.done.wait [#allocation11], 4096  }
  0x28   :  { %3339 = vsyncadd [#allocation11], 4294963200  ;;  %vm86_vm0 = vcmask 523264   ;;  %v4341_v1 = vmov 0.0   ;;  %v3348_v2 = vmov 0   ;;  %v3429_v3 = vld [vmem:[#allocation7 + $0x78] sm:$0xff]  ;;  %v4340_v21 = vlaneseq }
  0x29   :  { %297 = vmatprep.mubr.f32.mxu0 %v4341_v1  ;;  %87 = vst.msk [vmem:[#allocation2] sm:$0xff] %vm86_vm0, %v4341_v1  ;;  %88 = vst.msk [vmem:[#allocation3] sm:$0xff] %vm86_vm0, %v4341_v1  ;;  %3158 = vset.pattern.permute.xlu0 %v3348_v2  ;;  %v3431_v4 = vld [vmem:[#allocation7 + $0x70] sm:$0xff]  ;;  %v3433_v5 = vld [vmem:[#allocation7 + $0x68] sm:$0xff]  ;;  %s3349_s15 = smov 64   ;;  %vm3058_vm1 = vcmask 1041409  }
  0x2a   :  { %430 = vmatprep.mubr.f32.mxu1 %v4341_v1  ;;  %3159 = vset.pattern.permute.xlu1 %v3348_v2  ;;  %4393 = vst [vmem:[#allocation17_spill] sm:$0xff] %v3429_v3  ;;  %v3436_v6 = vld [vmem:[#allocation7 + $0x60] sm:$0xff]  ;;  %v3439_v7 = vld [vmem:[#allocation7 + $0x58] sm:$0xff]  ;;  %v3442_v8 = vld [vmem:[#allocation7 + $0x50] sm:$0xff]  ;;  %v3484_v22 = vshrl.u32 %v4340_v21, 7  ;;  %vm3060_vm2 = vcmask 1042434  }
  0x2b   :  { %249 = vmatprep.subr.mxu0 %v3429_v3  ;;  %v3445_v9 = vld [vmem:[#allocation7 + $0x48] sm:$0xff]  ;;  %v3448_v10 = vld [vmem:[#allocation7 + $0x40] sm:$0xff]  ;;  %v3454_v12 = vld [vmem:[#allocation7 + $0x38] sm:$0xff]  ;;  %vm3062_vm3 = vcmask 1043459   ;;  %vm3064_vm4 = vcmask 1044484   ;;  %vm3066_vm5 = vcmask 1045509  }
  0x2c   :  { %250 = vmatpush1.msra.mxu0 %v3431_v4  ;;  %v89_v11 = vld [vmem:[%s4328_s0] sm:$0xff]  ;;  %v3464_v16 = vld [vmem:[#allocation7 + $0x20] sm:$0xff]  ;;  %v3467_v17 = vld [vmem:[#allocation7 + $0x18] sm:$0xff]  ;;  %4394 = vst [vmem:[#allocation18_spill] sm:$0xff] %v3484_v22  ;;  %v3487_v23 = vsub.s32 0, %v3484_v22  ;;  %v3490_v24 = vsub.s32 1, %v3484_v22 }
  0x2d   :  { %251 = vmatprep.subr.mxu0 %v3433_v5  ;;  %100 = vperm.xlu0 %3158, %v89_v11   ;;  %v3457_v14 = vld [vmem:[#allocation7 + $0x30] sm:$0xff]  ;;  %v3461_v15 = vld [vmem:[#allocation7 + $0x28] sm:$0xff]  ;;  %v3476_v20 = vld [vmem:[#allocation7] sm:$0xff]  ;;  %v4407_v22 = vmov 0.0   ;;  %vm3068_vm6 = vcmask 1046534   ;;  %vm3070_vm7 = vcmask 1047559  }
  0x2e   :  { %252 = vmatpush1.msra.mxu0 %v3436_v6  ;;  %v3470_v18 = vld [vmem:[#allocation7 + $0x10] sm:$0xff]  ;;  %v3473_v19 = vld [vmem:[#allocation7 + $0x8] sm:$0xff]  ;;  %4395 = vst [vmem:[#allocation19_spill] sm:$0xff] %v3487_v23  ;;  %4396 = vst [vmem:[#allocation20_spill] sm:$0xff] %v3490_v24  ;;  %vm3073_vm8 = vcmask 64512  }
  0x2f   :  { %253 = vmatprep.subr.mxu0 %v3439_v7  ;;  %v97_v25 = vld [vmem:[%s4329_s1] sm:$0x3]  ;;  %v90_v49 = vld [vmem:[%s4328_s0 + $0x8] sm:$0xff]  ;;  %v3535_v53 = vld [vmem:[#allocation10 + $0x60] sm:$0xff] }
  0x30   :  { %254 = vmatpush1.msra.mxu0 %v3442_v8  ;;  %v210_v13 = vld [vmem:[#allocation2] sm:$0xff]  ;;  %v3499_v27 = vrot.slane %v97_v25, %v3487_v23  ;;  %v3502_v28 = vrot.slane %v97_v25, %v3490_v24  ;;  %v3528_v50 = vld [vmem:[#allocation10 + $0x78] sm:$0xff]  ;;  %v3551_v59 = vld [vmem:[#allocation12 + $0x60] sm:$0xff] }
  0x31   :  { %255 = vmatprep.subr.mxu0 %v3445_v9  ;;  %328 = vrot.lane.b32.xlu1 %v210_v13, %s3349_s15  ;;  %v165_v26 = vld [vmem:[%s4330_s2] sm:$0x3]  ;;  %v3537_v54 = vld [vmem:[#allocation12 + $0x78] sm:$0xff]  ;;  %v3563_v63 = vld [vmem:[#allocation10 + $0x40] sm:$0xff] }
  0x32   :  { %256 = vmatpush1.msra.mxu0 %v3448_v10  ;;  %v3505_v29 = vrot.slane %v165_v26, %v3487_v23  ;;  %v3508_v30 = vrot.slane %v165_v26, %v3490_v24  ;;  %v3518_v42 = vld [vmem:[%s4332_s4] ss:$0 sm:$0xff]  ;;  %v3530_v51 = vld [vmem:[#allocation10 + $0x70] sm:$0xff]  ;;  %382 = vmatprep.subr.mxu1 %v3528_v50  ;;  %v3541_v55 = vld [vmem:[#allocation10 + $0x58] sm:$0xff]  ;;  %4398 = vst [vmem:[#allocation22_spill] sm:$0xff] %v3563_v63 }
  0x33   :  { %257 = vmatprep.subr.mxu0 %v3454_v12  ;;  %v3532_v52 = vld [vmem:[#allocation10 + $0x68] sm:$0xff]  ;;  %383 = vmatpush1.msra.mxu1 %v3530_v51  ;;  %v3543_v56 = vld [vmem:[#allocation12 + $0x70] sm:$0xff]  ;;  %v3557_v61 = vld [vmem:[#allocation12 + $0x58] sm:$0xff] }
  0x34   :  { %258 = vmatpush1.msra.mxu0 %v3457_v14  ;;  %v3545_v57 = vld [vmem:[#allocation12 + $0x68] sm:$0xff]  ;;  %384 = vmatprep.subr.mxu1 %v3532_v52  ;;  %v3549_v58 = vld [vmem:[#allocation10 + $0x50] sm:$0xff]  ;;  %v3569_v2 = vld [vmem:[#allocation10 + $0x38] sm:$0xff] }
  0x35   :  { %259 = vmatprep.subr.mxu0 %v3461_v15  ;;  %385 = vmatpush1.msra.mxu1 %v3535_v53  ;;  %v3555_v60 = vld [vmem:[#allocation10 + $0x48] sm:$0xff]  ;;  %v3559_v62 = vld [vmem:[#allocation12 + $0x50] sm:$0xff]  ;;  %4399 = vst [vmem:[#allocation23_spill] sm:$0xff] %v3569_v2  ;;  %v3571_v11 = vld [vmem:[#allocation12 + $0x40] sm:$0xff] }
  0x36   :  { %260 = vmatpush1.msra.mxu0 %v3464_v16  ;;  %4397 = vst [vmem:[#allocation21_spill] sm:$0xff] %v3555_v60  ;;  %386 = vmatprep.subr.mxu1 %v3541_v55  ;;  %v3565_v0 = vld [vmem:[#allocation12 + $0x48] sm:$0xff]  ;;  %v3577_v25 = vld [vmem:[#allocation12 + $0x38] sm:$0xff] }
  0x37   :  { %261 = vmatprep.subr.mxu0 %v3467_v17  ;;  %387 = vmatpush1.msra.mxu1 %v3549_v58  ;;  %v3581_v26 = vld [vmem:[#allocation10 + $0x28] sm:$0xff] }
  0x38   :  { %262 = vmatpush1.msra.mxu0 %v3470_v18  ;;  %388 = vmatprep.subr.mxu1 %v3555_v60  ;;  %4401 = vst [vmem:[#allocation25_spill] sm:$0xff] %v3581_v26 }
  0x39   :  { %263 = vmatprep.subr.mxu0 %v3473_v19  ;;  %389 = vmatpush1.msra.mxu1 %v3563_v63 }
  0x3a   :  { %264 = vmatpush1.msra.mxu0 %v3476_v20  ;;  %390 = vmatprep.subr.mxu1 %v3569_v2 }
  0x3b   :  { %3091 = vmatmul.mubr.msk.f32.vlgmr.msra.gmra.mxu0 %vm86_vm0, %v210_v13  ;;  %472 = vmatprep.subr.mxu0 %v3537_v54  ;;  %v3575_v13 = vld [vmem:[#allocation10 + $0x30] sm:$0xff] }
  0x3c   :  { %520 = vmatprep.mubr.f32.mxu0 %v4341_v1  ;;  %473 = vmatpush1.msra.mxu0 %v3543_v56  ;;  %4400 = vst [vmem:[#allocation24_spill] sm:$0xff] %v3575_v13 }
  0x3d   :  { %474 = vmatprep.subr.mxu0 %v3545_v57  ;;  %391 = vmatpush1.msra.mxu1 %v3575_v13 }
  0x3e   :  { %475 = vmatpush1.msra.mxu0 %v3551_v59  ;;  %392 = vmatprep.subr.mxu1 %v3581_v26 }
  0x3f   :  { %476 = vmatprep.subr.mxu0 %v3557_v61 }
  0x40   :  { %477 = vmatpush1.msra.mxu0 %v3559_v62 }
  0x41   :  { %478 = vmatprep.subr.mxu0 %v3565_v0 }
  0x42   :  { %479 = vmatpush1.msra.mxu0 %v3571_v11 }
  0x43   :  { %480 = vmatprep.subr.mxu0 %v3577_v25 }
  0xa8   :  { %v101_v31 = vpop.permute.xlu0 %100 }
  0xa9   :  { %v149_v32 = vmul.f32 %v3499_v27, %v101_v31  ;;  %v150_v33 = vmul.f32 %v3502_v28, %v101_v31  ;;  %v3583_v31 = vld [vmem:[#allocation12 + $0x30] sm:$0xff] }
  0xaa   :  { %481 = vmatpush1.msra.mxu0 %v3583_v31 }
  0xab   :  { %v177_v34 = vadd.f32 %v3505_v29, %v149_v32  ;;  %v178_v35 = vadd.f32 %v3508_v30, %v150_v33  ;;  %v3587_v32 = vld [vmem:[#allocation10 + $0x20] sm:$0xff]  ;;  %v3589_v33 = vld [vmem:[#allocation12 + $0x28] sm:$0xff] }
  0xac   :  { %4402 = vst [vmem:[#allocation26_spill] sm:$0xff] %v3587_v32  ;;  %393 = vmatpush1.msra.mxu1 %v3587_v32  ;;  %482 = vmatprep.subr.mxu0 %v3589_v33 }
  0xad   :  { %195 = vst.msk [vmem:[#allocation4 + $0x8] sm:$0xff] %vm86_vm0, %v178_v35  ;;  %v3595_v35 = vld [vmem:[#allocation12 + $0x20] sm:$0xff] }
  0xae   :  { %483 = vmatpush1.msra.mxu0 %v3595_v35 }
  0xb4   :  { %v213_v46 = vld [vmem:[#allocation4 + $0x8] sm:$0xff] }
  0xfb   :  { %v299_v36 = vpop.f32.mrf.mxu0 }
  0xfc   :  { %v304_v37 = vadd.f32 %v299_v36, %v177_v34  ;;  %v3593_v34 = vld [vmem:[#allocation10 + $0x18] sm:$0xff]  ;;  %v3599_v36 = vld [vmem:[#allocation10 + $0x10] sm:$0xff] }
  0xfd   :  { %v301_v41 = vpop.f32.mrf.mxu0  ;;  %4403 = vst [vmem:[#allocation27_spill] sm:$0xff] %v3593_v34  ;;  %4404 = vst [vmem:[#allocation28_spill] sm:$0xff] %v3599_v36  ;;  %394 = vmatprep.subr.mxu1 %v3593_v34 }
  0xfe   :  { %v3092_v38 = vmul.f32 -1.442695, %v304_v37  ;;  %v318_v43 = vadd.f32 %v3518_v42, %v301_v41  ;;  %v3601_v37 = vld [vmem:[#allocation12 + $0x18] sm:$0xff]  ;;  %395 = vmatpush1.msra.mxu1 %v3599_v36  ;;  %v3619_v41 = vld [vmem:[#allocation12 + $0x8] sm:$0xff] }
  0xff   :  { %484 = vmatprep.subr.mxu0 %v3601_v37 }
 0x100   :  { %3160 = vpow2.f32 %v3092_v38  ;;  %v3605_v38 = vld [vmem:[#allocation10 + $0x8] sm:$0xff] }
 0x101   :  { %4405 = vst [vmem:[#allocation29_spill] sm:$0xff] %v3605_v38  ;;  %396 = vmatprep.subr.mxu1 %v3605_v38 }
 0x10d   :  { %v3161_v39 = vpop.eup %3160 }
 0x10e   :  { %v308_v40 = vadd.f32 1.0, %v3161_v39  ;;  %v3607_v39 = vld [vmem:[#allocation12 + $0x10] sm:$0xff] }
 0x10f   :  { %485 = vmatpush1.msra.mxu0 %v3607_v39 }
 0x110   :  { %3162 = vrcp.f32 %v308_v40  ;;  %v3611_v40 = vld [vmem:[#allocation10] sm:$0xff]  ;;  %486 = vmatprep.subr.mxu0 %v3619_v41 }
 0x111   :  { %4406 = vst [vmem:[#allocation30_spill] sm:$0xff] %v3611_v40  ;;  %397 = vmatpush1.msra.mxu1 %v3611_v40 }
 0x112   :  { %596 = vmatprep.subr.mxu1 %v3429_v3 }
 0x11d   :  { %v3521_v44 = vpop.eup %3162 }
 0x11e   :  { %v319_v45 = vmul.f32 %v3521_v44, %v318_v43  ;;  %v3622_v43 = vld [vmem:[#allocation12] sm:$0xff] }
 0x11f   :  { %487 = vmatpush1.msra.mxu0 %v3622_v43 }
 0x120   :  { %v320_v47 = vadd.f32 %v319_v45, %v213_v46  ;;  %v3625_v45 = vld [vmem:[#allocation3] sm:$0xff]  ;;  %726 = vmatprep.subr.mxu0 %v3528_v50  ;;  %v329_v46 = vpop.permute.xlu1 %328 }
 0x121   :  { %3095 = vmatmul.mubr.msk.f32.vlgmr.msra.gmra.mxu0 %vm86_vm0, %v3625_v45 }
 0x122   :  { %3164 = vtanh.f32 %v320_v47  ;;  %727 = vmatpush1.msra.mxu0 %v3530_v51  ;;  %774 = vmatprep.mubr.f32.mxu0 %v4341_v1  ;;  %v322_v47 = vsub.f32 1.0, %v3521_v44 }
 0x123   :  { %728 = vmatprep.subr.mxu0 %v3532_v52 }
 0x124   :  { %729 = vmatpush1.msra.mxu0 %v3535_v53 }
 0x125   :  { %730 = vmatprep.subr.mxu0 %v3541_v55 }
 0x126   :  { %731 = vmatpush1.msra.mxu0 %v3549_v58 }
 0x127   :  { %732 = vmatprep.subr.mxu0 %v3555_v60 }
 0x128   :  { %733 = vmatpush1.msra.mxu0 %v3563_v63 }
 0x129   :  { %734 = vmatprep.subr.mxu0 %v3569_v2 }
 0x12a   :  { %735 = vmatpush1.msra.mxu0 %v3575_v13 }
 0x12b   :  { %736 = vmatprep.subr.mxu0 %v3581_v26 }
 0x12c   :  { %737 = vmatpush1.msra.mxu0 %v3587_v32 }
 0x12d   :  { %738 = vmatprep.subr.mxu0 %v3593_v34 }
 0x12e   :  { %739 = vmatpush1.msra.mxu0 %v3599_v36 }
 0x12f   :  { %v3165_v48 = vpop.eup %3164  ;;  %740 = vmatprep.subr.mxu0 %v3605_v38 }
 0x130   :  { %324 = vrot.lane.b32.xlu0 %v3165_v48, %s3349_s15  ;;  %741 = vmatpush1.msra.mxu0 %v3611_v40 }
 0x131   :  { %937 = vmatprep.subr.mxu0 %v3429_v3 }
 0x134   :  { %105 = vperm.xlu0 %3158, %v90_v49   ;;  %v331_v49 = vmul.f32 %v3521_v44, %v329_v46 }
 0x1a2   :  { %v325_v48 = vpop.permute.xlu0 %324 }
 0x1a3   :  { %v327_v21 = vmul.f32 %v325_v48, %v322_v47 }
 0x1a5   :  { %v3640_v1 = vadd.f32 %v331_v49, %v327_v21 }
 0x1a7   :  { %362 = vrot.lane.b32.xlu1 %v3640_v1, %s3349_s15 }
 0x1af   :  { %v106_v21 = vpop.permute.xlu0 %105 }
 0x1b0   :  { %v151_v44 = vmul.f32 %v3499_v27, %v106_v21  ;;  %v152_v46 = vmul.f32 %v3502_v28, %v106_v21  ;;  %v349_v21 = vld [vmem:[%s4334_s6] sm:$0x3] }
 0x1b2   :  { %v179_v47 = vadd.f32 %v3505_v29, %v151_v44  ;;  %v180_v48 = vadd.f32 %v3508_v30, %v152_v46  ;;  %v354_v44 = vrot.slane %v349_v21, %v3487_v23 }
 0x1b4   :  { %197 = vst.msk [vmem:[#allocation4 + $0x18] sm:$0xff] %vm86_vm0, %v180_v48 }
 0x219   :  { %v363_v49 = vpop.permute.xlu1 %362 }
 0x21a   :  { %3094 = vmatmul.mubr.msk.f32.vlgmr.msra.gmra.mxu1 %vm86_vm0, %v363_v49 }
 0x21b   :  { %597 = vmatpush1.msra.mxu1 %v3431_v4  ;;  %644 = vmatprep.mubr.f32.mxu1 %v4407_v22 }
 0x21c   :  { %598 = vmatprep.subr.mxu1 %v3433_v5 }
 0x21d   :  { %599 = vmatpush1.msra.mxu1 %v3436_v6 }
 0x21e   :  { %600 = vmatprep.subr.mxu1 %v3439_v7 }
 0x21f   :  { %601 = vmatpush1.msra.mxu1 %v3442_v8 }
 0x220   :  { %602 = vmatprep.subr.mxu1 %v3445_v9 }
 0x221   :  { %603 = vmatpush1.msra.mxu1 %v3448_v10 }
 0x222   :  { %604 = vmatprep.subr.mxu1 %v3454_v12 }
 0x223   :  { %605 = vmatpush1.msra.mxu1 %v3457_v14 }
 0x224   :  { %606 = vmatprep.subr.mxu1 %v3461_v15 }
 0x225   :  { %607 = vmatpush1.msra.mxu1 %v3464_v16 }
 0x226   :  { %608 = vmatprep.subr.mxu1 %v3467_v17 }
 0x227   :  { %609 = vmatpush1.msra.mxu1 %v3470_v18 }
 0x228   :  { %610 = vmatprep.subr.mxu1 %v3473_v19 }
 0x229   :  { %611 = vmatpush1.msra.mxu1 %v3476_v20 }
 0x22a   :  { %3098 = vmatmul.mubr.msk.f32.vlgmr.msra.gmra.mxu1 %vm86_vm0, %v363_v49  ;;  %815 = vmatprep.subr.mxu1 %v3537_v54  ;;  %v522_v49 = vpop.f32.mrf.mxu0 }
 0x22b   :  { %816 = vmatpush1.msra.mxu1 %v3543_v56  ;;  %863 = vmatprep.mubr.f32.mxu1 %v4407_v22 }
 0x22c   :  { %817 = vmatprep.subr.mxu1 %v3545_v57  ;;  %v524_v60 = vpop.f32.mrf.mxu0 }
 0x22d   :  { %818 = vmatpush1.msra.mxu1 %v3551_v59 }
 0x22e   :  { %819 = vmatprep.subr.mxu1 %v3557_v61 }
 0x22f   :  { %820 = vmatpush1.msra.mxu1 %v3559_v62 }
 0x230   :  { %821 = vmatprep.subr.mxu1 %v3565_v0 }
 0x231   :  { %822 = vmatpush1.msra.mxu1 %v3571_v11 }
 0x232   :  { %823 = vmatprep.subr.mxu1 %v3577_v25 }
 0x233   :  { %824 = vmatpush1.msra.mxu1 %v3583_v31 }
 0x234   :  { %825 = vmatprep.subr.mxu1 %v3589_v33 }
 0x235   :  { %826 = vmatpush1.msra.mxu1 %v3595_v35 }
 0x236   :  { %827 = vmatprep.subr.mxu1 %v3601_v37 }
 0x237   :  { %828 = vmatpush1.msra.mxu1 %v3607_v39 }
 0x238   :  { %829 = vmatprep.subr.mxu1 %v3619_v41 }
 0x239   :  { %830 = vmatpush1.msra.mxu1 %v3622_v43 }
 0x23a   :  { %1067 = vmatprep.subr.mxu1 %v3528_v50 }
 0x2da   :  { %v432_v46 = vpop.f32.mrf.mxu1 }
 0x2db   :  { %v433_v48 = vadd.f32 %v432_v46, %v354_v44  ;;  %v3701_v44 = vld [vmem:[%s4336_s8] ss:$0 sm:$0xff] }
 0x2dc   :  { %v434_v38 = vpop.f32.mrf.mxu1  ;;  %4408 = vst [vmem:[#allocation31_spill] sm:$0xff] %v3701_v44 }
 0x2dd   :  { %v527_v3 = vadd.f32 %v522_v49, %v433_v48 }
 0x2df   :  { %v3096_v40 = vmul.f32 -1.442695, %v527_v3  ;;  %v541_v3 = vadd.f32 %v3701_v44, %v524_v60 }
 0x2e1   :  { %3166 = vpow2.f32 %v3096_v40 }
 0x2ea   :  { %v646_v36 = vpop.f32.mrf.mxu1 }
 0x2eb   :  { %v651_v34 = vadd.f32 %v646_v36, %v179_v47  ;;  %v358_v36 = vrot.slane %v349_v21, %v3490_v24 }
 0x2ec   :  { %v648_v46 = vpop.f32.mrf.mxu1 }
 0x2ed   :  { %v3099_v32 = vmul.f32 -1.442695, %v651_v34 }
 0x2ee   :  { %v3167_v26 = vpop.eup %3166 }
 0x2ef   :  { %3168 = vpow2.f32 %v3099_v32  ;;  %v531_v13 = vadd.f32 1.0, %v3167_v26  ;;  %v665_v32 = vadd.f32 %v3518_v42, %v648_v46 }
 0x2f1   :  { %3170 = vrcp.f32 %v531_v13  ;;  %v563_v13 = vld [vmem:[#allocation4 + $0x18] sm:$0xff] }
 0x2fc   :  { %v3169_v2 = vpop.eup %3168 }
 0x2fd   :  { %v655_v63 = vadd.f32 1.0, %v3169_v2  ;;  %v435_v2 = vadd.f32 %v434_v38, %v358_v36  ;;  %v91_v38 = vld [vmem:[%s4328_s0 + $0x10] sm:$0xff] }
 0x2fe   :  { %v3171_v40 = vpop.eup %3170 }
 0x2ff   :  { %3172 = vrcp.f32 %v655_v63  ;;  %v542_v47 = vmul.f32 %v3171_v40, %v541_v3 }
 0x301   :  { %v543_v48 = vadd.f32 %v542_v47, %v435_v2 }
 0x30c   :  { %v3173_v34 = vpop.eup %3172 }
 0x30d   :  { %v666_v26 = vmul.f32 %v3173_v34, %v665_v32  ;;  %v669_v60 = vsub.f32 1.0, %v3173_v34  ;;  %v675_v21 = vmul.f32 %v3173_v34, %v3640_v1  ;;  %v545_v1 = vsub.f32 1.0, %v3171_v40 }
 0x30f   :  { %v667_v63 = vadd.f32 %v666_v26, %v563_v13 }
 0x311   :  { %3174 = vtanh.f32 %v667_v63 }
 0x312   :  { %3176 = vtanh.f32 %v543_v48 }
 0x31e   :  { %v3175_v49 = vpop.eup %3174 }
 0x31f   :  { %671 = vrot.lane.b32.xlu1 %v3175_v49, %s3349_s15  ;;  %v3177_v23 = vpop.eup %3176 }
 0x323   :  { %547 = vrot.lane.b32.xlu1 %v3177_v23, %s3349_s15 }
 0x391   :  { %v672_v44 = vpop.permute.xlu1 %671 }
 0x392   :  { %v674_v46 = vmul.f32 %v672_v44, %v669_v60 }
 0x394   :  { %v3709_v24 = vadd.f32 %v675_v21, %v674_v46 }
 0x395   :  { %v548_v23 = vpop.permute.xlu1 %547 }
 0x396   :  { %706 = vrot.lane.b32.xlu0 %v3709_v24, %s3349_s15 }
 0x39a   :  { %551 = vrot.lane.b32.xlu0 %v3625_v45, %s3349_s15  ;;  %v550_v45 = vmul.f32 %v548_v23, %v545_v1  ;;  %v693_v23 = vld [vmem:[%s4334_s6] sm:$0x3]  ;;  %v4420_v1 = vld [vmem:[#allocation19_spill] sm:$0xff] }
 0x39e   :  { %110 = vperm.xlu0 %3158, %v91_v38  }
 0x408   :  { %v707_v3 = vpop.permute.xlu0 %706 }
 0x409   :  { %3101 = vmatmul.mubr.msk.f32.vlgmr.msra.gmra.mxu0 %vm86_vm0, %v707_v3 }
 0x40a   :  { %938 = vmatpush1.msra.mxu0 %v3431_v4  ;;  %985 = vmatprep.mubr.f32.mxu0 %v4407_v22 }
 0x40b   :  { %939 = vmatprep.subr.mxu0 %v3433_v5 }
 0x40c   :  { %940 = vmatpush1.msra.mxu0 %v3436_v6  ;;  %v552_v44 = vpop.permute.xlu0 %551 }
 0x40d   :  { %941 = vmatprep.subr.mxu0 %v3439_v7  ;;  %v554_v36 = vmul.f32 %v3171_v40, %v552_v44  ;;  %v698_v44 = vrot.slane %v693_v23, %v4420_v1 }
 0x40e   :  { %942 = vmatpush1.msra.mxu0 %v3442_v8 }
 0x40f   :  { %v3725_v32 = vadd.f32 %v554_v36, %v550_v45  ;;  %943 = vmatprep.subr.mxu0 %v3445_v9 }
 0x410   :  { %944 = vmatpush1.msra.mxu0 %v3448_v10 }
 0x411   :  { %945 = vmatprep.subr.mxu0 %v3454_v12  ;;  %557 = vrot.lane.b32.xlu1 %v3725_v32, %s3349_s15 }
 0x412   :  { %946 = vmatpush1.msra.mxu0 %v3457_v14 }
 0x413   :  { %947 = vmatprep.subr.mxu0 %v3461_v15 }
 0x414   :  { %948 = vmatpush1.msra.mxu0 %v3464_v16 }
 0x415   :  { %949 = vmatprep.subr.mxu0 %v3467_v17 }
 0x416   :  { %950 = vmatpush1.msra.mxu0 %v3470_v18 }
 0x417   :  { %951 = vmatprep.subr.mxu0 %v3473_v19 }
 0x418   :  { %952 = vmatpush1.msra.mxu0 %v3476_v20 }
 0x419   :  { %3105 = vmatmul.mubr.msk.f32.vlgmr.msra.gmra.mxu0 %vm86_vm0, %v707_v3  ;;  %v111_v40 = vpop.permute.xlu0 %110  ;;  %1156 = vmatprep.subr.mxu0 %v3537_v54 }
 0x41a   :  { %v153_v34 = vmul.f32 %v3499_v27, %v111_v40  ;;  %v154_v26 = vmul.f32 %v3502_v28, %v111_v40  ;;  %1157 = vmatpush1.msra.mxu0 %v3543_v56  ;;  %1204 = vmatprep.mubr.f32.mxu0 %v4407_v22  ;;  %v4409_v56 = vld [vmem:[#allocation21_spill] sm:$0xff] }
 0x41b   :  { %1158 = vmatprep.subr.mxu0 %v3545_v57  ;;  %v4411_v57 = vld [vmem:[#allocation23_spill] sm:$0xff] }
 0x41c   :  { %v181_v47 = vadd.f32 %v3505_v29, %v153_v34  ;;  %v182_v13 = vadd.f32 %v3508_v30, %v154_v26  ;;  %1159 = vmatpush1.msra.mxu0 %v3551_v59  ;;  %v4412_v59 = vld [vmem:[#allocation24_spill] sm:$0xff] }
 0x41d   :  { %1160 = vmatprep.subr.mxu0 %v3557_v61  ;;  %v4413_v61 = vld [vmem:[#allocation25_spill] sm:$0xff] }
 0x41e   :  { %199 = vst.msk [vmem:[#allocation4 + $0x28] sm:$0xff] %vm86_vm0, %v182_v13  ;;  %1161 = vmatpush1.msra.mxu0 %v3559_v62  ;;  %v4414_v62 = vld [vmem:[#allocation26_spill] sm:$0xff] }
 0x41f   :  { %1162 = vmatprep.subr.mxu0 %v3565_v0  ;;  %v4415_v0 = vld [vmem:[#allocation27_spill] sm:$0xff] }
 0x420   :  { %1163 = vmatpush1.msra.mxu0 %v3571_v11  ;;  %v4416_v11 = vld [vmem:[#allocation28_spill] sm:$0xff] }
 0x421   :  { %1164 = vmatprep.subr.mxu0 %v3577_v25  ;;  %v4417_v25 = vld [vmem:[#allocation29_spill] sm:$0xff] }
 0x422   :  { %1165 = vmatpush1.msra.mxu0 %v3583_v31  ;;  %v4418_v31 = vld [vmem:[#allocation30_spill] sm:$0xff] }
 0x423   :  { %1166 = vmatprep.subr.mxu0 %v3589_v33  ;;  %v4419_v33 = vld [vmem:[#allocation17_spill] sm:$0xff] }
 0x424   :  { %1167 = vmatpush1.msra.mxu0 %v3595_v35 }
 0x425   :  { %1168 = vmatprep.subr.mxu0 %v3601_v37  ;;  %v904_v46 = vld [vmem:[#allocation4 + $0x28] sm:$0xff] }
 0x426   :  { %1169 = vmatpush1.msra.mxu0 %v3607_v39 }
 0x427   :  { %1170 = vmatprep.subr.mxu0 %v3619_v41 }
 0x428   :  { %1171 = vmatpush1.msra.mxu0 %v3622_v43 }
 0x429   :  { %1408 = vmatprep.subr.mxu0 %v3528_v50  ;;  %v4410_v50 = vld [vmem:[#allocation22_spill] sm:$0xff] }
 0x483   :  { %v558_v54 = vpop.permute.xlu1 %557 }
 0x484   :  { %560 = vst.msk [vmem:[#allocation5] sm:$0xff] %vm86_vm0, %v558_v54  ;;  %3102 = vmatmul.mubr.msk.f32.vlgmr.msra.gmra.mxu1 %vm86_vm0, %v558_v54  ;;  %v4421_v54 = vld [vmem:[#allocation20_spill] sm:$0xff] }
 0x485   :  { %1068 = vmatpush1.msra.mxu1 %v3530_v51  ;;  %1115 = vmatprep.mubr.f32.mxu1 %v4407_v22 }
 0x486   :  { %1069 = vmatprep.subr.mxu1 %v3532_v52 }
 0x487   :  { %1070 = vmatpush1.msra.mxu1 %v3535_v53 }
 0x488   :  { %1071 = vmatprep.subr.mxu1 %v3541_v55 }
 0x489   :  { %1072 = vmatpush1.msra.mxu1 %v3549_v58 }
 0x48a   :  { %1073 = vmatprep.subr.mxu1 %v4409_v56 }
 0x48b   :  { %1074 = vmatpush1.msra.mxu1 %v4410_v50 }
 0x48c   :  { %1075 = vmatprep.subr.mxu1 %v4411_v57 }
 0x48d   :  { %1076 = vmatpush1.msra.mxu1 %v4412_v59 }
 0x48e   :  { %1077 = vmatprep.subr.mxu1 %v4413_v61 }
 0x48f   :  { %1078 = vmatpush1.msra.mxu1 %v4414_v62 }
 0x490   :  { %1079 = vmatprep.subr.mxu1 %v4415_v0 }
 0x491   :  { %1080 = vmatpush1.msra.mxu1 %v4416_v11 }
 0x492   :  { %1081 = vmatprep.subr.mxu1 %v4417_v25 }
 0x493   :  { %1082 = vmatpush1.msra.mxu1 %v4418_v31 }
 0x494   :  { %1278 = vmatprep.subr.mxu1 %v4419_v33  ;;  %v702_v33 = vrot.slane %v693_v23, %v4421_v54 }
 0x4c9   :  { %v776_v35 = vpop.f32.mrf.mxu0 }
 0x4ca   :  { %v777_v45 = vadd.f32 %v776_v35, %v698_v44 }
 0x4cb   :  { %v778_v37 = vpop.f32.mrf.mxu0 }
 0x4d9   :  { %v987_v39 = vpop.f32.mrf.mxu0 }
 0x4da   :  { %v992_v41 = vadd.f32 %v987_v39, %v181_v47  ;;  %v4422_v39 = vld [vmem:[#allocation31_spill] sm:$0xff] }
 0x4db   :  { %v989_v48 = vpop.f32.mrf.mxu0 }
 0x4dc   :  { %v3106_v43 = vmul.f32 -1.442695, %v992_v41  ;;  %v1006_v49 = vadd.f32 %v3518_v42, %v989_v48 }
 0x4de   :  { %3178 = vpow2.f32 %v3106_v43 }
 0x4eb   :  { %v3179_v2 = vpop.eup %3178 }
 0x4ec   :  { %v996_v63 = vadd.f32 1.0, %v3179_v2  ;;  %v779_v2 = vadd.f32 %v778_v37, %v702_v33  ;;  %v92_v37 = vld [vmem:[%s4328_s0 + $0x18] sm:$0xff] }
 0x4ee   :  { %3180 = vrcp.f32 %v996_v63 }
 0x4fb   :  { %v3181_v60 = vpop.eup %3180 }
 0x4fc   :  { %v1007_v21 = vmul.f32 %v3181_v60, %v1006_v49  ;;  %v1010_v35 = vsub.f32 1.0, %v3181_v60 }
 0x4fe   :  { %v1008_v38 = vadd.f32 %v1007_v21, %v904_v46  ;;  %v1016_v46 = vmul.f32 %v3181_v60, %v3709_v24 }
 0x500   :  { %3182 = vtanh.f32 %v1008_v38 }
 0x50d   :  { %v3183_v3 = vpop.eup %3182 }
 0x50e   :  { %1012 = vrot.lane.b32.xlu1 %v3183_v3, %s3349_s15 }
 0x544   :  { %v865_v36 = vpop.f32.mrf.mxu1 }
 0x545   :  { %v870_v40 = vadd.f32 %v865_v36, %v777_v45 }
 0x546   :  { %v867_v13 = vpop.f32.mrf.mxu1 }
 0x547   :  { %v3103_v34 = vmul.f32 -1.442695, %v870_v40  ;;  %v884_v41 = vadd.f32 %v4422_v39, %v867_v13 }
 0x549   :  { %3184 = vpow2.f32 %v3103_v34 }
 0x556   :  { %v3185_v26 = vpop.eup %3184 }
 0x557   :  { %v874_v47 = vadd.f32 1.0, %v3185_v26 }
 0x559   :  { %3186 = vrcp.f32 %v874_v47  ;;  %v3854_v47 = vld [vmem:[#allocation7 + $0x78] sm:$0xff] }
 0x55a   :  { %4423 = vst [vmem:[#allocation21_spill] sm:$0xff] %v3854_v47 }
 0x566   :  { %v3187_v43 = vpop.eup %3186 }
 0x567   :  { %v885_v63 = vmul.f32 %v3187_v43, %v884_v41  ;;  %v888_v23 = vsub.f32 1.0, %v3187_v43  ;;  %v894_v45 = vmul.f32 %v3187_v43, %v3725_v32  ;;  %v1034_v32 = vld [vmem:[%s4334_s6] sm:$0x3] }
 0x569   :  { %v886_v48 = vadd.f32 %v885_v63, %v779_v2 }
 0x56b   :  { %3188 = vtanh.f32 %v886_v48  ;;  %v93_v48 = vld [vmem:[%s4328_s0 + $0x20] sm:$0xff] }
 0x578   :  { %v3189_v49 = vpop.eup %3188 }
 0x579   :  { %890 = vrot.lane.b32.xlu1 %v3189_v49, %s3349_s15  ;;  %v3866_v49 = vld [vmem:[#allocation12 + $0x78] sm:$0xff] }
 0x57d   :  { %115 = vperm.xlu1 %3159, %v92_v37   ;;  %v3882_v37 = vld [vmem:[#allocation12 + $0x48] sm:$0xff] }
 0x580   :  { %v1013_v21 = vpop.permute.xlu1 %1012 }
 0x581   :  { %v1015_v38 = vmul.f32 %v1013_v21, %v1010_v35  ;;  %v3868_v35 = vld [vmem:[#allocation12 + $0x70] sm:$0xff]  ;;  %v3870_v21 = vld [vmem:[#allocation12 + $0x68] sm:$0xff] }
 0x583   :  { %v3792_v3 = vadd.f32 %v1016_v46, %v1015_v38  ;;  %v3873_v46 = vld [vmem:[#allocation12 + $0x60] sm:$0xff]  ;;  %v3876_v38 = vld [vmem:[#allocation12 + $0x58] sm:$0xff] }
 0x585   :  { %1047 = vrot.lane.b32.xlu0 %v3792_v3, %s3349_s15 }
 0x5eb   :  { %v891_v44 = vpop.permute.xlu1 %890 }
 0x5ec   :  { %v893_v36 = vmul.f32 %v891_v44, %v888_v23  ;;  %v3885_v23 = vld [vmem:[#allocation12 + $0x40] sm:$0xff]  ;;  %v3888_v44 = vld [vmem:[#allocation12 + $0x38] sm:$0xff] }
 0x5ee   :  { %v3800_v40 = vadd.f32 %v894_v45, %v893_v36  ;;  %v3891_v45 = vld [vmem:[#allocation12 + $0x30] sm:$0xff]  ;;  %v3894_v36 = vld [vmem:[#allocation12 + $0x28] sm:$0xff] }
 0x5f0   :  { %897 = vrot.lane.b32.xlu0 %v3800_v40, %s3349_s15 }
 0x5f7   :  { %v1048_v24 = vpop.permute.xlu0 %1047 }
 0x5f8   :  { %3108 = vmatmul.mubr.msk.f32.vlgmr.msra.gmra.mxu1 %vm86_vm0, %v1048_v24 }
 0x5f9   :  { %1279 = vmatpush1.msra.mxu1 %v3431_v4  ;;  %1326 = vmatprep.mubr.f32.mxu1 %v4407_v22  ;;  %v116_v4 = vpop.permute.xlu1 %115 }
 0x5fa   :  { %1280 = vmatprep.subr.mxu1 %v3433_v5  ;;  %v155_v5 = vmul.f32 %v3499_v27, %v116_v4 }
 0x5fb   :  { %1281 = vmatpush1.msra.mxu1 %v3436_v6  ;;  %v156_v6 = vmul.f32 %v3502_v28, %v116_v4  ;;  %v3900_v4 = vld [vmem:[#allocation12 + $0x18] sm:$0xff] }
 0x5fc   :  { %1282 = vmatprep.subr.mxu1 %v3439_v7  ;;  %v183_v7 = vadd.f32 %v3505_v29, %v155_v5  ;;  %v3903_v5 = vld [vmem:[#allocation12 + $0x10] sm:$0xff] }
 0x5fd   :  { %1283 = vmatpush1.msra.mxu1 %v3442_v8  ;;  %v184_v8 = vadd.f32 %v3508_v30, %v156_v6  ;;  %v3906_v6 = vld [vmem:[#allocation12 + $0x8] sm:$0xff] }
 0x5fe   :  { %1284 = vmatprep.subr.mxu1 %v3445_v9 }
 0x5ff   :  { %1285 = vmatpush1.msra.mxu1 %v3448_v10  ;;  %201 = vst.msk [vmem:[#allocation4 + $0x38] sm:$0xff] %vm86_vm0, %v184_v8 }
 0x600   :  { %1286 = vmatprep.subr.mxu1 %v3454_v12 }
 0x601   :  { %1287 = vmatpush1.msra.mxu1 %v3457_v14 }
 0x602   :  { %1288 = vmatprep.subr.mxu1 %v3461_v15 }
 0x603   :  { %1289 = vmatpush1.msra.mxu1 %v3464_v16 }
 0x604   :  { %1290 = vmatprep.subr.mxu1 %v3467_v17 }
 0x605   :  { %1291 = vmatpush1.msra.mxu1 %v3470_v18 }
 0x606   :  { %1292 = vmatprep.subr.mxu1 %v3473_v19 }
 0x607   :  { %1293 = vmatpush1.msra.mxu1 %v3476_v20 }
 0x608   :  { %3112 = vmatmul.mubr.msk.f32.vlgmr.msra.gmra.mxu1 %vm86_vm0, %v1048_v24  ;;  %1497 = vmatprep.subr.mxu1 %v3866_v49  ;;  %v3897_v24 = vld [vmem:[#allocation12 + $0x20] sm:$0xff] }
 0x609   :  { %1545 = vmatprep.mubr.f32.mxu1 %v4407_v22  ;;  %1498 = vmatpush1.msra.mxu1 %v3868_v35 }
 0x60a   :  { %1499 = vmatprep.subr.mxu1 %v3870_v21 }
 0x60b   :  { %1500 = vmatpush1.msra.mxu1 %v3873_v46 }
 0x60c   :  { %1501 = vmatprep.subr.mxu1 %v3876_v38 }
 0x662   :  { %v898_v9 = vpop.permute.xlu0 %897 }
 0x663   :  { %901 = vst.msk [vmem:[#allocation5 + $0x8] sm:$0xff] %vm86_vm0, %v898_v9  ;;  %3109 = vmatmul.mubr.msk.f32.vlgmr.msra.gmra.mxu0 %vm86_vm0, %v898_v9 }
 0x664   :  { %1409 = vmatpush1.msra.mxu0 %v3530_v51  ;;  %1456 = vmatprep.mubr.f32.mxu0 %v4407_v22 }
 0x665   :  { %1410 = vmatprep.subr.mxu0 %v3532_v52  ;;  %v1245_v52 = vld [vmem:[#allocation4 + $0x38] sm:$0xff] }
 0x666   :  { %1411 = vmatpush1.msra.mxu0 %v3535_v53 }
 0x667   :  { %1412 = vmatprep.subr.mxu0 %v3541_v55 }
 0x668   :  { %1413 = vmatpush1.msra.mxu0 %v3549_v58 }
 0x669   :  { %1414 = vmatprep.subr.mxu0 %v4409_v56  ;;  %v1039_v56 = vrot.slane %v1034_v32, %v4420_v1 }
 0x66a   :  { %1415 = vmatpush1.msra.mxu0 %v4410_v50 }
 0x66b   :  { %1416 = vmatprep.subr.mxu0 %v4411_v57 }
 0x66c   :  { %1417 = vmatpush1.msra.mxu0 %v4412_v59 }
 0x66d   :  { %1418 = vmatprep.subr.mxu0 %v4413_v61 }
 0x66e   :  { %1419 = vmatpush1.msra.mxu0 %v4414_v62 }
 0x66f   :  { %1420 = vmatprep.subr.mxu0 %v4415_v0 }
 0x670   :  { %1421 = vmatpush1.msra.mxu0 %v4416_v11  ;;  %v1043_v11 = vrot.slane %v1034_v32, %v4421_v54  ;;  %v3952_v32 = vld [vmem:[#allocation7 + $0x18] sm:$0xff] }
 0x671   :  { %1422 = vmatprep.subr.mxu0 %v4417_v25 }
 0x672   :  { %1423 = vmatpush1.msra.mxu0 %v4418_v31 }
 0x673   :  { %1619 = vmatprep.subr.mxu0 %v3854_v47 }
 0x6b8   :  { %v1117_v10 = vpop.f32.mrf.mxu1 }
 0x6b9   :  { %v1118_v50 = vadd.f32 %v1117_v10, %v1039_v56  ;;  %v3955_v56 = vld [vmem:[#allocation7 + $0x10] sm:$0xff] }
 0x6ba   :  { %v1119_v12 = vpop.f32.mrf.mxu1 }
 0x6bb   :  { %v1120_v60 = vadd.f32 %v1119_v12, %v1043_v11 }
 0x6c8   :  { %v1328_v14 = vpop.f32.mrf.mxu1 }
 0x6c9   :  { %v1333_v15 = vadd.f32 %v1328_v14, %v183_v7  ;;  %v3909_v7 = vld [vmem:[#allocation12] sm:$0xff] }
 0x6ca   :  { %v1330_v19 = vpop.f32.mrf.mxu1 }
 0x6cb   :  { %v3113_v16 = vmul.f32 -1.442695, %v1333_v15  ;;  %v1347_v20 = vadd.f32 %v3518_v42, %v1330_v19  ;;  %v3919_v15 = vld [vmem:[#allocation7 + $0x70] sm:$0xff]  ;;  %v3927_v19 = vld [vmem:[#allocation7 + $0x58] sm:$0xff] }
 0x6cd   :  { %3190 = vpow2.f32 %v3113_v16 }
 0x6da   :  { %v3191_v17 = vpop.eup %3190 }
 0x6db   :  { %v1337_v18 = vadd.f32 1.0, %v3191_v17  ;;  %v3921_v17 = vld [vmem:[#allocation7 + $0x68] sm:$0xff] }
 0x6dd   :  { %3192 = vrcp.f32 %v1337_v18  ;;  %v3924_v18 = vld [vmem:[#allocation7 + $0x60] sm:$0xff] }
 0x6ea   :  { %v3193_v51 = vpop.eup %3192 }
 0x6eb   :  { %v1348_v53 = vmul.f32 %v3193_v51, %v1347_v20  ;;  %v1351_v33 = vsub.f32 1.0, %v3193_v51  ;;  %v1357_v43 = vmul.f32 %v3193_v51, %v3792_v3  ;;  %v3879_v3 = vld [vmem:[#allocation12 + $0x50] sm:$0xff]  ;;  %v3934_v20 = vld [vmem:[#allocation7 + $0x48] sm:$0xff]  ;;  %v3937_v51 = vld [vmem:[#allocation7 + $0x40] sm:$0xff] }
 0x6ec   :  { %1502 = vmatpush1.msra.mxu1 %v3879_v3 }
 0x6ed   :  { %v1349_v55 = vadd.f32 %v1348_v53, %v1245_v52  ;;  %1503 = vmatprep.subr.mxu1 %v3882_v37  ;;  %v3940_v52 = vld [vmem:[#allocation7 + $0x38] sm:$0xff]  ;;  %v3943_v53 = vld [vmem:[#allocation7 + $0x30] sm:$0xff] }
 0x6ee   :  { %1504 = vmatpush1.msra.mxu1 %v3885_v23 }
 0x6ef   :  { %3194 = vtanh.f32 %v1349_v55  ;;  %1505 = vmatprep.subr.mxu1 %v3888_v44  ;;  %v3946_v55 = vld [vmem:[#allocation7 + $0x28] sm:$0xff] }
 0x6f0   :  { %1506 = vmatpush1.msra.mxu1 %v3891_v45 }
 0x6f1   :  { %1507 = vmatprep.subr.mxu1 %v3894_v36 }
 0x6f2   :  { %1508 = vmatpush1.msra.mxu1 %v3897_v24 }
 0x6f3   :  { %1509 = vmatprep.subr.mxu1 %v3900_v4 }
 0x6f4   :  { %1510 = vmatpush1.msra.mxu1 %v3903_v5 }
 0x6f5   :  { %1511 = vmatprep.subr.mxu1 %v3906_v6 }
 0x6f6   :  { %1512 = vmatpush1.msra.mxu1 %v3909_v7 }
 0x6fc   :  { %v3195_v58 = vpop.eup %3194 }
 0x6fd   :  { %1353 = vrot.lane.b32.xlu0 %v3195_v58, %s3349_s15  ;;  %v3949_v58 = vld [vmem:[#allocation7 + $0x20] sm:$0xff] }
 0x723   :  { %v1206_v57 = vpop.f32.mrf.mxu0 }
 0x724   :  { %v1211_v59 = vadd.f32 %v1206_v57, %v1118_v50  ;;  %v3958_v50 = vld [vmem:[#allocation7 + $0x8] sm:$0xff] }
 0x725   :  { %v1208_v0 = vpop.f32.mrf.mxu0 }
 0x726   :  { %v3110_v61 = vmul.f32 -1.442695, %v1211_v59  ;;  %v1225_v25 = vadd.f32 %v4422_v39, %v1208_v0  ;;  %v3961_v59 = vld [vmem:[#allocation7] sm:$0xff] }
 0x728   :  { %3196 = vpow2.f32 %v3110_v61 }
 0x735   :  { %v3197_v42 = vpop.eup %3196 }
 0x736   :  { %v1215_v62 = vadd.f32 1.0, %v3197_v42 }
 0x738   :  { %3198 = vrcp.f32 %v1215_v62 }
 0x745   :  { %v3199_v31 = vpop.eup %3198 }
 0x746   :  { %v1226_v34 = vmul.f32 %v3199_v31, %v1225_v25  ;;  %v1229_v8 = vsub.f32 1.0, %v3199_v31  ;;  %v1235_v10 = vmul.f32 %v3199_v31, %v3800_v40  ;;  %v3931_v40 = vld [vmem:[#allocation7 + $0x50] sm:$0xff] }
 0x748   :  { %v1227_v26 = vadd.f32 %v1226_v34, %v1120_v60 }
 0x74a   :  { %3200 = vtanh.f32 %v1227_v26 }
 0x757   :  { %v3201_v13 = vpop.eup %3200 }
 0x758   :  { %1231 = vrot.lane.b32.xlu1 %v3201_v13, %s3349_s15 }
 0x76f   :  { %v1354_v41 = vpop.permute.xlu0 %1353 }
 0x770   :  { %v1356_v2 = vmul.f32 %v1354_v41, %v1351_v33 }
 0x772   :  { %v3859_v63 = vadd.f32 %v1357_v43, %v1356_v2  ;;  %v3995_v43 = vld [vmem:[%s4332_s4] ss:$0 sm:$0xff] }
 0x773   :  { %4424 = vst [vmem:[#allocation22_spill] sm:$0xff] %v3995_v43 }
 0x774   :  { %1388 = vrot.lane.b32.xlu0 %v3859_v63, %s3349_s15 }
 0x778   :  { %120 = vperm.xlu0 %3158, %v93_v48  }
 0x7ca   :  { %v1232_v9 = vpop.permute.xlu1 %1231 }
 0x7cb   :  { %v1234_v12 = vmul.f32 %v1232_v9, %v1229_v8 }
 0x7cd   :  { %v3915_v14 = vadd.f32 %v1235_v10, %v1234_v12 }
 0x7cf   :  { %1238 = vrot.lane.b32.xlu1 %v3915_v14, %s3349_s15 }
 0x7e6   :  { %v1389_v16 = vpop.permute.xlu0 %1388 }
 0x7e7   :  { %3115 = vmatmul.mubr.msk.f32.vlgmr.msra.gmra.mxu0 %vm86_vm0, %v1389_v16 }
 0x7e8   :  { %1620 = vmatpush1.msra.mxu0 %v3919_v15  ;;  %1667 = vmatprep.mubr.f32.mxu0 %v4407_v22 }
 0x7e9   :  { %1621 = vmatprep.subr.mxu0 %v3921_v17 }
 0x7ea   :  { %1622 = vmatpush1.msra.mxu0 %v3924_v18 }
 0x7eb   :  { %1623 = vmatprep.subr.mxu0 %v3927_v19 }
 0x7ec   :  { %1624 = vmatpush1.msra.mxu0 %v3931_v40 }
 0x7ed   :  { %1625 = vmatprep.subr.mxu0 %v3934_v20 }
 0x7ee   :  { %1626 = vmatpush1.msra.mxu0 %v3937_v51 }
 0x7ef   :  { %1627 = vmatprep.subr.mxu0 %v3940_v52 }
 0x7f0   :  { %1628 = vmatpush1.msra.mxu0 %v3943_v53 }
 0x7f1   :  { %1629 = vmatprep.subr.mxu0 %v3946_v55 }
 0x7f2   :  { %1630 = vmatpush1.msra.mxu0 %v3949_v58 }
 0x7f3   :  { %1631 = vmatprep.subr.mxu0 %v3952_v32  ;;  %v121_v57 = vpop.permute.xlu0 %120 }
 0x7f4   :  { %1632 = vmatpush1.msra.mxu0 %v3955_v56  ;;  %v157_v61 = vmul.f32 %v3499_v27, %v121_v57  ;;  %v158_v42 = vmul.f32 %v3502_v28, %v121_v57 }
 0x7f5   :  { %1633 = vmatprep.subr.mxu0 %v3958_v50 }
 0x7f6   :  { %v185_v62 = vadd.f32 %v3505_v29, %v157_v61  ;;  %v186_v0 = vadd.f32 %v3508_v30, %v158_v42  ;;  %1634 = vmatpush1.msra.mxu0 %v3961_v59 }
 0x7f7   :  { %3119 = vmatmul.mubr.msk.f32.vlgmr.msra.gmra.mxu0 %vm86_vm0, %v1389_v16  ;;  %1838 = vmatprep.subr.mxu0 %v3866_v49  ;;  %v1375_v16 = vld [vmem:[%s4334_s6] sm:$0x3] }
 0x7f8   :  { %203 = vst.msk [vmem:[#allocation4 + $0x48] sm:$0xff] %vm86_vm0, %v186_v0  ;;  %1839 = vmatpush1.msra.mxu0 %v3868_v35  ;;  %1886 = vmatprep.mubr.f32.mxu0 %v4407_v22  ;;  %v1380_v57 = vrot.slane %v1375_v16, %v4420_v1  ;;  %v94_v1 = vld [vmem:[%s4328_s0 + $0x28] sm:$0xff] }
 0x7f9   :  { %1840 = vmatprep.subr.mxu0 %v3870_v21 }
 0x7fa   :  { %1841 = vmatpush1.msra.mxu0 %v3873_v46 }
 0x7fb   :  { %1842 = vmatprep.subr.mxu0 %v3876_v38 }
 0x7fc   :  { %1843 = vmatpush1.msra.mxu0 %v3879_v3 }
 0x7fd   :  { %1844 = vmatprep.subr.mxu0 %v3882_v37 }
 0x7fe   :  { %1845 = vmatpush1.msra.mxu0 %v3885_v23 }
 0x7ff   :  { %1846 = vmatprep.subr.mxu0 %v3888_v44  ;;  %v1586_v9 = vld [vmem:[#allocation4 + $0x48] sm:$0xff] }
 0x800   :  { %1847 = vmatpush1.msra.mxu0 %v3891_v45 }
 0x801   :  { %1848 = vmatprep.subr.mxu0 %v3894_v36 }
 0x802   :  { %1849 = vmatpush1.msra.mxu0 %v3897_v24 }
 0x803   :  { %1850 = vmatprep.subr.mxu0 %v3900_v4 }
 0x804   :  { %1851 = vmatpush1.msra.mxu0 %v3903_v5 }
 0x805   :  { %1852 = vmatprep.subr.mxu0 %v3906_v6 }
 0x806   :  { %1853 = vmatpush1.msra.mxu0 %v3909_v7 }
 0x841   :  { %v1239_v11 = vpop.permute.xlu1 %1238 }
 0x842   :  { %1242 = vst.msk [vmem:[#allocation5 + $0x10] sm:$0xff] %vm86_vm0, %v1239_v11  ;;  %3116 = vmatmul.mubr.msk.f32.vlgmr.msra.gmra.mxu1 %vm86_vm0, %v1239_v11 }
 0x843   :  { %1797 = vmatprep.mubr.f32.mxu1 %v4407_v22 }
 0x8a7   :  { %v1458_v25 = vpop.f32.mrf.mxu0 }
 0x8a8   :  { %v1459_v61 = vadd.f32 %v1458_v25, %v1380_v57  ;;  %v4010_v25 = vld [vmem:[#allocation10 + $0x70] sm:$0xff]  ;;  %v4028_v57 = vld [vmem:[#allocation10 + $0x40] sm:$0xff] }
 0x8a9   :  { %v1460_v31 = vpop.f32.mrf.mxu0 }
 0x8b7   :  { %v1669_v60 = vpop.f32.mrf.mxu0 }
 0x8b8   :  { %v1674_v34 = vadd.f32 %v1669_v60, %v185_v62 }
 0x8b9   :  { %v1671_v41 = vpop.f32.mrf.mxu0 }
 0x8ba   :  { %v3120_v26 = vmul.f32 -1.442695, %v1674_v34  ;;  %v1688_v2 = vadd.f32 %v3995_v43, %v1671_v41 }
 0x8bc   :  { %3202 = vpow2.f32 %v3120_v26  ;;  %v1384_v26 = vrot.slane %v1375_v16, %v4421_v54  ;;  %v4025_v16 = vld [vmem:[#allocation10 + $0x48] sm:$0xff] }
 0x8be   :  { %v1461_v41 = vadd.f32 %v1460_v31, %v1384_v26  ;;  %v4022_v31 = vld [vmem:[#allocation10 + $0x50] sm:$0xff]  ;;  %v4050_v26 = vld [vmem:[#allocation10 + $0x8] sm:$0xff] }
 0x8bf   :  { %4431 = vst [vmem:[#allocation29_spill] sm:$0xff] %v4050_v26 }
 0x8c9   :  { %v3203_v13 = vpop.eup %3202 }
 0x8ca   :  { %v1678_v33 = vadd.f32 1.0, %v3203_v13 }
 0x8cc   :  { %3204 = vrcp.f32 %v1678_v33 }
 0x8d9   :  { %v3998_v48 = vpop.eup %3204 }
 0x8da   :  { %v1689_v8 = vmul.f32 %v3998_v48, %v1688_v2 }
 0x8dc   :  { %v1690_v10 = vadd.f32 %v1689_v8, %v1586_v9  ;;  %v4008_v9 = vld [vmem:[#allocation10 + $0x78] sm:$0xff] }
 0x8dd   :  { %1749 = vmatprep.subr.mxu1 %v4008_v9  ;;  %2090 = vmatprep.subr.mxu0 %v4008_v9 }
 0x8de   :  { %3206 = vtanh.f32 %v1690_v10  ;;  %v4012_v10 = vld [vmem:[#allocation10 + $0x68] sm:$0xff]  ;;  %1750 = vmatpush1.msra.mxu1 %v4010_v25 }
 0x8df   :  { %1751 = vmatprep.subr.mxu1 %v4012_v10 }
 0x8eb   :  { %v3207_v12 = vpop.eup %3206 }
 0x8ec   :  { %1694 = vrot.lane.b32.xlu1 %v3207_v12, %s3349_s15  ;;  %v4015_v12 = vld [vmem:[#allocation10 + $0x60] sm:$0xff] }
 0x8ed   :  { %1752 = vmatpush1.msra.mxu1 %v4015_v12 }
 0x902   :  { %v1547_v42 = vpop.f32.mrf.mxu1 }
 0x903   :  { %v1552_v62 = vadd.f32 %v1547_v42, %v1459_v61  ;;  %v4031_v61 = vld [vmem:[#allocation10 + $0x38] sm:$0xff]  ;;  %v4034_v42 = vld [vmem:[#allocation10 + $0x30] sm:$0xff] }
 0x904   :  { %v1549_v34 = vpop.f32.mrf.mxu1  ;;  %4425 = vst [vmem:[#allocation23_spill] sm:$0xff] %v4031_v61  ;;  %4426 = vst [vmem:[#allocation24_spill] sm:$0xff] %v4034_v42 }
 0x905   :  { %v3117_v0 = vmul.f32 -1.442695, %v1552_v62  ;;  %v1566_v13 = vadd.f32 %v4422_v39, %v1549_v34  ;;  %v4019_v39 = vld [vmem:[#allocation10 + $0x58] sm:$0xff]  ;;  %v4047_v34 = vld [vmem:[#allocation10 + $0x10] sm:$0xff] }
 0x906   :  { %1753 = vmatprep.subr.mxu1 %v4019_v39  ;;  %4430 = vst [vmem:[#allocation28_spill] sm:$0xff] %v4047_v34 }
 0x907   :  { %3208 = vpow2.f32 %v3117_v0  ;;  %1754 = vmatpush1.msra.mxu1 %v4022_v31  ;;  %v4037_v0 = vld [vmem:[#allocation10 + $0x28] sm:$0xff] }
 0x908   :  { %1755 = vmatprep.subr.mxu1 %v4025_v16  ;;  %4427 = vst [vmem:[#allocation25_spill] sm:$0xff] %v4037_v0 }
 0x909   :  { %1756 = vmatpush1.msra.mxu1 %v4028_v57 }
 0x90a   :  { %1757 = vmatprep.subr.mxu1 %v4031_v61 }
 0x90b   :  { %1758 = vmatpush1.msra.mxu1 %v4034_v42 }
 0x90c   :  { %1759 = vmatprep.subr.mxu1 %v4037_v0 }
 0x914   :  { %v3209_v11 = vpop.eup %3208 }
 0x915   :  { %v1556_v60 = vadd.f32 1.0, %v3209_v11  ;;  %v4041_v11 = vld [vmem:[#allocation10 + $0x20] sm:$0xff] }
 0x916   :  { %4428 = vst [vmem:[#allocation26_spill] sm:$0xff] %v4041_v11  ;;  %1760 = vmatpush1.msra.mxu1 %v4041_v11 }
 0x917   :  { %3210 = vrcp.f32 %v1556_v60  ;;  %v4044_v60 = vld [vmem:[#allocation10 + $0x18] sm:$0xff] }
 0x918   :  { %4429 = vst [vmem:[#allocation27_spill] sm:$0xff] %v4044_v60  ;;  %1761 = vmatprep.subr.mxu1 %v4044_v60 }
 0x919   :  { %1762 = vmatpush1.msra.mxu1 %v4047_v34 }
 0x91a   :  { %1763 = vmatprep.subr.mxu1 %v4050_v26 }
 0x924   :  { %v3211_v33 = vpop.eup %3210 }
 0x925   :  { %v1567_v2 = vmul.f32 %v3211_v33, %v1566_v13  ;;  %v4053_v13 = vld [vmem:[#allocation10] sm:$0xff]  ;;  %v1570_v43 = vsub.f32 1.0, %v3211_v33 }
 0x926   :  { %4432 = vst [vmem:[#allocation30_spill] sm:$0xff] %v4053_v13  ;;  %1764 = vmatpush1.msra.mxu1 %v4053_v13 }
 0x927   :  { %v1568_v8 = vadd.f32 %v1567_v2, %v1461_v41  ;;  %1960 = vmatprep.subr.mxu1 %v3854_v47  ;;  %v1692_v41 = vsub.f32 1.0, %v3998_v48  ;;  %v1576_v47 = vmul.f32 %v3211_v33, %v3915_v14 }
 0x929   :  { %3212 = vtanh.f32 %v1568_v8  ;;  %v1698_v8 = vmul.f32 %v3998_v48, %v3859_v63 }
 0x936   :  { %v3213_v62 = vpop.eup %3212 }
 0x937   :  { %1572 = vrot.lane.b32.xlu0 %v3213_v62, %s3349_s15 }
 0x95e   :  { %v1695_v2 = vpop.permute.xlu1 %1694 }
 0x95f   :  { %v1697_v62 = vmul.f32 %v1695_v2, %v1692_v41  ;;  %v4435_v41 = vld [vmem:[#allocation30_spill] sm:$0xff]  ;;  %v4436_v2 = vld [vmem:[#allocation21_spill] sm:$0xff] }
 0x961   :  { %v4062_v54 = vadd.f32 %v1698_v8, %v1697_v62 }
 0x963   :  { %1729 = vrot.lane.b32.xlu1 %v4062_v54, %s3349_s15 }
 0x967   :  { %125 = vperm.xlu1 %3159, %v94_v1  }
 0x9a9   :  { %v1573_v13 = vpop.permute.xlu0 %1572 }
 0x9aa   :  { %v1575_v26 = vmul.f32 %v1573_v13, %v1570_v43  ;;  %v4434_v13 = vld [vmem:[#allocation29_spill] sm:$0xff] }
 0x9ac   :  { %v4070_v34 = vadd.f32 %v1576_v47, %v1575_v26  ;;  %v4433_v26 = vld [vmem:[#allocation28_spill] sm:$0xff] }
 0x9ae   :  { %1579 = vrot.lane.b32.xlu0 %v4070_v34, %s3349_s15 }
 0x9d5   :  { %v1730_v63 = vpop.permute.xlu1 %1729 }
 0x9d6   :  { %3122 = vmatmul.mubr.msk.f32.vlgmr.msra.gmra.mxu1 %vm86_vm0, %v1730_v63 }
 0x9d7   :  { %1961 = vmatpush1.msra.mxu1 %v3919_v15  ;;  %2008 = vmatprep.mubr.f32.mxu1 %v4407_v22 }
 0x9d8   :  { %1962 = vmatprep.subr.mxu1 %v3921_v17 }
 0x9d9   :  { %1963 = vmatpush1.msra.mxu1 %v3924_v18 }
 0x9da   :  { %1964 = vmatprep.subr.mxu1 %v3927_v19 }
 0x9db   :  { %1965 = vmatpush1.msra.mxu1 %v3931_v40 }
 0x9dc   :  { %1966 = vmatprep.subr.mxu1 %v3934_v20 }
 0x9dd   :  { %1967 = vmatpush1.msra.mxu1 %v3937_v51 }
 0x9de   :  { %1968 = vmatprep.subr.mxu1 %v3940_v52 }
 0x9df   :  { %1969 = vmatpush1.msra.mxu1 %v3943_v53 }
 0x9e0   :  { %1970 = vmatprep.subr.mxu1 %v3946_v55 }
 0x9e1   :  { %1971 = vmatpush1.msra.mxu1 %v3949_v58 }
 0x9e2   :  { %1972 = vmatprep.subr.mxu1 %v3952_v32  ;;  %v126_v1 = vpop.permute.xlu1 %125 }
 0x9e3   :  { %1973 = vmatpush1.msra.mxu1 %v3955_v56  ;;  %v159_v47 = vmul.f32 %v3499_v27, %v126_v1  ;;  %v160_v14 = vmul.f32 %v3502_v28, %v126_v1 }
 0x9e4   :  { %1974 = vmatprep.subr.mxu1 %v3958_v50 }
 0x9e5   :  { %v187_v43 = vadd.f32 %v3505_v29, %v159_v47  ;;  %v188_v48 = vadd.f32 %v3508_v30, %v160_v14  ;;  %1975 = vmatpush1.msra.mxu1 %v3961_v59 }
 0x9e6   :  { %3126 = vmatmul.mubr.msk.f32.vlgmr.msra.gmra.mxu1 %vm86_vm0, %v1730_v63  ;;  %2179 = vmatprep.subr.mxu1 %v3866_v49 }
 0x9e7   :  { %205 = vst.msk [vmem:[#allocation4 + $0x58] sm:$0xff] %vm86_vm0, %v188_v48  ;;  %2180 = vmatpush1.msra.mxu1 %v3868_v35  ;;  %2227 = vmatprep.mubr.f32.mxu1 %v4407_v22 }
 0x9e8   :  { %2181 = vmatprep.subr.mxu1 %v3870_v21 }
 0x9e9   :  { %2182 = vmatpush1.msra.mxu1 %v3873_v46 }
 0x9ea   :  { %2183 = vmatprep.subr.mxu1 %v3876_v38 }
 0x9eb   :  { %2184 = vmatpush1.msra.mxu1 %v3879_v3 }
 0x9ec   :  { %2185 = vmatprep.subr.mxu1 %v3882_v37 }
 0x9ed   :  { %2186 = vmatpush1.msra.mxu1 %v3885_v23 }
 0x9ee   :  { %2187 = vmatprep.subr.mxu1 %v3888_v44 }
 0x9ef   :  { %2188 = vmatpush1.msra.mxu1 %v3891_v45 }
 0x9f0   :  { %2189 = vmatprep.subr.mxu1 %v3894_v36 }
 0x9f1   :  { %2190 = vmatpush1.msra.mxu1 %v3897_v24 }
 0x9f2   :  { %2191 = vmatprep.subr.mxu1 %v3900_v4 }
 0x9f3   :  { %2192 = vmatpush1.msra.mxu1 %v3903_v5 }
 0x9f4   :  { %2193 = vmatprep.subr.mxu1 %v3906_v6 }
 0x9f5   :  { %2194 = vmatpush1.msra.mxu1 %v3909_v7 }
 0x9f6   :  { %2431 = vmatprep.subr.mxu1 %v4008_v9 }
 0xa20   :  { %v1580_v33 = vpop.permute.xlu0 %1579 }
 0xa21   :  { %1583 = vst.msk [vmem:[#allocation5 + $0x18] sm:$0xff] %vm86_vm0, %v1580_v33  ;;  %3123 = vmatmul.mubr.msk.f32.vlgmr.msra.gmra.mxu0 %vm86_vm0, %v1580_v33 }
 0xa22   :  { %2091 = vmatpush1.msra.mxu0 %v4010_v25  ;;  %2138 = vmatprep.mubr.f32.mxu0 %v4407_v22 }
 0xa23   :  { %2092 = vmatprep.subr.mxu0 %v4012_v10 }
 0xa24   :  { %2093 = vmatpush1.msra.mxu0 %v4015_v12 }
 0xa25   :  { %2094 = vmatprep.subr.mxu0 %v4019_v39 }
 0xa26   :  { %2095 = vmatpush1.msra.mxu0 %v4022_v31 }
 0xa27   :  { %2096 = vmatprep.subr.mxu0 %v4025_v16 }
 0xa28   :  { %2097 = vmatpush1.msra.mxu0 %v4028_v57 }
 0xa29   :  { %2098 = vmatprep.subr.mxu0 %v4031_v61 }
 0xa2a   :  { %2099 = vmatpush1.msra.mxu0 %v4034_v42  ;;  %v1927_v42 = vld [vmem:[#allocation4 + $0x58] sm:$0xff] }
 0xa2b   :  { %2100 = vmatprep.subr.mxu0 %v4037_v0 }
 0xa2c   :  { %2101 = vmatpush1.msra.mxu0 %v4041_v11  ;;  %v4437_v11 = vld [vmem:[#allocation22_spill] sm:$0xff] }
 0xa2d   :  { %2102 = vmatprep.subr.mxu0 %v4044_v60 }
 0xa2e   :  { %2103 = vmatpush1.msra.mxu0 %v4433_v26 }
 0xa2f   :  { %2104 = vmatprep.subr.mxu0 %v4434_v13 }
 0xa30   :  { %2105 = vmatpush1.msra.mxu0 %v4435_v41 }
 0xa31   :  { %2301 = vmatprep.subr.mxu0 %v4436_v2  ;;  %v1716_v2 = vld [vmem:[%s4334_s6] sm:$0x3] }
 0xa96   :  { %v1799_v8 = vpop.f32.mrf.mxu1 }
 0xa98   :  { %v1801_v62 = vpop.f32.mrf.mxu1 }
 0xaa6   :  { %v2010_v63 = vpop.f32.mrf.mxu1 }
 0xaa7   :  { %v2015_v1 = vadd.f32 %v2010_v63, %v187_v43  ;;  %v4438_v43 = vld [vmem:[#allocation19_spill] sm:$0xff] }
 0xaa8   :  { %v2012_v33 = vpop.f32.mrf.mxu1  ;;  %v1721_v63 = vrot.slane %v1716_v2, %v4438_v43 }
 0xaa9   :  { %v3127_v47 = vmul.f32 -1.442695, %v2015_v1  ;;  %v2029_v60 = vadd.f32 %v4437_v11, %v2012_v33 }
 0xaaa   :  { %v1800_v1 = vadd.f32 %v1799_v8, %v1721_v63 }
 0xaab   :  { %3214 = vpow2.f32 %v3127_v47 }
 0xab8   :  { %v3215_v14 = vpop.eup %3214 }
 0xab9   :  { %v2019_v48 = vadd.f32 1.0, %v3215_v14 }
 0xabb   :  { %3216 = vrcp.f32 %v2019_v48 }
 0xac8   :  { %v3217_v0 = vpop.eup %3216 }
 0xac9   :  { %v2030_v26 = vmul.f32 %v3217_v0, %v2029_v60 }
 0xacb   :  { %v2031_v13 = vadd.f32 %v2030_v26, %v1927_v42  ;;  %v4143_v42 = vld [vmem:[%s4336_s8] ss:$0 sm:$0xff]  ;;  %v4439_v26 = vld [vmem:[#allocation20_spill] sm:$0xff] }
 0xacd   :  { %3218 = vtanh.f32 %v2031_v13  ;;  %v1725_v13 = vrot.slane %v1716_v2, %v4439_v26  ;;  %v95_v2 = vld [vmem:[%s4328_s0 + $0x30] sm:$0xff] }
 0xacf   :  { %v1802_v43 = vadd.f32 %v1801_v62, %v1725_v13 }
 0xada   :  { %v3219_v41 = vpop.eup %3218 }
 0xadb   :  { %2035 = vrot.lane.b32.xlu0 %v3219_v41, %s3349_s15 }
 0xae1   :  { %v1888_v47 = vpop.f32.mrf.mxu0 }
 0xae2   :  { %v1893_v14 = vadd.f32 %v1888_v47, %v1800_v1  ;;  %v2033_v47 = vsub.f32 1.0, %v3217_v0 }
 0xae3   :  { %v1890_v60 = vpop.f32.mrf.mxu0 }
 0xae4   :  { %v3124_v48 = vmul.f32 -1.442695, %v1893_v14  ;;  %v1907_v41 = vadd.f32 %v4143_v42, %v1890_v60  ;;  %v2039_v14 = vmul.f32 %v3217_v0, %v4062_v54 }
 0xae6   :  { %3220 = vpow2.f32 %v3124_v48 }
 0xaf3   :  { %v3221_v33 = vpop.eup %3220 }
 0xaf4   :  { %v1897_v11 = vadd.f32 1.0, %v3221_v33 }
 0xaf6   :  { %3222 = vrcp.f32 %v1897_v11 }
 0xb03   :  { %v3223_v61 = vpop.eup %3222 }
 0xb04   :  { %v1908_v8 = vmul.f32 %v3223_v61, %v1907_v41  ;;  %v1911_v62 = vsub.f32 1.0, %v3223_v61  ;;  %v1917_v60 = vmul.f32 %v3223_v61, %v4070_v34 }
 0xb06   :  { %v1909_v63 = vadd.f32 %v1908_v8, %v1802_v43 }
 0xb08   :  { %3224 = vtanh.f32 %v1909_v63 }
 0xb15   :  { %v3225_v1 = vpop.eup %3224 }
 0xb16   :  { %1913 = vrot.lane.b32.xlu1 %v3225_v1, %s3349_s15 }
 0xb4d   :  { %v2036_v11 = vpop.permute.xlu0 %2035 }
 0xb4e   :  { %v2038_v48 = vmul.f32 %v2036_v11, %v2033_v47  ;;  %v4449_v47 = vld [vmem:[#allocation22_spill] sm:$0xff] }
 0xb50   :  { %v4149_v33 = vadd.f32 %v2039_v14, %v2038_v48  ;;  %v2057_v48 = vld [vmem:[%s4334_s6] sm:$0x3] }
 0xb52   :  { %2070 = vrot.lane.b32.xlu0 %v4149_v33, %s3349_s15 }
 0xb56   :  { %130 = vperm.xlu0 %3158, %v95_v2  }
 0xb88   :  { %v1914_v43 = vpop.permute.xlu1 %1913 }
 0xb89   :  { %v1916_v13 = vmul.f32 %v1914_v43, %v1911_v62 }
 0xb8b   :  { %v4157_v41 = vadd.f32 %v1917_v60, %v1916_v13  ;;  %v4450_v60 = vld [vmem:[#allocation19_spill] sm:$0xff] }
 0xb8c   :  { %v2062_v13 = vrot.slane %v2057_v48, %v4450_v60 }
 0xb8d   :  { %1920 = vrot.lane.b32.xlu1 %v4157_v41, %s3349_s15 }
 0xbc4   :  { %v2071_v54 = vpop.permute.xlu0 %2070 }
 0xbc5   :  { %3129 = vmatmul.mubr.msk.f32.vlgmr.msra.gmra.mxu0 %vm86_vm0, %v2071_v54 }
 0xbc6   :  { %2302 = vmatpush1.msra.mxu0 %v3919_v15  ;;  %2349 = vmatprep.mubr.f32.mxu0 %v4407_v22 }
 0xbc7   :  { %2303 = vmatprep.subr.mxu0 %v3921_v17 }
 0xbc8   :  { %2304 = vmatpush1.msra.mxu0 %v3924_v18 }
 0xbc9   :  { %2305 = vmatprep.subr.mxu0 %v3927_v19 }
 0xbca   :  { %2306 = vmatpush1.msra.mxu0 %v3931_v40 }
 0xbcb   :  { %2307 = vmatprep.subr.mxu0 %v3934_v20 }
 0xbcc   :  { %2308 = vmatpush1.msra.mxu0 %v3937_v51 }
 0xbcd   :  { %2309 = vmatprep.subr.mxu0 %v3940_v52 }
 0xbce   :  { %2310 = vmatpush1.msra.mxu0 %v3943_v53 }
 0xbcf   :  { %2311 = vmatprep.subr.mxu0 %v3946_v55 }
 0xbd0   :  { %2312 = vmatpush1.msra.mxu0 %v3949_v58 }
 0xbd1   :  { %2313 = vmatprep.subr.mxu0 %v3952_v32  ;;  %v131_v61 = vpop.permute.xlu0 %130 }
 0xbd2   :  { %2314 = vmatpush1.msra.mxu0 %v3955_v56  ;;  %v161_v0 = vmul.f32 %v3499_v27, %v131_v61  ;;  %v162_v34 = vmul.f32 %v3502_v28, %v131_v61 }
 0xbd3   :  { %2315 = vmatprep.subr.mxu0 %v3958_v50 }
 0xbd4   :  { %v189_v8 = vadd.f32 %v3505_v29, %v161_v0  ;;  %v190_v63 = vadd.f32 %v3508_v30, %v162_v34  ;;  %2316 = vmatpush1.msra.mxu0 %v3961_v59 }
 0xbd5   :  { %3133 = vmatmul.mubr.msk.f32.vlgmr.msra.gmra.mxu0 %vm86_vm0, %v2071_v54  ;;  %2520 = vmatprep.subr.mxu0 %v3866_v49 }
 0xbd6   :  { %207 = vst.msk [vmem:[#allocation4 + $0x68] sm:$0xff] %vm86_vm0, %v190_v63  ;;  %2521 = vmatpush1.msra.mxu0 %v3868_v35  ;;  %2568 = vmatprep.mubr.f32.mxu0 %v4407_v22  ;;  %v4440_v35 = vld [vmem:[#allocation23_spill] sm:$0xff] }
 0xbd7   :  { %2522 = vmatprep.subr.mxu0 %v3870_v21  ;;  %v4441_v21 = vld [vmem:[#allocation24_spill] sm:$0xff] }
 0xbd8   :  { %2523 = vmatpush1.msra.mxu0 %v3873_v46  ;;  %v4442_v46 = vld [vmem:[#allocation25_spill] sm:$0xff] }
 0xbd9   :  { %2524 = vmatprep.subr.mxu0 %v3876_v38  ;;  %v4443_v38 = vld [vmem:[#allocation26_spill] sm:$0xff] }
 0xbda   :  { %2525 = vmatpush1.msra.mxu0 %v3879_v3  ;;  %v4444_v3 = vld [vmem:[#allocation27_spill] sm:$0xff] }
 0xbdb   :  { %2526 = vmatprep.subr.mxu0 %v3882_v37  ;;  %v4445_v37 = vld [vmem:[#allocation28_spill] sm:$0xff] }
 0xbdc   :  { %2527 = vmatpush1.msra.mxu0 %v3885_v23  ;;  %v4446_v23 = vld [vmem:[#allocation29_spill] sm:$0xff] }
 0xbdd   :  { %2528 = vmatprep.subr.mxu0 %v3888_v44  ;;  %v4447_v44 = vld [vmem:[#allocation30_spill] sm:$0xff]  ;;  %v2268_v62 = vld [vmem:[#allocation4 + $0x68] sm:$0xff] }
 0xbde   :  { %2529 = vmatpush1.msra.mxu0 %v3891_v45  ;;  %v4448_v45 = vld [vmem:[#allocation21_spill] sm:$0xff] }
 0xbdf   :  { %2530 = vmatprep.subr.mxu0 %v3894_v36 }
 0xbe0   :  { %2531 = vmatpush1.msra.mxu0 %v3897_v24 }
 0xbe1   :  { %2532 = vmatprep.subr.mxu0 %v3900_v4 }
 0xbe2   :  { %2533 = vmatpush1.msra.mxu0 %v3903_v5 }
 0xbe3   :  { %2534 = vmatprep.subr.mxu0 %v3906_v6 }
 0xbe4   :  { %2535 = vmatpush1.msra.mxu0 %v3909_v7 }
 0xbe5   :  { %2772 = vmatprep.subr.mxu0 %v4008_v9 }
 0xbff   :  { %v1921_v49 = vpop.permute.xlu1 %1920 }
 0xc00   :  { %1924 = vst.msk [vmem:[#allocation5 + $0x20] sm:$0xff] %vm86_vm0, %v1921_v49  ;;  %3130 = vmatmul.mubr.msk.f32.vlgmr.msra.gmra.mxu1 %vm86_vm0, %v1921_v49 }
 0xc01   :  { %2432 = vmatpush1.msra.mxu1 %v4010_v25  ;;  %2479 = vmatprep.mubr.f32.mxu1 %v4407_v22 }
 0xc02   :  { %2433 = vmatprep.subr.mxu1 %v4012_v10 }
 0xc03   :  { %2434 = vmatpush1.msra.mxu1 %v4015_v12 }
 0xc04   :  { %2435 = vmatprep.subr.mxu1 %v4019_v39 }
 0xc05   :  { %2436 = vmatpush1.msra.mxu1 %v4022_v31 }
 0xc06   :  { %2437 = vmatprep.subr.mxu1 %v4025_v16 }
 0xc07   :  { %2438 = vmatpush1.msra.mxu1 %v4028_v57 }
 0xc08   :  { %2439 = vmatprep.subr.mxu1 %v4440_v35 }
 0xc09   :  { %2440 = vmatpush1.msra.mxu1 %v4441_v21 }
 0xc0a   :  { %2441 = vmatprep.subr.mxu1 %v4442_v46 }
 0xc0b   :  { %2442 = vmatpush1.msra.mxu1 %v4443_v38 }
 0xc0c   :  { %2443 = vmatprep.subr.mxu1 %v4444_v3 }
 0xc0d   :  { %2444 = vmatpush1.msra.mxu1 %v4445_v37 }
 0xc0e   :  { %2445 = vmatprep.subr.mxu1 %v4446_v23 }
 0xc0f   :  { %2446 = vmatpush1.msra.mxu1 %v4447_v44 }
 0xc10   :  { %2642 = vmatprep.subr.mxu1 %v4448_v45 }
 0xc85   :  { %v2140_v36 = vpop.f32.mrf.mxu0 }
 0xc86   :  { %v2141_v54 = vadd.f32 %v2140_v36, %v2062_v13 }
 0xc87   :  { %v2142_v24 = vpop.f32.mrf.mxu0 }
 0xc95   :  { %v2351_v4 = vpop.f32.mrf.mxu0 }
 0xc96   :  { %v2356_v5 = vadd.f32 %v2351_v4, %v189_v8  ;;  %v2066_v4 = vrot.slane %v2057_v48, %v4439_v26 }
 0xc97   :  { %v2353_v1 = vpop.f32.mrf.mxu0 }
 0xc98   :  { %v3134_v6 = vmul.f32 -1.442695, %v2356_v5  ;;  %v2370_v11 = vadd.f32 %v4449_v47, %v2353_v1 }
 0xc9a   :  { %3226 = vpow2.f32 %v3134_v6 }
 0xca7   :  { %v3227_v7 = vpop.eup %3226 }
 0xca8   :  { %v2360_v9 = vadd.f32 1.0, %v3227_v7  ;;  %v2143_v7 = vadd.f32 %v2142_v24, %v2066_v4  ;;  %v96_v24 = vld [vmem:[%s4328_s0 + $0x38] sm:$0xff] }
 0xca9   :  { %v2836_v4 = vld [vmem:[#allocation12 + $0x48] sm:$0xff] }
 0xcaa   :  { %3228 = vrcp.f32 %v2360_v9 }
 0xcb7   :  { %v3229_v14 = vpop.eup %3228 }
 0xcb8   :  { %v2371_v2 = vmul.f32 %v3229_v14, %v2370_v11  ;;  %v2374_v11 = vsub.f32 1.0, %v3229_v14 }
 0xcba   :  { %v2372_v43 = vadd.f32 %v2371_v2, %v2268_v62  ;;  %v2380_v62 = vmul.f32 %v3229_v14, %v4149_v33  ;;  %v2841_v14 = vld [vmem:[#allocation12 + $0x70] sm:$0xff] }
 0xcbc   :  { %3230 = vtanh.f32 %v2372_v43 }
 0xcc0   :  { %v2229_v61 = vpop.f32.mrf.mxu1 }
 0xcc1   :  { %v2234_v0 = vadd.f32 %v2229_v61, %v2141_v54 }
 0xcc2   :  { %v2231_v45 = vpop.f32.mrf.mxu1 }
 0xcc3   :  { %v3131_v34 = vmul.f32 -1.442695, %v2234_v0  ;;  %v2248_v5 = vadd.f32 %v4143_v42, %v2231_v45  ;;  %v2837_v45 = vld [vmem:[#allocation12 + $0x50] sm:$0xff] }
 0xcc5   :  { %3232 = vpow2.f32 %v3131_v34 }
 0xcc9   :  { %v3231_v8 = vpop.eup %3230 }
 0xcca   :  { %2376 = vrot.lane.b32.xlu1 %v3231_v8, %s3349_s15  ;;  %v2840_v8 = vld [vmem:[#allocation12 + $0x68] sm:$0xff] }
 0xcd2   :  { %v3233_v63 = vpop.eup %3232 }
 0xcd3   :  { %v2238_v49 = vadd.f32 1.0, %v3233_v63  ;;  %v2839_v63 = vld [vmem:[#allocation12 + $0x60] sm:$0xff] }
 0xcd5   :  { %3234 = vrcp.f32 %v2238_v49  ;;  %v2838_v49 = vld [vmem:[#allocation12 + $0x58] sm:$0xff] }
 0xce2   :  { %v3235_v6 = vpop.eup %3234 }
 0xce3   :  { %v2249_v9 = vmul.f32 %v3235_v6, %v2248_v5  ;;  %v2252_v48 = vsub.f32 1.0, %v3235_v6  ;;  %v2258_v61 = vmul.f32 %v3235_v6, %v4157_v41  ;;  %v2835_v5 = vld [vmem:[#allocation12 + $0x40] sm:$0xff]  ;;  %v2834_v6 = vld [vmem:[#allocation12 + $0x38] sm:$0xff] }
 0xce5   :  { %v2250_v1 = vadd.f32 %v2249_v9, %v2143_v7  ;;  %v2833_v9 = vld [vmem:[#allocation12 + $0x30] sm:$0xff] }
 0xce7   :  { %3236 = vtanh.f32 %v2250_v1 }
 0xcf4   :  { %v3237_v36 = vpop.eup %3236 }
 0xcf5   :  { %2254 = vrot.lane.b32.xlu0 %v3237_v36, %s3349_s15  ;;  %v2832_v36 = vld [vmem:[#allocation12 + $0x28] sm:$0xff] }
 0xd3c   :  { %v2377_v2 = vpop.permute.xlu1 %2376 }
 0xd3d   :  { %v2379_v43 = vmul.f32 %v2377_v2, %v2374_v11 }
 0xd3f   :  { %v4231_v13 = vadd.f32 %v2380_v62, %v2379_v43  ;;  %v2831_v62 = vld [vmem:[#allocation12 + $0x20] sm:$0xff]  ;;  %v2830_v43 = vld [vmem:[#allocation12 + $0x18] sm:$0xff] }
 0xd41   :  { %2411 = vrot.lane.b32.xlu1 %v4231_v13, %s3349_s15 }
 0xd45   :  { %135 = vperm.xlu1 %3159, %v96_v24  }
 0xd67   :  { %v2255_v54 = vpop.permute.xlu0 %2254 }
 0xd68   :  { %v2257_v0 = vmul.f32 %v2255_v54, %v2252_v48  ;;  %v2829_v48 = vld [vmem:[#allocation12 + $0x10] sm:$0xff]  ;;  %v2828_v54 = vld [vmem:[#allocation12 + $0x8] sm:$0xff] }
 0xd6a   :  { %v4239_v34 = vadd.f32 %v2258_v61, %v2257_v0  ;;  %v2827_v61 = vld [vmem:[#allocation12] sm:$0xff] }
 0xd6c   :  { %2261 = vrot.lane.b32.xlu0 %v4239_v34, %s3349_s15 }
 0xdb3   :  { %v2412_v33 = vpop.permute.xlu1 %2411 }
 0xdb4   :  { %3136 = vmatmul.mubr.msk.f32.vlgmr.msra.gmra.mxu1 %vm86_vm0, %v2412_v33 }
 0xdb5   :  { %2643 = vmatpush1.msra.mxu1 %v3919_v15  ;;  %2690 = vmatprep.mubr.f32.mxu1 %v4407_v22 }
 0xdb6   :  { %2644 = vmatprep.subr.mxu1 %v3921_v17 }
 0xdb7   :  { %2645 = vmatpush1.msra.mxu1 %v3924_v18 }
 0xdb8   :  { %2646 = vmatprep.subr.mxu1 %v3927_v19 }
 0xdb9   :  { %2647 = vmatpush1.msra.mxu1 %v3931_v40 }
 0xdba   :  { %2648 = vmatprep.subr.mxu1 %v3934_v20 }
 0xdbb   :  { %2649 = vmatpush1.msra.mxu1 %v3937_v51 }
 0xdbc   :  { %2650 = vmatprep.subr.mxu1 %v3940_v52  ;;  %v2398_v52 = vld [vmem:[%s4334_s6] sm:$0x3] }
 0xdbd   :  { %2651 = vmatpush1.msra.mxu1 %v3943_v53 }
 0xdbe   :  { %2652 = vmatprep.subr.mxu1 %v3946_v55  ;;  %v2403_v55 = vrot.slane %v2398_v52, %v4450_v60 }
 0xdbf   :  { %2653 = vmatpush1.msra.mxu1 %v3949_v58 }
 0xdc0   :  { %2654 = vmatprep.subr.mxu1 %v3952_v32  ;;  %v136_v15 = vpop.permute.xlu1 %135 }
 0xdc1   :  { %2655 = vmatpush1.msra.mxu1 %v3955_v56  ;;  %v163_v17 = vmul.f32 %v3499_v27, %v136_v15  ;;  %v164_v18 = vmul.f32 %v3502_v28, %v136_v15 }
 0xdc2   :  { %2656 = vmatprep.subr.mxu1 %v3958_v50 }
 0xdc3   :  { %v191_v19 = vadd.f32 %v3505_v29, %v163_v17  ;;  %v192_v40 = vadd.f32 %v3508_v30, %v164_v18  ;;  %2657 = vmatpush1.msra.mxu1 %v3961_v59 }
 0xdc4   :  { %3140 = vmatmul.mubr.msk.f32.vlgmr.msra.gmra.mxu1 %vm86_vm0, %v2412_v33 }
 0xdc5   :  { %209 = vst.msk [vmem:[#allocation4 + $0x78] sm:$0xff] %vm86_vm0, %v192_v40  ;;  %2909 = vmatprep.mubr.f32.mxu1 %v4407_v22  ;;  %v2739_v40 = vld [vmem:[%s4334_s6] sm:$0x3] }
 0xdde   :  { %v2262_v20 = vpop.permute.xlu0 %2261 }
 0xddf   :  { %2265 = vst.msk [vmem:[#allocation5 + $0x28] sm:$0xff] %vm86_vm0, %v2262_v20  ;;  %3137 = vmatmul.mubr.msk.f32.vlgmr.msra.gmra.mxu0 %vm86_vm0, %v2262_v20 }
 0xde0   :  { %2773 = vmatpush1.msra.mxu0 %v4010_v25  ;;  %2820 = vmatprep.mubr.f32.mxu0 %v4407_v22 }
 0xde1   :  { %2774 = vmatprep.subr.mxu0 %v4012_v10 }
 0xde2   :  { %2775 = vmatpush1.msra.mxu0 %v4015_v12 }
 0xde3   :  { %2776 = vmatprep.subr.mxu0 %v4019_v39  ;;  %v2609_v39 = vld [vmem:[#allocation4 + $0x78] sm:$0xff] }
 0xde4   :  { %2777 = vmatpush1.msra.mxu0 %v4022_v31 }
 0xde5   :  { %2778 = vmatprep.subr.mxu0 %v4025_v16 }
 0xde6   :  { %2779 = vmatpush1.msra.mxu0 %v4028_v57 }
 0xde7   :  { %2780 = vmatprep.subr.mxu0 %v4440_v35 }
 0xde8   :  { %2781 = vmatpush1.msra.mxu0 %v4441_v21  ;;  %v2407_v21 = vrot.slane %v2398_v52, %v4439_v26 }
 0xde9   :  { %2782 = vmatprep.subr.mxu0 %v4442_v46 }
 0xdea   :  { %2783 = vmatpush1.msra.mxu0 %v4443_v38 }
 0xdeb   :  { %2784 = vmatprep.subr.mxu0 %v4444_v3 }
 0xdec   :  { %2785 = vmatpush1.msra.mxu0 %v4445_v37 }
 0xded   :  { %2786 = vmatprep.subr.mxu0 %v4446_v23 }
 0xdee   :  { %2787 = vmatpush1.msra.mxu0 %v4447_v44 }
 0xe74   :  { %v2481_v22 = vpop.f32.mrf.mxu1 }
 0xe75   :  { %v2482_v58 = vadd.f32 %v2481_v22, %v2403_v55 }
 0xe76   :  { %v2483_v27 = vpop.f32.mrf.mxu1 }
 0xe77   :  { %v2484_v3 = vadd.f32 %v2483_v27, %v2407_v21 }
 0xe84   :  { %v2692_v28 = vpop.f32.mrf.mxu1 }
 0xe85   :  { %v2697_v29 = vadd.f32 %v2692_v28, %v191_v19 }
 0xe86   :  { %v2694_v50 = vpop.f32.mrf.mxu1 }
 0xe87   :  { %v3141_v30 = vmul.f32 -1.442695, %v2697_v29  ;;  %v2711_v25 = vadd.f32 %v4449_v47, %v2694_v50  ;;  %v2842_v47 = vld [vmem:[#allocation12 + $0x78] sm:$0xff] }
 0xe88   :  { %2861 = vmatprep.subr.mxu1 %v2842_v47  ;;  %v2952_v47 = vld [vmem:[#allocation5 + $0x8] sm:$0xff] }
 0xe89   :  { %3238 = vpow2.f32 %v3141_v30  ;;  %2862 = vmatpush1.msra.mxu1 %v2841_v14 }
 0xe8a   :  { %2863 = vmatprep.subr.mxu1 %v2840_v8  ;;  %v2955_v8 = vld [vmem:[#allocation5 + $0x20] sm:$0xff] }
 0xe8b   :  { %2864 = vmatpush1.msra.mxu1 %v2839_v63 }
 0xe8c   :  { %2865 = vmatprep.subr.mxu1 %v2838_v49 }
 0xe8d   :  { %2866 = vmatpush1.msra.mxu1 %v2837_v45 }
 0xe8e   :  { %2867 = vmatprep.subr.mxu1 %v2836_v4 }
 0xe8f   :  { %2868 = vmatpush1.msra.mxu1 %v2835_v5 }
 0xe90   :  { %2869 = vmatprep.subr.mxu1 %v2834_v6 }
 0xe91   :  { %2870 = vmatpush1.msra.mxu1 %v2833_v9 }
 0xe92   :  { %2871 = vmatprep.subr.mxu1 %v2832_v36 }
 0xe93   :  { %2872 = vmatpush1.msra.mxu1 %v2831_v62 }
 0xe94   :  { %2873 = vmatprep.subr.mxu1 %v2830_v43 }
 0xe95   :  { %2874 = vmatpush1.msra.mxu1 %v2829_v48  ;;  %v4451_v48 = vlaneseq }
 0xe96   :  { %v3239_v51 = vpop.eup %3238  ;;  %2875 = vmatprep.subr.mxu1 %v2828_v54 }
 0xe97   :  { %v2701_v53 = vadd.f32 1.0, %v3239_v51  ;;  %2876 = vmatpush1.msra.mxu1 %v2827_v61  ;;  %v3025_v54 = vand.u32 127, %v4451_v48 }
 0xe99   :  { %3240 = vrcp.f32 %v2701_v53  ;;  %v2748_v53 = vrot.slane %v2739_v40, %v4439_v26 }
 0xe9f   :  { %v2570_v32 = vpop.f32.mrf.mxu0 }
 0xea0   :  { %v2575_v56 = vadd.f32 %v2570_v32, %v2482_v58 }
 0xea1   :  { %v2572_v35 = vpop.f32.mrf.mxu0 }
 0xea2   :  { %v3138_v59 = vmul.f32 -1.442695, %v2575_v56  ;;  %v2589_v46 = vadd.f32 %v4143_v42, %v2572_v35 }
 0xea4   :  { %3242 = vpow2.f32 %v3138_v59 }
 0xea6   :  { %v3241_v10 = vpop.eup %3240 }
 0xea7   :  { %v2712_v12 = vmul.f32 %v3241_v10, %v2711_v25  ;;  %v2715_v7 = vsub.f32 1.0, %v3241_v10  ;;  %v2721_v11 = vmul.f32 %v3241_v10, %v4231_v13  ;;  %v2951_v25 = vld [vmem:[#allocation5] sm:$0xff]  ;;  %v3147_v10 = vld [vmem:[%s4337_s9] ss:$0 sm:$0xff]  ;;  %s3350_s9 = smov [#allocation13]  }
 0xea8   :  { %v2967_v14 = vmul.f32 %v3147_v10, %v2952_v47  ;;  %v2970_v49 = vmul.f32 %v3147_v10, %v2955_v8 }
 0xea9   :  { %v2713_v31 = vadd.f32 %v2712_v12, %v2609_v39  ;;  %v2966_v12 = vmul.f32 %v3147_v10, %v2951_v25  ;;  %v2953_v39 = vld [vmem:[#allocation5 + $0x10] sm:$0xff] }
 0xeaa   :  { %v2977_v63 = vsel %vm86_vm0, %v2967_v14, 0.0  ;;  %v2986_v4 = vsel %vm86_vm0, %v2970_v49, 0.0 }
 0xeab   :  { %3244 = vtanh.f32 %v2713_v31  ;;  %v2974_v26 = vsel %vm86_vm0, %v2966_v12, 0.0  ;;  %v2968_v31 = vmul.f32 %v3147_v10, %v2953_v39 }
 0xeb1   :  { %v3243_v16 = vpop.eup %3242 }
 0xeb2   :  { %v2579_v57 = vadd.f32 1.0, %v3243_v16  ;;  %v2980_v16 = vsel %vm86_vm0, %v2968_v31, 0.0 }
 0xeb4   :  { %3246 = vrcp.f32 %v2579_v57 }
 0xeb8   :  { %v3245_v41 = vpop.eup %3244 }
 0xeb9   :  { %2717 = vrot.lane.b32.xlu0 %v3245_v41, %s3349_s15  ;;  %v2956_v41 = vld [vmem:[#allocation5 + $0x28] sm:$0xff] }
 0xeba   :  { %v2971_v21 = vmul.f32 %v3147_v10, %v2956_v41 }
 0xec1   :  { %v3247_v38 = vpop.eup %3246 }
 0xec2   :  { %v2590_v37 = vmul.f32 %v3247_v38, %v2589_v46  ;;  %v2593_v0 = vsub.f32 1.0, %v3247_v38  ;;  %v2599_v13 = vmul.f32 %v3247_v38, %v4239_v34  ;;  %v2744_v34 = vrot.slane %v2739_v40, %v4450_v60 }
 0xec3   :  { %v2989_v46 = vsel %vm86_vm0, %v2971_v21, 0.0 }
 0xec4   :  { %v2591_v23 = vadd.f32 %v2590_v37, %v2484_v3 }
 0xec6   :  { %3248 = vtanh.f32 %v2591_v23 }
 0xed3   :  { %v3249_v44 = vpop.eup %3248 }
 0xed4   :  { %2595 = vrot.lane.b32.xlu1 %v3249_v44, %s3349_s15 }
 0xf2b   :  { %v2718_v1 = vpop.permute.xlu0 %2717 }
 0xf2c   :  { %v2720_v2 = vmul.f32 %v2718_v1, %v2715_v7  ;;  %v3148_v7 = vld [vmem:[#allocation6] ss:$0 sm:$0xff] }
 0xf2e   :  { %v2722_v24 = vadd.f32 %v2721_v11, %v2720_v2 }
 0xf30   :  { %2752 = vrot.lane.b32.xlu0 %v2722_v24, %s3349_s15 }
 0xf46   :  { %v2596_v33 = vpop.permute.xlu1 %2595 }
 0xf47   :  { %v2598_v15 = vmul.f32 %v2596_v33, %v2593_v0  ;;  %v4452_v0 = vld [vmem:[#allocation18_spill] sm:$0xff] }
 0xf48   :  { %v3028_v33 = vsub.s32 %v3025_v54, %v4452_v0 }
 0xf49   :  { %v2600_v17 = vadd.f32 %v2599_v13, %v2598_v15 }
 0xf4b   :  { %2602 = vrot.lane.b32.xlu1 %v2600_v17, %s3349_s15 }
 0xfa2   :  { %v2753_v18 = vpop.permute.xlu0 %2752 }
 0xfa3   :  { %2949 = vst.msk [vmem:[#allocation2] sm:$0xff] %vm86_vm0, %v2753_v18  ;;  %3143 = vmatmul.mubr.msk.f32.vlgmr.msra.gmra.mxu0 %vm86_vm0, %v2753_v18 }
 0xfbd   :  { %v2603_v19 = vpop.permute.xlu1 %2602 }
 0xfbe   :  { %2606 = vst.msk [vmem:[#allocation5 + $0x30] sm:$0xff] %vm86_vm0, %v2603_v19  ;;  %3144 = vmatmul.mubr.msk.f32.vlgmr.msra.gmra.mxu1 %vm86_vm0, %v2603_v19 }
 0xfc5   :  { %v2957_v45 = vld [vmem:[#allocation5 + $0x30] sm:$0xff] }
 0xfc6   :  { %v2972_v5 = vmul.f32 %v3147_v10, %v2957_v45 }
 0xfc8   :  { %v2992_v6 = vsel %vm86_vm0, %v2972_v5, 0.0 }
0x1063   :  { %v2822_v20 = vpop.f32.mrf.mxu0 }
0x1064   :  { %v2823_v22 = vadd.f32 %v2822_v20, %v2744_v34 }
0x1065   :  { %v2824_v55 = vpop.f32.mrf.mxu0 }
0x1066   :  { %v2825_v56 = vadd.f32 %v2824_v55, %v2748_v53 }
0x107e   :  { %v2911_v27 = vpop.f32.mrf.mxu1 }
0x107f   :  { %v2916_v28 = vadd.f32 %v2911_v27, %v2823_v22 }
0x1080   :  { %v2913_v52 = vpop.f32.mrf.mxu1 }
0x1081   :  { %v3145_v29 = vmul.f32 -1.442695, %v2916_v28  ;;  %v2930_v58 = vadd.f32 %v4143_v42, %v2913_v52  ;;  %v2954_v42 = vld [vmem:[#allocation5 + $0x18] sm:$0xff] }
0x1082   :  { %v2969_v57 = vmul.f32 %v3147_v10, %v2954_v42 }
0x1083   :  { %3250 = vpow2.f32 %v3145_v29 }
0x1084   :  { %v2983_v35 = vsel %vm86_vm0, %v2969_v57, 0.0 }
0x1090   :  { %v3251_v30 = vpop.eup %3250 }
0x1091   :  { %v2920_v51 = vadd.f32 1.0, %v3251_v30 }
0x1093   :  { %3252 = vrcp.f32 %v2920_v51 }
0x10a0   :  { %v3253_v32 = vpop.eup %3252 }
0x10a1   :  { %v2931_v50 = vmul.f32 %v3253_v32, %v2930_v58  ;;  %v2934_v38 = vsub.f32 1.0, %v3253_v32  ;;  %v2940_v37 = vmul.f32 %v3253_v32, %v2600_v17 }
0x10a3   :  { %v2932_v59 = vadd.f32 %v2931_v50, %v2825_v56 }
0x10a5   :  { %3254 = vtanh.f32 %v2932_v59 }
0x10b2   :  { %v3255_v60 = vpop.eup %3254 }
0x10b3   :  { %2936 = vrot.lane.b32.xlu0 %v3255_v60, %s3349_s15 }
0x10d2   :  { %2975 = vadd.xlane.f32.xlu0 %v2974_v26 }
0x10d6   :  { %2981 = vadd.xlane.f32.xlu0 %v2980_v16 }
0x10da   :  { %2984 = vadd.xlane.f32.xlu0 %v2983_v35 }
0x10de   :  { %2990 = vadd.xlane.f32.xlu0 %v2989_v46 }
0x1125   :  { %v2937_v3 = vpop.permute.xlu0 %2936 }
0x1126   :  { %v2939_v23 = vmul.f32 %v2937_v3, %v2934_v38 }
0x1128   :  { %v2941_v44 = vadd.f32 %v2940_v37, %v2939_v23 }
0x112a   :  { %2943 = vrot.lane.b32.xlu1 %v2941_v44, %s3349_s15  ;;  %s3081_s15 = sshll.u32 %s3350_s9, 4  ;;  %s3082_s15 = int_to_ptr.vmem [resolvable:$true] %s3081_s15 }
0x112b   :  { %s3316_s29 = scalar_lea.vmem %s3082_s15, 128  ;;  %p3321_p2 = scmp.lt.s32.totalorder %s3082_s15, %s3082_s15 }
0x112c   :  { %p3317_p1 = scmp.ne.s32.totalorder %s3082_s15, %s3316_s29  ;;  %p3322_p3 = scmp.lt.s32.totalorder %s3316_s29, %s3316_s29 }
0x112e   :  { %p3323_p4 = por %p3322_p3, %p3321_p2 }
0x1130   :  { %p3324_p5 = pnand %p3323_p4, %p3317_p1 }
0x114e   :  { %2978 = vadd.xlane.f32.xlu1 %v2977_v63 }
0x1152   :  { %2987 = vadd.xlane.f32.xlu1 %v2986_v4 }
0x1156   :  { %2993 = vadd.xlane.f32.xlu1 %v2992_v6 }
0x115b   :  { %v2976_v24 = vpop.xlane.xlu0 %2975 }
0x115f   :  { %v2982_v17 = vpop.xlane.xlu0 %2981 }
0x1163   :  { %v2985_v34 = vpop.xlane.xlu0 %2984 }
0x1167   :  { %3005 = vperm.xlu1 %3159, %v3148_v7   ;;  %v2991_v51 = vpop.xlane.xlu0 %2990 }
0x119c   :  { %v2944_v9 = vpop.permute.xlu1 %2943 }
0x119d   :  { %2947 = vst.msk [vmem:[#allocation5 + $0x38] sm:$0xff] %vm86_vm0, %v2944_v9  ;;  %2950 = vst.msk [vmem:[#allocation3] sm:$0xff] %vm86_vm0, %v2944_v9 }
0x11a4   :  { %v2958_v1 = vld [vmem:[#allocation5 + $0x38] sm:$0xff] }
0x11a5   :  { %v2973_v36 = vmul.f32 %v3147_v10, %v2958_v1 }
0x11a7   :  { %v2995_v11 = vsel %vm86_vm0, %v2973_v36, 0.0 }
0x11a8   :  { %2996 = vadd.xlane.f32.xlu0 %v2995_v11 }
0x11d7   :  { %v2979_v2 = vpop.xlane.xlu1 %2978 }
0x11db   :  { %v2988_v62 = vpop.xlane.xlu1 %2987 }
0x11df   :  { %v2994_v43 = vpop.xlane.xlu1 %2993 }
0x11e3   :  { %v3006_v61 = vpop.permute.xlu1 %3005 }
0x11e4   :  { %v3008_v13 = vadd.f32 %v3006_v61, %v2976_v24  ;;  %v3009_v15 = vadd.f32 %v3006_v61, %v2979_v2  ;;  %v3010_v18 = vadd.f32 %v3006_v61, %v2982_v17  ;;  %v3011_v22 = vadd.f32 %v3006_v61, %v2985_v34 }
0x11e5   :  { %v3012_v28 = vadd.f32 %v3006_v61, %v2988_v62  ;;  %v3013_v52 = vadd.f32 %v3006_v61, %v2991_v51  ;;  %v3014_v58 = vadd.f32 %v3006_v61, %v2994_v43 }
0x11e6   :  { %v3029_v19 = vrot.slane %v3008_v13, %v3028_v33  ;;  %v3033_v40 = vrot.slane %v3009_v15, %v3028_v33  ;;  %v3037_v20 = vrot.slane %v3010_v18, %v3028_v33  ;;  %v3041_v30 = vrot.slane %v3011_v22, %v3028_v33 }
0x11e7   :  { %v3045_v55 = vrot.slane %v3012_v28, %v3028_v33  ;;  %v3049_v56 = vrot.slane %v3013_v52, %v3028_v33  ;;  %v3053_v25 = vrot.slane %v3014_v58, %v3028_v33 }
0x11e8   :  { %v3059_v27 = vsel %vm3058_vm1, %v3033_v40, %v3029_v19 }
0x11e9   :  { %v3061_v29 = vsel %vm3060_vm2, %v3037_v20, %v3059_v27 }
0x11ea   :  { %v3063_v53 = vsel %vm3062_vm3, %v3041_v30, %v3061_v29 }
0x11eb   :  { %v3065_v32 = vsel %vm3064_vm4, %v3045_v55, %v3063_v53 }
0x11ec   :  { %v3067_v60 = vsel %vm3066_vm5, %v3049_v56, %v3065_v32 }
0x11ed   :  { %v3069_v12 = vsel %vm3068_vm6, %v3053_v25, %v3067_v60 }
0x1231   :  { %v2997_v50 = vpop.xlane.xlu0 %2996 }
0x1232   :  { %v3015_v59 = vadd.f32 %v3006_v61, %v2997_v50 }
0x1234   :  { %v3057_v10 = vrot.slane %v3015_v59, %v3028_v33 }
0x1236   :  { %v3071_v39 = vsel %vm3070_vm7, %v3057_v10, %v3069_v12 }
0x1237   :  { %3074 = vst.msk [vmem:[#allocation13] sm:$0xff] %vm3073_vm8, %v3071_v39 }
0x1238   :  { %3327 = shalt.err (!%p3324_p5)
}
0x1239   :  { %3084 = dma.vmem_to_hbm [thread:$0]  %s3082_s15, 128, %s4339_s11, [#allocation9]  }
0x123a   :  { %3340 = dma.done.wait [#allocation9], 128  }
0x123b   :  { %3341 = vsyncadd [#allocation9], 4294967168 }
0x123c   :  { %3088 = vsyncpa [#allocation8], 1 }
0x123d   :  { %3089 = vsyncpa [#allocation11], 1 }
0x123e   :  { %3090 = vsyncpa [#allocation9], 1 }

</bundles_post_ra>
